<compile_context>
chip_gen: v5e
topology: v5e:2x2
jax: 0.10.0
libtpu: 0.0.40
codegen_flags: <defaults>
</compile_context>

<pallas_src>
import jax
import jax.numpy as jnp
import numpy as np
from jax.experimental import pallas as pl
from jax.experimental.pallas import tpu as pltpu

NUM_BLOCKS = 6
NUM_FILTERS = 128
NUM_LAYERS = 1 + NUM_BLOCKS        # distinct conv+BN weight sets (stem + blocks)
BN_EPS = 1e-5


# ----------------------------------------------------------------------------
# Fused kernel: the entire forward pass for one image per grid step.
# ----------------------------------------------------------------------------
def _make_kernel(H, W, Wp, marg):
    M1 = H * Wp                     # flattened (row-major) padded spatial size
    F = NUM_FILTERS

    def kernel(x_ref, w_ref, b_ref, mask_ref, o_ref, h_ref):
        n_layers = b_ref.shape[0]

        # Zero only the top/bottom halo margins (they are never written again);
        # the interior is fully rewritten before every conv.
        zeros_m = jnp.zeros((marg, F), h_ref.dtype)
        h_ref[pl.ds(0, marg), :] = zeros_m
        h_ref[pl.ds(marg + M1, marg), :] = zeros_m
        # This grid step's image (already width/channel zero-padded, bf16).
        h_ref[pl.ds(marg, M1), :] = x_ref[0]

        # Column-validity mask: rows whose j >= W are width padding and must
        # stay zero so neighbouring taps read zero "SAME" padding.  Hoisted
        # once as an f32 value (VPU math stays f32 -> v5e friendly).
        col_mask = mask_ref[...]

        def conv_bn(layer):
            # 3x3 conv as 9 shift-and-accumulate (M1,F)x(F,F) MXU matmuls;
            # every tap is a statically-shifted slice of the halo'd scratch.
            acc = jnp.zeros((M1, F), jnp.float32)
            for t in range(9):
                dh, dw = t // 3 - 1, t % 3 - 1
                shift = dh * Wp + dw
                tap = h_ref[pl.ds(marg + shift, M1), :]        # (M1, F) bf16
                acc = acc + jnp.dot(tap, w_ref[layer * 9 + t],
                                    preferred_element_type=jnp.float32)
            return acc + b_ref[layer]                          # folded-BN bias

        def store_h(val_f32):
            # Aligned, lane-dense interior store; pad columns forced to zero.
            h_ref[pl.ds(marg, M1), :] = (val_f32 * col_mask).astype(h_ref.dtype)

        # Stem: relu(bn(conv(x))).
        h0 = jnp.maximum(conv_bn(0), 0.0)
        store_h(h0)

        # Residual blocks: y = relu(conv_bn(h)); h = relu(h + conv_bn(y)),
        # the SAME conv+BN weights applied twice (mirrors the PyTorch module).
        def block_body(blk, _):
            res = h_ref[pl.ds(marg, M1), :]                    # bf16 residual
            y = jnp.maximum(conv_bn(blk), 0.0)
            store_h(y)
            h2 = jnp.maximum(res.astype(jnp.float32) + conv_bn(blk), 0.0)
            store_h(h2)
            return h2                                          # f32 carry

        h_fin = jax.lax.fori_loop(1, n_layers, block_body, h0)
        o_ref[0] = h_fin                                       # f32 output

    return kernel


def dynamics_pallas(x, w_all, b_all, col_mask, *, H, W, Wp):
    """x: (B, H*Wp, F) bf16 flattened, width/channel zero-padded stem input;
    w_all: (L*9, F, F) bf16 per-tap folded weights; b_all: (L, 1, F) f32 bias;
    col_mask: (H*Wp, F) f32 validity mask for the width-pad columns."""
    B, M1, F = x.shape
    L9 = w_all.shape[0]
    L = b_all.shape[0]
    marg = ((Wp + 1 + 15) // 16) * 16          # >= max tap shift, 16-aligned
    assert M1 == H * Wp and M1 % 8 == 0 and marg >= Wp + 1

    return pl.pallas_call(
        _make_kernel(H, W, Wp, marg),
        out_shape=jax.ShapeDtypeStruct((B, M1, F), jnp.float32),
        grid=(B,),
        in_specs=[
            pl.BlockSpec((1, M1, F), lambda b: (b, 0, 0)),
            pl.BlockSpec((L9, F, F), lambda b: (0, 0, 0)),
            pl.BlockSpec((L, 1, F), lambda b: (0, 0, 0)),
            pl.BlockSpec((M1, F), lambda b: (0, 0)),
        ],
        out_specs=pl.BlockSpec((1, M1, F), lambda b: (b, 0, 0)),
        scratch_shapes=[
            pltpu.VMEM((marg + M1 + marg, F), jnp.bfloat16),   # halo'd activation
        ],
        compiler_params=pltpu.CompilerParams(
            dimension_semantics=("parallel",)),                # v7x: 2 TCs
    )(x, w_all, b_all, col_mask)


# ----------------------------------------------------------------------------
# Parameter construction (deterministic, synthetic — PyTorch module shapes).
# BN (eval mode) is folded: scale into the conv weights, bias kept separately.
# ----------------------------------------------------------------------------
def _fold_bn(gamma, beta, mean, var):
    scale = gamma / jnp.sqrt(var + BN_EPS)
    bias = beta - mean * scale
    return scale, bias


def init_params(rp_channels, act_channels, key):
    F = NUM_FILTERS
    cin0 = rp_channels + act_channels
    keys = jax.random.split(key, 2 * NUM_LAYERS)

    raw, w_list, b_list = [], [], []
    for i in range(NUM_LAYERS):
        cin = cin0 if i == 0 else F
        kw_, kb_ = keys[2 * i], keys[2 * i + 1]
        std = np.sqrt(2.0 / (9 * cin))
        w = jax.random.normal(kw_, (3, 3, cin, F), jnp.float32) * std   # HWIO
        k1, k2, k3, k4 = jax.random.split(kb_, 4)
        gamma = 1.0 + 0.1 * jax.random.normal(k1, (F,), jnp.float32)
        beta = 0.1 * jax.random.normal(k2, (F,), jnp.float32)
        mean = 0.1 * jax.random.normal(k3, (F,), jnp.float32)
        var = 1.0 + 0.1 * jax.random.uniform(k4, (F,), jnp.float32)
        scale, bias = _fold_bn(gamma, beta, mean, var)
        raw.append((w, scale, bias))

        wf = w * scale[None, None, None, :]            # fold BN scale into conv
        if cin < F:                                    # pad stem Cin -> F
            wf = jnp.pad(wf, ((0, 0), (0, 0), (0, F - cin), (0, 0)))
        w_list.append(wf.reshape(9, F, F))             # tap-major: t = kh*3+kw
        b_list.append(bias.reshape(1, F))

    w_all = jnp.stack(w_list).reshape(NUM_LAYERS * 9, F, F).astype(jnp.bfloat16)
    b_all = jnp.stack(b_list)                          # (L, 1, F) f32
    return (w_all, b_all), raw


# ----------------------------------------------------------------------------
# Forward pass: single fused Pallas kernel; layout plumbing only at the edges.
# ----------------------------------------------------------------------------
@jax.jit
def dynamics_forward(rp, a, w_all, b_all):
    # rp: (B, C_rp, H, W), a: (B, H, W)  -- PyTorch NCHW convention.
    B, _, H, W = rp.shape
    a = a[:, None, :, :]                                # (B, 1, H, W)
    x = jnp.concatenate([rp, a], axis=1)                # (B, C_rp+1, H, W)
    x = jnp.transpose(x, (0, 2, 3, 1))                  # NCHW -> NHWC
    F = w_all.shape[-1]
    Wp = W + 2                                          # width halo columns
    x = jnp.pad(x, ((0, 0), (0, 0), (0, Wp - W), (0, F - x.shape[-1])))
    x = x.reshape(B, H * Wp, F).astype(jnp.bfloat16)    # flat (row-major) layout

    mask_row = (np.arange(Wp) < W).astype(np.float32)   # static constant
    col_mask = jnp.asarray(
        np.broadcast_to(np.tile(mask_row, H)[:, None], (H * Wp, F)).copy())

    out = dynamics_pallas(x, w_all, b_all, col_mask, H=H, W=W, Wp=Wp)
    out = out.reshape(B, H, Wp, F)[:, :, :W, :]         # drop width padding
    return jnp.transpose(out, (0, 3, 1, 2))             # NHWC -> NCHW


# ----------------------------------------------------------------------------
# Pure-JAX reference (lax conv) mirroring the kernel's precision policy:
# bf16 MXU inputs, f32 accumulation, f32 bias/ReLU epilogue, bf16 residual.
# ----------------------------------------------------------------------------
def _conv_ref(x, w, scale, bias, relu=True, residual=None):
    wf = (w * scale[None, None, None, :]).astype(jnp.bfloat16)
    out = jax.lax.conv_general_dilated(
        x.astype(jnp.bfloat16), wf, window_strides=(1, 1), padding="SAME",
        dimension_numbers=("NHWC", "HWIO", "NHWC"),
        preferred_element_type=jnp.float32)
    out = out + bias[None, None, None, :]
    if residual is not None:
        out = out + residual
    if relu:
        out = jnp.maximum(out, 0.0)
    return out


def dynamics_forward_ref(rp, a, raw_params):
    a = a[:, None, :, :]
    h = jnp.concatenate([rp, a], axis=1)
    h = jnp.transpose(h, (0, 2, 3, 1))
    w0, s0, b0 = raw_params[0]
    h = _conv_ref(h, w0, s0, b0)
    for (w, s, b) in raw_params[1:]:
        y = _conv_ref(h, w, s, b)
        # Residual is bf16-rounded to mirror the kernel's resident bf16 state.
        res = h.astype(jnp.bfloat16).astype(jnp.float32)
        h = _conv_ref(y, w, s, b, residual=res)
    return jnp.transpose(h, (0, 3, 1, 2))


if __name__ == "__main__":
    B, C_RP, H, W = 2, 4, 8, 8

    key = jax.random.PRNGKey(0)
    k_rp, k_a, k_p = jax.random.split(key, 3)
    rp = jax.random.normal(k_rp, (B, C_RP, H, W), jnp.float32)
    a = jax.random.normal(k_a, (B, H, W), jnp.float32)
    (w_all, b_all), raw = init_params(C_RP, 1, k_p)

    out = jax.block_until_ready(dynamics_forward(rp, a, w_all, b_all))
    assert out.shape == (B, NUM_FILTERS, H, W), out.shape

    ref = jax.block_until_ready(dynamics_forward_ref(rp, a, raw))
    max_err = float(jnp.max(jnp.abs(out - ref)))
    ref_mag = float(jnp.max(jnp.abs(ref)))
    assert np.isfinite(max_err), "non-finite output"
    assert max_err <= 2e-2 * (ref_mag + 1.0), f"max_err={max_err}, ref_mag={ref_mag}"

    print("KERNEL_OK")
</pallas_src>

<mosaic_0001>
module attributes {stable_mosaic.version = 11 : i64} {
  func.func @kernel(%arg0: i32, %arg1: memref<1x80x128xbf16, #tpu.memory_space<vmem>>, %arg2: memref<63x128x128xbf16, #tpu.memory_space<vmem>>, %arg3: memref<7x1x128xf32, #tpu.memory_space<vmem>>, %arg4: memref<80x128xf32, #tpu.memory_space<vmem>>, %arg5: memref<1x80x128xf32, #tpu.memory_space<vmem>>, %arg6: memref<112x128xbf16, #tpu.memory_space<vmem>>) attributes {dimension_semantics = [#tpu.dimension_semantics<parallel>], iteration_bounds = array<i64: 2>, scalar_prefetch = 0 : i64, scratch_operands = 1 : i64, tpu.core_type = #tpu.core_type<tc>, window_params = [{transform_indices = @transform_0, window_bounds = array<i64: 1, 80, 128>}, {pipeline_mode = #tpu.pipeline_mode<synchronous>, transform_indices = @transform_1, window_bounds = array<i64: 63, 128, 128>}, {pipeline_mode = #tpu.pipeline_mode<synchronous>, transform_indices = @transform_2, window_bounds = array<i64: 7, 1, 128>}, {pipeline_mode = #tpu.pipeline_mode<synchronous>, transform_indices = @transform_3, window_bounds = array<i64: 80, 128>}, {transform_indices = @transform_4, window_bounds = array<i64: 1, 80, 128>}]} {
    %cst = arith.constant 0.000000e+00 : bf16
    %0 = vector.broadcast %cst : bf16 to vector<16x128xbf16>
    %c0 = arith.constant 0 : index
    %c0_0 = arith.constant 0 : index
    %1 = vector.load %arg6[%c0, %c0_0] : memref<112x128xbf16, #tpu.memory_space<vmem>>, vector<16x128xbf16>
    tpu.vector_store %arg6[%c0, %c0_0], %0 {strides = array<i32>} : memref<112x128xbf16, #tpu.memory_space<vmem>>, vector<16x128xbf16>,
    %c96 = arith.constant 96 : index
    %c0_1 = arith.constant 0 : index
    %2 = vector.load %arg6[%c96, %c0_1] : memref<112x128xbf16, #tpu.memory_space<vmem>>, vector<16x128xbf16>
    tpu.vector_store %arg6[%c96, %c0_1], %0 {strides = array<i32>} : memref<112x128xbf16, #tpu.memory_space<vmem>>, vector<16x128xbf16>,
    %c0_2 = arith.constant 0 : index
    %c0_3 = arith.constant 0 : index
    %c0_4 = arith.constant 0 : index
    %3 = vector.load %arg1[%c0_2, %c0_3, %c0_4] : memref<1x80x128xbf16, #tpu.memory_space<vmem>>, vector<1x80x128xbf16>
    %4 = vector.shape_cast %3 : vector<1x80x128xbf16> to vector<80x128xbf16>
    %c16 = arith.constant 16 : index
    %c0_5 = arith.constant 0 : index
    %5 = vector.load %arg6[%c16, %c0_5] : memref<112x128xbf16, #tpu.memory_space<vmem>>, vector<80x128xbf16>
    tpu.vector_store %arg6[%c16, %c0_5], %4 {strides = array<i32>} : memref<112x128xbf16, #tpu.memory_space<vmem>>, vector<80x128xbf16>,
    %c0_6 = arith.constant 0 : index
    %c0_7 = arith.constant 0 : index
    %6 = vector.load %arg4[%c0_6, %c0_7] : memref<80x128xf32, #tpu.memory_space<vmem>>, vector<80x128xf32>
    %cst_8 = arith.constant 0.000000e+00 : f32
    %7 = vector.broadcast %cst_8 : f32 to vector<80x128xf32>
    %c5 = arith.constant 5 : index
    %c0_9 = arith.constant 0 : index
    %8 = vector.load %arg6[%c5, %c0_9] : memref<112x128xbf16, #tpu.memory_space<vmem>>, vector<80x128xbf16>
    %c0_10 = arith.constant 0 : index
    %c0_11 = arith.constant 0 : index
    %c0_12 = arith.constant 0 : index
    %9 = vector.load %arg2[%c0_10, %c0_11, %c0_12] : memref<63x128x128xbf16, #tpu.memory_space<vmem>>, vector<1x128x128xbf16>
    %10 = vector.shape_cast %9 : vector<1x128x128xbf16> to vector<128x128xbf16>
    %cst_13 = arith.constant dense<0.000000e+00> : vector<80x128xf32>
    %11 = tpu.matmul %8, %10, %cst_13 {dimension_numbers = #tpu.dot_dimension_numbers<[1], [0], [0], [1], [0, 0, 1, 1], [], []>} : vector<80x128xbf16>, vector<128x128xbf16>, vector<80x128xf32> -> vector<80x128xf32>
    %12 = arith.addf %7, %11 : vector<80x128xf32>
    %c6 = arith.constant 6 : index
    %c0_14 = arith.constant 0 : index
    %13 = vector.load %arg6[%c6, %c0_14] : memref<112x128xbf16, #tpu.memory_space<vmem>>, vector<80x128xbf16>
    %c1 = arith.constant 1 : index
    %c0_15 = arith.constant 0 : index
    %c0_16 = arith.constant 0 : index
    %14 = vector.load %arg2[%c1, %c0_15, %c0_16] : memref<63x128x128xbf16, #tpu.memory_space<vmem>>, vector<1x128x128xbf16>
    %15 = vector.shape_cast %14 : vector<1x128x128xbf16> to vector<128x128xbf16>
    %cst_17 = arith.constant dense<0.000000e+00> : vector<80x128xf32>
    %16 = tpu.matmul %13, %15, %cst_17 {dimension_numbers = #tpu.dot_dimension_numbers<[1], [0], [0], [1], [0, 0, 1, 1], [], []>} : vector<80x128xbf16>, vector<128x128xbf16>, vector<80x128xf32> -> vector<80x128xf32>
    %17 = arith.addf %12, %16 : vector<80x128xf32>
    %c7 = arith.constant 7 : index
    %c0_18 = arith.constant 0 : index
    %18 = vector.load %arg6[%c7, %c0_18] : memref<112x128xbf16, #tpu.memory_space<vmem>>, vector<80x128xbf16>
    %c2 = arith.constant 2 : index
    %c0_19 = arith.constant 0 : index
    %c0_20 = arith.constant 0 : index
    %19 = vector.load %arg2[%c2, %c0_19, %c0_20] : memref<63x128x128xbf16, #tpu.memory_space<vmem>>, vector<1x128x128xbf16>
    %20 = vector.shape_cast %19 : vector<1x128x128xbf16> to vector<128x128xbf16>
    %cst_21 = arith.constant dense<0.000000e+00> : vector<80x128xf32>
    %21 = tpu.matmul %18, %20, %cst_21 {dimension_numbers = #tpu.dot_dimension_numbers<[1], [0], [0], [1], [0, 0, 1, 1], [], []>} : vector<80x128xbf16>, vector<128x128xbf16>, vector<80x128xf32> -> vector<80x128xf32>
    %22 = arith.addf %17, %21 : vector<80x128xf32>
    %c15 = arith.constant 15 : index
    %c0_22 = arith.constant 0 : index
    %23 = vector.load %arg6[%c15, %c0_22] : memref<112x128xbf16, #tpu.memory_space<vmem>>, vector<80x128xbf16>
    %c3 = arith.constant 3 : index
    %c0_23 = arith.constant 0 : index
    %c0_24 = arith.constant 0 : index
    %24 = vector.load %arg2[%c3, %c0_23, %c0_24] : memref<63x128x128xbf16, #tpu.memory_space<vmem>>, vector<1x128x128xbf16>
    %25 = vector.shape_cast %24 : vector<1x128x128xbf16> to vector<128x128xbf16>
    %cst_25 = arith.constant dense<0.000000e+00> : vector<80x128xf32>
    %26 = tpu.matmul %23, %25, %cst_25 {dimension_numbers = #tpu.dot_dimension_numbers<[1], [0], [0], [1], [0, 0, 1, 1], [], []>} : vector<80x128xbf16>, vector<128x128xbf16>, vector<80x128xf32> -> vector<80x128xf32>
    %27 = arith.addf %22, %26 : vector<80x128xf32>
    %c16_26 = arith.constant 16 : index
    %c0_27 = arith.constant 0 : index
    %28 = vector.load %arg6[%c16_26, %c0_27] : memref<112x128xbf16, #tpu.memory_space<vmem>>, vector<80x128xbf16>
    %c4 = arith.constant 4 : index
    %c0_28 = arith.constant 0 : index
    %c0_29 = arith.constant 0 : index
    %29 = vector.load %arg2[%c4, %c0_28, %c0_29] : memref<63x128x128xbf16, #tpu.memory_space<vmem>>, vector<1x128x128xbf16>
    %30 = vector.shape_cast %29 : vector<1x128x128xbf16> to vector<128x128xbf16>
    %cst_30 = arith.constant dense<0.000000e+00> : vector<80x128xf32>
    %31 = tpu.matmul %28, %30, %cst_30 {dimension_numbers = #tpu.dot_dimension_numbers<[1], [0], [0], [1], [0, 0, 1, 1], [], []>} : vector<80x128xbf16>, vector<128x128xbf16>, vector<80x128xf32> -> vector<80x128xf32>
    %32 = arith.addf %27, %31 : vector<80x128xf32>
    %c17 = arith.constant 17 : index
    %c0_31 = arith.constant 0 : index
    %33 = vector.load %arg6[%c17, %c0_31] : memref<112x128xbf16, #tpu.memory_space<vmem>>, vector<80x128xbf16>
    %c5_32 = arith.constant 5 : index
    %c0_33 = arith.constant 0 : index
    %c0_34 = arith.constant 0 : index
    %34 = vector.load %arg2[%c5_32, %c0_33, %c0_34] : memref<63x128x128xbf16, #tpu.memory_space<vmem>>, vector<1x128x128xbf16>
    %35 = vector.shape_cast %34 : vector<1x128x128xbf16> to vector<128x128xbf16>
    %cst_35 = arith.constant dense<0.000000e+00> : vector<80x128xf32>
    %36 = tpu.matmul %33, %35, %cst_35 {dimension_numbers = #tpu.dot_dimension_numbers<[1], [0], [0], [1], [0, 0, 1, 1], [], []>} : vector<80x128xbf16>, vector<128x128xbf16>, vector<80x128xf32> -> vector<80x128xf32>
    %37 = arith.addf %32, %36 : vector<80x128xf32>
    %c25 = arith.constant 25 : index
    %c0_36 = arith.constant 0 : index
    %38 = vector.load %arg6[%c25, %c0_36] : memref<112x128xbf16, #tpu.memory_space<vmem>>, vector<80x128xbf16>
    %c6_37 = arith.constant 6 : index
    %c0_38 = arith.constant 0 : index
    %c0_39 = arith.constant 0 : index
    %39 = vector.load %arg2[%c6_37, %c0_38, %c0_39] : memref<63x128x128xbf16, #tpu.memory_space<vmem>>, vector<1x128x128xbf16>
    %40 = vector.shape_cast %39 : vector<1x128x128xbf16> to vector<128x128xbf16>
    %cst_40 = arith.constant dense<0.000000e+00> : vector<80x128xf32>
    %41 = tpu.matmul %38, %40, %cst_40 {dimension_numbers = #tpu.dot_dimension_numbers<[1], [0], [0], [1], [0, 0, 1, 1], [], []>} : vector<80x128xbf16>, vector<128x128xbf16>, vector<80x128xf32> -> vector<80x128xf32>
    %42 = arith.addf %37, %41 : vector<80x128xf32>
    %c26 = arith.constant 26 : index
    %c0_41 = arith.constant 0 : index
    %43 = vector.load %arg6[%c26, %c0_41] : memref<112x128xbf16, #tpu.memory_space<vmem>>, vector<80x128xbf16>
    %c7_42 = arith.constant 7 : index
    %c0_43 = arith.constant 0 : index
    %c0_44 = arith.constant 0 : index
    %44 = vector.load %arg2[%c7_42, %c0_43, %c0_44] : memref<63x128x128xbf16, #tpu.memory_space<vmem>>, vector<1x128x128xbf16>
    %45 = vector.shape_cast %44 : vector<1x128x128xbf16> to vector<128x128xbf16>
    %cst_45 = arith.constant dense<0.000000e+00> : vector<80x128xf32>
    %46 = tpu.matmul %43, %45, %cst_45 {dimension_numbers = #tpu.dot_dimension_numbers<[1], [0], [0], [1], [0, 0, 1, 1], [], []>} : vector<80x128xbf16>, vector<128x128xbf16>, vector<80x128xf32> -> vector<80x128xf32>
    %47 = arith.addf %42, %46 : vector<80x128xf32>
    %c27 = arith.constant 27 : index
    %c0_46 = arith.constant 0 : index
    %48 = vector.load %arg6[%c27, %c0_46] : memref<112x128xbf16, #tpu.memory_space<vmem>>, vector<80x128xbf16>
    %c8 = arith.constant 8 : index
    %c0_47 = arith.constant 0 : index
    %c0_48 = arith.constant 0 : index
    %49 = vector.load %arg2[%c8, %c0_47, %c0_48] : memref<63x128x128xbf16, #tpu.memory_space<vmem>>, vector<1x128x128xbf16>
    %50 = vector.shape_cast %49 : vector<1x128x128xbf16> to vector<128x128xbf16>
    %cst_49 = arith.constant dense<0.000000e+00> : vector<80x128xf32>
    %51 = tpu.matmul %48, %50, %cst_49 {dimension_numbers = #tpu.dot_dimension_numbers<[1], [0], [0], [1], [0, 0, 1, 1], [], []>} : vector<80x128xbf16>, vector<128x128xbf16>, vector<80x128xf32> -> vector<80x128xf32>
    %52 = arith.addf %47, %51 : vector<80x128xf32>
    %c0_50 = arith.constant 0 : index
    %c0_51 = arith.constant 0 : index
    %c0_52 = arith.constant 0 : index
    %53 = vector.load %arg3[%c0_50, %c0_51, %c0_52] : memref<7x1x128xf32, #tpu.memory_space<vmem>>, vector<1x1x128xf32>
    %54 = vector.shape_cast %53 : vector<1x1x128xf32> to vector<1x128xf32>
    %55 = vector.broadcast %54 : vector<1x128xf32> to vector<80x128xf32>
    %56 = arith.addf %52, %55 : vector<80x128xf32>
    %cst_53 = arith.constant 0.000000e+00 : f32
    %57 = vector.broadcast %cst_53 : f32 to vector<80x128xf32>
    %58 = arith.maximumf %56, %57 : vector<80x128xf32>
    %59 = arith.mulf %58, %6 : vector<80x128xf32>
    %60 = arith.truncf %59 : vector<80x128xf32> to vector<80x128xbf16>
    %c16_54 = arith.constant 16 : index
    %c0_55 = arith.constant 0 : index
    %61 = vector.load %arg6[%c16_54, %c0_55] : memref<112x128xbf16, #tpu.memory_space<vmem>>, vector<80x128xbf16>
    tpu.vector_store %arg6[%c16_54, %c0_55], %60 {strides = array<i32>} : memref<112x128xbf16, #tpu.memory_space<vmem>>, vector<80x128xbf16>,
    %c1_i32 = arith.constant 1 : i32
    %c6_i32 = arith.constant 6 : i32
    %62 = arith.addi %c1_i32, %c6_i32 : i32
    %c1_i32_56 = arith.constant 1 : i32
    %63 = scf.for %arg7 = %c1_i32 to %62 step %c1_i32_56 iter_args(%arg8 = %58) -> (vector<80x128xf32>)  : i32 {
      %c16_61 = arith.constant 16 : index
      %c0_62 = arith.constant 0 : index
      %67 = vector.load %arg6[%c16_61, %c0_62] : memref<112x128xbf16, #tpu.memory_space<vmem>>, vector<80x128xbf16>
      %cst_63 = arith.constant 0.000000e+00 : f32
      %68 = vector.broadcast %cst_63 : f32 to vector<80x128xf32>
      %c5_64 = arith.constant 5 : index
      %c0_65 = arith.constant 0 : index
      %69 = vector.load %arg6[%c5_64, %c0_65] : memref<112x128xbf16, #tpu.memory_space<vmem>>, vector<80x128xbf16>
      %c9_i32 = arith.constant 9 : i32
      %70 = arith.muli %arg7, %c9_i32 : i32
      %c0_i32 = arith.constant 0 : i32
      %71 = arith.addi %70, %c0_i32 : i32
      %72 = arith.index_cast %71 : i32 to index
      %c0_66 = arith.constant 0 : index
      %c0_67 = arith.constant 0 : index
      %73 = vector.load %arg2[%72, %c0_66, %c0_67] : memref<63x128x128xbf16, #tpu.memory_space<vmem>>, vector<1x128x128xbf16>
      %74 = vector.shape_cast %73 : vector<1x128x128xbf16> to vector<128x128xbf16>
      %cst_68 = arith.constant dense<0.000000e+00> : vector<80x128xf32>
      %75 = tpu.matmul %69, %74, %cst_68 {dimension_numbers = #tpu.dot_dimension_numbers<[1], [0], [0], [1], [0, 0, 1, 1], [], []>} : vector<80x128xbf16>, vector<128x128xbf16>, vector<80x128xf32> -> vector<80x128xf32>
      %76 = arith.addf %68, %75 : vector<80x128xf32>
      %c6_69 = arith.constant 6 : index
      %c0_70 = arith.constant 0 : index
      %77 = vector.load %arg6[%c6_69, %c0_70] : memref<112x128xbf16, #tpu.memory_space<vmem>>, vector<80x128xbf16>
      %c9_i32_71 = arith.constant 9 : i32
      %78 = arith.muli %arg7, %c9_i32_71 : i32
      %c1_i32_72 = arith.constant 1 : i32
      %79 = arith.addi %78, %c1_i32_72 : i32
      %80 = arith.index_cast %79 : i32 to index
      %c0_73 = arith.constant 0 : index
      %c0_74 = arith.constant 0 : index
      %81 = vector.load %arg2[%80, %c0_73, %c0_74] : memref<63x128x128xbf16, #tpu.memory_space<vmem>>, vector<1x128x128xbf16>
      %82 = vector.shape_cast %81 : vector<1x128x128xbf16> to vector<128x128xbf16>
      %cst_75 = arith.constant dense<0.000000e+00> : vector<80x128xf32>
      %83 = tpu.matmul %77, %82, %cst_75 {dimension_numbers = #tpu.dot_dimension_numbers<[1], [0], [0], [1], [0, 0, 1, 1], [], []>} : vector<80x128xbf16>, vector<128x128xbf16>, vector<80x128xf32> -> vector<80x128xf32>
      %84 = arith.addf %76, %83 : vector<80x128xf32>
      %c7_76 = arith.constant 7 : index
      %c0_77 = arith.constant 0 : index
      %85 = vector.load %arg6[%c7_76, %c0_77] : memref<112x128xbf16, #tpu.memory_space<vmem>>, vector<80x128xbf16>
      %c9_i32_78 = arith.constant 9 : i32
      %86 = arith.muli %arg7, %c9_i32_78 : i32
      %c2_i32 = arith.constant 2 : i32
      %87 = arith.addi %86, %c2_i32 : i32
      %88 = arith.index_cast %87 : i32 to index
      %c0_79 = arith.constant 0 : index
      %c0_80 = arith.constant 0 : index
      %89 = vector.load %arg2[%88, %c0_79, %c0_80] : memref<63x128x128xbf16, #tpu.memory_space<vmem>>, vector<1x128x128xbf16>
      %90 = vector.shape_cast %89 : vector<1x128x128xbf16> to vector<128x128xbf16>
      %cst_81 = arith.constant dense<0.000000e+00> : vector<80x128xf32>
      %91 = tpu.matmul %85, %90, %cst_81 {dimension_numbers = #tpu.dot_dimension_numbers<[1], [0], [0], [1], [0, 0, 1, 1], [], []>} : vector<80x128xbf16>, vector<128x128xbf16>, vector<80x128xf32> -> vector<80x128xf32>
      %92 = arith.addf %84, %91 : vector<80x128xf32>
      %c15_82 = arith.constant 15 : index
      %c0_83 = arith.constant 0 : index
      %93 = vector.load %arg6[%c15_82, %c0_83] : memref<112x128xbf16, #tpu.memory_space<vmem>>, vector<80x128xbf16>
      %c9_i32_84 = arith.constant 9 : i32
      %94 = arith.muli %arg7, %c9_i32_84 : i32
      %c3_i32 = arith.constant 3 : i32
      %95 = arith.addi %94, %c3_i32 : i32
      %96 = arith.index_cast %95 : i32 to index
      %c0_85 = arith.constant 0 : index
      %c0_86 = arith.constant 0 : index
      %97 = vector.load %arg2[%96, %c0_85, %c0_86] : memref<63x128x128xbf16, #tpu.memory_space<vmem>>, vector<1x128x128xbf16>
      %98 = vector.shape_cast %97 : vector<1x128x128xbf16> to vector<128x128xbf16>
      %cst_87 = arith.constant dense<0.000000e+00> : vector<80x128xf32>
      %99 = tpu.matmul %93, %98, %cst_87 {dimension_numbers = #tpu.dot_dimension_numbers<[1], [0], [0], [1], [0, 0, 1, 1], [], []>} : vector<80x128xbf16>, vector<128x128xbf16>, vector<80x128xf32> -> vector<80x128xf32>
      %100 = arith.addf %92, %99 : vector<80x128xf32>
      %c16_88 = arith.constant 16 : index
      %c0_89 = arith.constant 0 : index
      %101 = vector.load %arg6[%c16_88, %c0_89] : memref<112x128xbf16, #tpu.memory_space<vmem>>, vector<80x128xbf16>
      %c9_i32_90 = arith.constant 9 : i32
      %102 = arith.muli %arg7, %c9_i32_90 : i32
      %c4_i32 = arith.constant 4 : i32
      %103 = arith.addi %102, %c4_i32 : i32
      %104 = arith.index_cast %103 : i32 to index
      %c0_91 = arith.constant 0 : index
      %c0_92 = arith.constant 0 : index
      %105 = vector.load %arg2[%104, %c0_91, %c0_92] : memref<63x128x128xbf16, #tpu.memory_space<vmem>>, vector<1x128x128xbf16>
      %106 = vector.shape_cast %105 : vector<1x128x128xbf16> to vector<128x128xbf16>
      %cst_93 = arith.constant dense<0.000000e+00> : vector<80x128xf32>
      %107 = tpu.matmul %101, %106, %cst_93 {dimension_numbers = #tpu.dot_dimension_numbers<[1], [0], [0], [1], [0, 0, 1, 1], [], []>} : vector<80x128xbf16>, vector<128x128xbf16>, vector<80x128xf32> -> vector<80x128xf32>
      %108 = arith.addf %100, %107 : vector<80x128xf32>
      %c17_94 = arith.constant 17 : index
      %c0_95 = arith.constant 0 : index
      %109 = vector.load %arg6[%c17_94, %c0_95] : memref<112x128xbf16, #tpu.memory_space<vmem>>, vector<80x128xbf16>
      %c9_i32_96 = arith.constant 9 : i32
      %110 = arith.muli %arg7, %c9_i32_96 : i32
      %c5_i32 = arith.constant 5 : i32
      %111 = arith.addi %110, %c5_i32 : i32
      %112 = arith.index_cast %111 : i32 to index
      %c0_97 = arith.constant 0 : index
      %c0_98 = arith.constant 0 : index
      %113 = vector.load %arg2[%112, %c0_97, %c0_98] : memref<63x128x128xbf16, #tpu.memory_space<vmem>>, vector<1x128x128xbf16>
      %114 = vector.shape_cast %113 : vector<1x128x128xbf16> to vector<128x128xbf16>
      %cst_99 = arith.constant dense<0.000000e+00> : vector<80x128xf32>
      %115 = tpu.matmul %109, %114, %cst_99 {dimension_numbers = #tpu.dot_dimension_numbers<[1], [0], [0], [1], [0, 0, 1, 1], [], []>} : vector<80x128xbf16>, vector<128x128xbf16>, vector<80x128xf32> -> vector<80x128xf32>
      %116 = arith.addf %108, %115 : vector<80x128xf32>
      %c25_100 = arith.constant 25 : index
      %c0_101 = arith.constant 0 : index
      %117 = vector.load %arg6[%c25_100, %c0_101] : memref<112x128xbf16, #tpu.memory_space<vmem>>, vector<80x128xbf16>
      %c9_i32_102 = arith.constant 9 : i32
      %118 = arith.muli %arg7, %c9_i32_102 : i32
      %c6_i32_103 = arith.constant 6 : i32
      %119 = arith.addi %118, %c6_i32_103 : i32
      %120 = arith.index_cast %119 : i32 to index
      %c0_104 = arith.constant 0 : index
      %c0_105 = arith.constant 0 : index
      %121 = vector.load %arg2[%120, %c0_104, %c0_105] : memref<63x128x128xbf16, #tpu.memory_space<vmem>>, vector<1x128x128xbf16>
      %122 = vector.shape_cast %121 : vector<1x128x128xbf16> to vector<128x128xbf16>
      %cst_106 = arith.constant dense<0.000000e+00> : vector<80x128xf32>
      %123 = tpu.matmul %117, %122, %cst_106 {dimension_numbers = #tpu.dot_dimension_numbers<[1], [0], [0], [1], [0, 0, 1, 1], [], []>} : vector<80x128xbf16>, vector<128x128xbf16>, vector<80x128xf32> -> vector<80x128xf32>
      %124 = arith.addf %116, %123 : vector<80x128xf32>
      %c26_107 = arith.constant 26 : index
      %c0_108 = arith.constant 0 : index
      %125 = vector.load %arg6[%c26_107, %c0_108] : memref<112x128xbf16, #tpu.memory_space<vmem>>, vector<80x128xbf16>
      %c9_i32_109 = arith.constant 9 : i32
      %126 = arith.muli %arg7, %c9_i32_109 : i32
      %c7_i32 = arith.constant 7 : i32
      %127 = arith.addi %126, %c7_i32 : i32
      %128 = arith.index_cast %127 : i32 to index
      %c0_110 = arith.constant 0 : index
      %c0_111 = arith.constant 0 : index
      %129 = vector.load %arg2[%128, %c0_110, %c0_111] : memref<63x128x128xbf16, #tpu.memory_space<vmem>>, vector<1x128x128xbf16>
      %130 = vector.shape_cast %129 : vector<1x128x128xbf16> to vector<128x128xbf16>
      %cst_112 = arith.constant dense<0.000000e+00> : vector<80x128xf32>
      %131 = tpu.matmul %125, %130, %cst_112 {dimension_numbers = #tpu.dot_dimension_numbers<[1], [0], [0], [1], [0, 0, 1, 1], [], []>} : vector<80x128xbf16>, vector<128x128xbf16>, vector<80x128xf32> -> vector<80x128xf32>
      %132 = arith.addf %124, %131 : vector<80x128xf32>
      %c27_113 = arith.constant 27 : index
      %c0_114 = arith.constant 0 : index
      %133 = vector.load %arg6[%c27_113, %c0_114] : memref<112x128xbf16, #tpu.memory_space<vmem>>, vector<80x128xbf16>
      %c9_i32_115 = arith.constant 9 : i32
      %134 = arith.muli %arg7, %c9_i32_115 : i32
      %c8_i32 = arith.constant 8 : i32
      %135 = arith.addi %134, %c8_i32 : i32
      %136 = arith.index_cast %135 : i32 to index
      %c0_116 = arith.constant 0 : index
      %c0_117 = arith.constant 0 : index
      %137 = vector.load %arg2[%136, %c0_116, %c0_117] : memref<63x128x128xbf16, #tpu.memory_space<vmem>>, vector<1x128x128xbf16>
      %138 = vector.shape_cast %137 : vector<1x128x128xbf16> to vector<128x128xbf16>
      %cst_118 = arith.constant dense<0.000000e+00> : vector<80x128xf32>
      %139 = tpu.matmul %133, %138, %cst_118 {dimension_numbers = #tpu.dot_dimension_numbers<[1], [0], [0], [1], [0, 0, 1, 1], [], []>} : vector<80x128xbf16>, vector<128x128xbf16>, vector<80x128xf32> -> vector<80x128xf32>
      %140 = arith.addf %132, %139 : vector<80x128xf32>
      %141 = arith.index_cast %arg7 : i32 to index
      %c0_119 = arith.constant 0 : index
      %c0_120 = arith.constant 0 : index
      %142 = vector.load %arg3[%141, %c0_119, %c0_120] : memref<7x1x128xf32, #tpu.memory_space<vmem>>, vector<1x1x128xf32>
      %143 = vector.shape_cast %142 : vector<1x1x128xf32> to vector<1x128xf32>
      %144 = vector.broadcast %143 : vector<1x128xf32> to vector<80x128xf32>
      %145 = arith.addf %140, %144 : vector<80x128xf32>
      %cst_121 = arith.constant 0.000000e+00 : f32
      %146 = vector.broadcast %cst_121 : f32 to vector<80x128xf32>
      %147 = arith.maximumf %145, %146 : vector<80x128xf32>
      %148 = arith.mulf %147, %6 : vector<80x128xf32>
      %149 = arith.truncf %148 : vector<80x128xf32> to vector<80x128xbf16>
      %c16_122 = arith.constant 16 : index
      %c0_123 = arith.constant 0 : index
      %150 = vector.load %arg6[%c16_122, %c0_123] : memref<112x128xbf16, #tpu.memory_space<vmem>>, vector<80x128xbf16>
      tpu.vector_store %arg6[%c16_122, %c0_123], %149 {strides = array<i32>} : memref<112x128xbf16, #tpu.memory_space<vmem>>, vector<80x128xbf16>,
      %151 = arith.extf %67 : vector<80x128xbf16> to vector<80x128xf32>
      %cst_124 = arith.constant 0.000000e+00 : f32
      %152 = vector.broadcast %cst_124 : f32 to vector<80x128xf32>
      %c5_125 = arith.constant 5 : index
      %c0_126 = arith.constant 0 : index
      %153 = vector.load %arg6[%c5_125, %c0_126] : memref<112x128xbf16, #tpu.memory_space<vmem>>, vector<80x128xbf16>
      %c9_i32_127 = arith.constant 9 : i32
      %154 = arith.muli %arg7, %c9_i32_127 : i32
      %c0_i32_128 = arith.constant 0 : i32
      %155 = arith.addi %154, %c0_i32_128 : i32
      %156 = arith.index_cast %155 : i32 to index
      %c0_129 = arith.constant 0 : index
      %c0_130 = arith.constant 0 : index
      %157 = vector.load %arg2[%156, %c0_129, %c0_130] : memref<63x128x128xbf16, #tpu.memory_space<vmem>>, vector<1x128x128xbf16>
      %158 = vector.shape_cast %157 : vector<1x128x128xbf16> to vector<128x128xbf16>
      %cst_131 = arith.constant dense<0.000000e+00> : vector<80x128xf32>
      %159 = tpu.matmul %153, %158, %cst_131 {dimension_numbers = #tpu.dot_dimension_numbers<[1], [0], [0], [1], [0, 0, 1, 1], [], []>} : vector<80x128xbf16>, vector<128x128xbf16>, vector<80x128xf32> -> vector<80x128xf32>
      %160 = arith.addf %152, %159 : vector<80x128xf32>
      %c6_132 = arith.constant 6 : index
      %c0_133 = arith.constant 0 : index
      %161 = vector.load %arg6[%c6_132, %c0_133] : memref<112x128xbf16, #tpu.memory_space<vmem>>, vector<80x128xbf16>
      %c9_i32_134 = arith.constant 9 : i32
      %162 = arith.muli %arg7, %c9_i32_134 : i32
      %c1_i32_135 = arith.constant 1 : i32
      %163 = arith.addi %162, %c1_i32_135 : i32
      %164 = arith.index_cast %163 : i32 to index
      %c0_136 = arith.constant 0 : index
      %c0_137 = arith.constant 0 : index
      %165 = vector.load %arg2[%164, %c0_136, %c0_137] : memref<63x128x128xbf16, #tpu.memory_space<vmem>>, vector<1x128x128xbf16>
      %166 = vector.shape_cast %165 : vector<1x128x128xbf16> to vector<128x128xbf16>
      %cst_138 = arith.constant dense<0.000000e+00> : vector<80x128xf32>
      %167 = tpu.matmul %161, %166, %cst_138 {dimension_numbers = #tpu.dot_dimension_numbers<[1], [0], [0], [1], [0, 0, 1, 1], [], []>} : vector<80x128xbf16>, vector<128x128xbf16>, vector<80x128xf32> -> vector<80x128xf32>
      %168 = arith.addf %160, %167 : vector<80x128xf32>
      %c7_139 = arith.constant 7 : index
      %c0_140 = arith.constant 0 : index
      %169 = vector.load %arg6[%c7_139, %c0_140] : memref<112x128xbf16, #tpu.memory_space<vmem>>, vector<80x128xbf16>
      %c9_i32_141 = arith.constant 9 : i32
      %170 = arith.muli %arg7, %c9_i32_141 : i32
      %c2_i32_142 = arith.constant 2 : i32
      %171 = arith.addi %170, %c2_i32_142 : i32
      %172 = arith.index_cast %171 : i32 to index
      %c0_143 = arith.constant 0 : index
      %c0_144 = arith.constant 0 : index
      %173 = vector.load %arg2[%172, %c0_143, %c0_144] : memref<63x128x128xbf16, #tpu.memory_space<vmem>>, vector<1x128x128xbf16>
      %174 = vector.shape_cast %173 : vector<1x128x128xbf16> to vector<128x128xbf16>
      %cst_145 = arith.constant dense<0.000000e+00> : vector<80x128xf32>
      %175 = tpu.matmul %169, %174, %cst_145 {dimension_numbers = #tpu.dot_dimension_numbers<[1], [0], [0], [1], [0, 0, 1, 1], [], []>} : vector<80x128xbf16>, vector<128x128xbf16>, vector<80x128xf32> -> vector<80x128xf32>
      %176 = arith.addf %168, %175 : vector<80x128xf32>
      %c15_146 = arith.constant 15 : index
      %c0_147 = arith.constant 0 : index
      %177 = vector.load %arg6[%c15_146, %c0_147] : memref<112x128xbf16, #tpu.memory_space<vmem>>, vector<80x128xbf16>
      %c9_i32_148 = arith.constant 9 : i32
      %178 = arith.muli %arg7, %c9_i32_148 : i32
      %c3_i32_149 = arith.constant 3 : i32
      %179 = arith.addi %178, %c3_i32_149 : i32
      %180 = arith.index_cast %179 : i32 to index
      %c0_150 = arith.constant 0 : index
      %c0_151 = arith.constant 0 : index
      %181 = vector.load %arg2[%180, %c0_150, %c0_151] : memref<63x128x128xbf16, #tpu.memory_space<vmem>>, vector<1x128x128xbf16>
      %182 = vector.shape_cast %181 : vector<1x128x128xbf16> to vector<128x128xbf16>
      %cst_152 = arith.constant dense<0.000000e+00> : vector<80x128xf32>
      %183 = tpu.matmul %177, %182, %cst_152 {dimension_numbers = #tpu.dot_dimension_numbers<[1], [0], [0], [1], [0, 0, 1, 1], [], []>} : vector<80x128xbf16>, vector<128x128xbf16>, vector<80x128xf32> -> vector<80x128xf32>
      %184 = arith.addf %176, %183 : vector<80x128xf32>
      %c16_153 = arith.constant 16 : index
      %c0_154 = arith.constant 0 : index
      %185 = vector.load %arg6[%c16_153, %c0_154] : memref<112x128xbf16, #tpu.memory_space<vmem>>, vector<80x128xbf16>
      %c9_i32_155 = arith.constant 9 : i32
      %186 = arith.muli %arg7, %c9_i32_155 : i32
      %c4_i32_156 = arith.constant 4 : i32
      %187 = arith.addi %186, %c4_i32_156 : i32
      %188 = arith.index_cast %187 : i32 to index
      %c0_157 = arith.constant 0 : index
      %c0_158 = arith.constant 0 : index
      %189 = vector.load %arg2[%188, %c0_157, %c0_158] : memref<63x128x128xbf16, #tpu.memory_space<vmem>>, vector<1x128x128xbf16>
      %190 = vector.shape_cast %189 : vector<1x128x128xbf16> to vector<128x128xbf16>
      %cst_159 = arith.constant dense<0.000000e+00> : vector<80x128xf32>
      %191 = tpu.matmul %185, %190, %cst_159 {dimension_numbers = #tpu.dot_dimension_numbers<[1], [0], [0], [1], [0, 0, 1, 1], [], []>} : vector<80x128xbf16>, vector<128x128xbf16>, vector<80x128xf32> -> vector<80x128xf32>
      %192 = arith.addf %184, %191 : vector<80x128xf32>
      %c17_160 = arith.constant 17 : index
      %c0_161 = arith.constant 0 : index
      %193 = vector.load %arg6[%c17_160, %c0_161] : memref<112x128xbf16, #tpu.memory_space<vmem>>, vector<80x128xbf16>
      %c9_i32_162 = arith.constant 9 : i32
      %194 = arith.muli %arg7, %c9_i32_162 : i32
      %c5_i32_163 = arith.constant 5 : i32
      %195 = arith.addi %194, %c5_i32_163 : i32
      %196 = arith.index_cast %195 : i32 to index
      %c0_164 = arith.constant 0 : index
      %c0_165 = arith.constant 0 : index
      %197 = vector.load %arg2[%196, %c0_164, %c0_165] : memref<63x128x128xbf16, #tpu.memory_space<vmem>>, vector<1x128x128xbf16>
      %198 = vector.shape_cast %197 : vector<1x128x128xbf16> to vector<128x128xbf16>
      %cst_166 = arith.constant dense<0.000000e+00> : vector<80x128xf32>
      %199 = tpu.matmul %193, %198, %cst_166 {dimension_numbers = #tpu.dot_dimension_numbers<[1], [0], [0], [1], [0, 0, 1, 1], [], []>} : vector<80x128xbf16>, vector<128x128xbf16>, vector<80x128xf32> -> vector<80x128xf32>
      %200 = arith.addf %192, %199 : vector<80x128xf32>
      %c25_167 = arith.constant 25 : index
      %c0_168 = arith.constant 0 : index
      %201 = vector.load %arg6[%c25_167, %c0_168] : memref<112x128xbf16, #tpu.memory_space<vmem>>, vector<80x128xbf16>
      %c9_i32_169 = arith.constant 9 : i32
      %202 = arith.muli %arg7, %c9_i32_169 : i32
      %c6_i32_170 = arith.constant 6 : i32
      %203 = arith.addi %202, %c6_i32_170 : i32
      %204 = arith.index_cast %203 : i32 to index
      %c0_171 = arith.constant 0 : index
      %c0_172 = arith.constant 0 : index
      %205 = vector.load %arg2[%204, %c0_171, %c0_172] : memref<63x128x128xbf16, #tpu.memory_space<vmem>>, vector<1x128x128xbf16>
      %206 = vector.shape_cast %205 : vector<1x128x128xbf16> to vector<128x128xbf16>
      %cst_173 = arith.constant dense<0.000000e+00> : vector<80x128xf32>
      %207 = tpu.matmul %201, %206, %cst_173 {dimension_numbers = #tpu.dot_dimension_numbers<[1], [0], [0], [1], [0, 0, 1, 1], [], []>} : vector<80x128xbf16>, vector<128x128xbf16>, vector<80x128xf32> -> vector<80x128xf32>
      %208 = arith.addf %200, %207 : vector<80x128xf32>
      %c26_174 = arith.constant 26 : index
      %c0_175 = arith.constant 0 : index
      %209 = vector.load %arg6[%c26_174, %c0_175] : memref<112x128xbf16, #tpu.memory_space<vmem>>, vector<80x128xbf16>
      %c9_i32_176 = arith.constant 9 : i32
      %210 = arith.muli %arg7, %c9_i32_176 : i32
      %c7_i32_177 = arith.constant 7 : i32
      %211 = arith.addi %210, %c7_i32_177 : i32
      %212 = arith.index_cast %211 : i32 to index
      %c0_178 = arith.constant 0 : index
      %c0_179 = arith.constant 0 : index
      %213 = vector.load %arg2[%212, %c0_178, %c0_179] : memref<63x128x128xbf16, #tpu.memory_space<vmem>>, vector<1x128x128xbf16>
      %214 = vector.shape_cast %213 : vector<1x128x128xbf16> to vector<128x128xbf16>
      %cst_180 = arith.constant dense<0.000000e+00> : vector<80x128xf32>
      %215 = tpu.matmul %209, %214, %cst_180 {dimension_numbers = #tpu.dot_dimension_numbers<[1], [0], [0], [1], [0, 0, 1, 1], [], []>} : vector<80x128xbf16>, vector<128x128xbf16>, vector<80x128xf32> -> vector<80x128xf32>
      %216 = arith.addf %208, %215 : vector<80x128xf32>
      %c27_181 = arith.constant 27 : index
      %c0_182 = arith.constant 0 : index
      %217 = vector.load %arg6[%c27_181, %c0_182] : memref<112x128xbf16, #tpu.memory_space<vmem>>, vector<80x128xbf16>
      %c9_i32_183 = arith.constant 9 : i32
      %218 = arith.muli %arg7, %c9_i32_183 : i32
      %c8_i32_184 = arith.constant 8 : i32
      %219 = arith.addi %218, %c8_i32_184 : i32
      %220 = arith.index_cast %219 : i32 to index
      %c0_185 = arith.constant 0 : index
      %c0_186 = arith.constant 0 : index
      %221 = vector.load %arg2[%220, %c0_185, %c0_186] : memref<63x128x128xbf16, #tpu.memory_space<vmem>>, vector<1x128x128xbf16>
      %222 = vector.shape_cast %221 : vector<1x128x128xbf16> to vector<128x128xbf16>
      %cst_187 = arith.constant dense<0.000000e+00> : vector<80x128xf32>
      %223 = tpu.matmul %217, %222, %cst_187 {dimension_numbers = #tpu.dot_dimension_numbers<[1], [0], [0], [1], [0, 0, 1, 1], [], []>} : vector<80x128xbf16>, vector<128x128xbf16>, vector<80x128xf32> -> vector<80x128xf32>
      %224 = arith.addf %216, %223 : vector<80x128xf32>
      %225 = arith.index_cast %arg7 : i32 to index
      %c0_188 = arith.constant 0 : index
      %c0_189 = arith.constant 0 : index
      %226 = vector.load %arg3[%225, %c0_188, %c0_189] : memref<7x1x128xf32, #tpu.memory_space<vmem>>, vector<1x1x128xf32>
      %227 = vector.shape_cast %226 : vector<1x1x128xf32> to vector<1x128xf32>
      %228 = vector.broadcast %227 : vector<1x128xf32> to vector<80x128xf32>
      %229 = arith.addf %224, %228 : vector<80x128xf32>
      %230 = arith.addf %151, %229 : vector<80x128xf32>
      %cst_190 = arith.constant 0.000000e+00 : f32
      %231 = vector.broadcast %cst_190 : f32 to vector<80x128xf32>
      %232 = arith.maximumf %230, %231 : vector<80x128xf32>
      %233 = arith.mulf %232, %6 : vector<80x128xf32>
      %234 = arith.truncf %233 : vector<80x128xf32> to vector<80x128xbf16>
      %c16_191 = arith.constant 16 : index
      %c0_192 = arith.constant 0 : index
      %235 = vector.load %arg6[%c16_191, %c0_192] : memref<112x128xbf16, #tpu.memory_space<vmem>>, vector<80x128xbf16>
      tpu.vector_store %arg6[%c16_191, %c0_192], %234 {strides = array<i32>} : memref<112x128xbf16, #tpu.memory_space<vmem>>, vector<80x128xbf16>,
      scf.yield %232 : vector<80x128xf32>
    }
    %c6_i32_57 = arith.constant 6 : i32
    %c0_58 = arith.constant 0 : index
    %c0_59 = arith.constant 0 : index
    %c0_60 = arith.constant 0 : index
    %64 = vector.load %arg5[%c0_58, %c0_59, %c0_60] : memref<1x80x128xf32, #tpu.memory_space<vmem>>, vector<1x80x128xf32>
    %65 = vector.shape_cast %64 : vector<1x80x128xf32> to vector<80x128xf32>
    %66 = vector.shape_cast %63 : vector<80x128xf32> to vector<1x80x128xf32>
    tpu.vector_store %arg5[%c0_58, %c0_59, %c0_60], %66 {strides = array<i32>} : memref<1x80x128xf32, #tpu.memory_space<vmem>>, vector<1x80x128xf32>,
    return
  }
  func.func @transform_0(%arg0: i32) -> (i32, i32, i32) {
    %c0_i32 = arith.constant 0 : i32
    %c0_i32_0 = arith.constant 0 : i32
    %c0_i32_1 = arith.constant 0 : i32
    return %arg0, %c0_i32, %c0_i32_0 : i32, i32, i32
  }
  func.func @transform_1(%arg0: i32) -> (i32, i32, i32) {
    %c0_i32 = arith.constant 0 : i32
    %c0_i32_0 = arith.constant 0 : i32
    %c0_i32_1 = arith.constant 0 : i32
    %c0_i32_2 = arith.constant 0 : i32
    return %c0_i32, %c0_i32_0, %c0_i32_1 : i32, i32, i32
  }
  func.func @transform_2(%arg0: i32) -> (i32, i32, i32) {
    %c0_i32 = arith.constant 0 : i32
    %c0_i32_0 = arith.constant 0 : i32
    %c0_i32_1 = arith.constant 0 : i32
    %c0_i32_2 = arith.constant 0 : i32
    return %c0_i32, %c0_i32_0, %c0_i32_1 : i32, i32, i32
  }
  func.func @transform_3(%arg0: i32) -> (i32, i32) {
    %c0_i32 = arith.constant 0 : i32
    %c0_i32_0 = arith.constant 0 : i32
    %c0_i32_1 = arith.constant 0 : i32
    return %c0_i32, %c0_i32_0 : i32, i32
  }
  func.func @transform_4(%arg0: i32) -> (i32, i32, i32) {
    %c0_i32 = arith.constant 0 : i32
    %c0_i32_0 = arith.constant 0 : i32
    %c0_i32_1 = arith.constant 0 : i32
    return %arg0, %c0_i32, %c0_i32_0 : i32, i32, i32
  }
}

</mosaic_0001>

<bundles_post_ra>
// kernel: dynamics_forward.1
= control target key start
LH: loop header
LB: loop body
LE: loop exit
PB: predicated region body
PF: predicated region fallthrough
CT: control target
= control target key end

     0   :  { %9 = vsyncpa [#allocation4], 0  ;;  %s8168_s0 = inlined_call_operand.vmem [shape: bf16[2,80,128], index: 0, kind: input, shape index: {}]   ;;  %s8169_s1 = inlined_call_operand.hbm [shape: bf16[63,128,128], index: 1, kind: input, shape index: {}]   ;;  %s8170_s2 = inlined_call_operand.hbm [shape: f32[7,1,128], index: 2, kind: input, shape index: {}]   ;;  %s8171_s3 = inlined_call_operand.hbm [shape: f32[80,128], index: 3, kind: input, shape index: {}]   ;;  %s8172_s4 = inlined_call_operand.vmem [shape: f32[2,80,128], index: 4, kind: output, shape index: {}]  }
   0x1   :  { %10 = vsyncpa [#allocation6], 0  ;;  %s7030_s15 = smov 0  }
   0x2 LB: > { %s161_s18 = sshll.u32 %s8170_s2, 4  ;;  %s7039_s19 = sadd.s32 4294967295, %s6989_s15   ;;  %s6989_s15 = sphi %s7030_s15, %s16_s15   ;;  %s162_s18 = int_to_ptr.hbm [resolvable:$true] %s161_s18 }
   0x3   : > { %p5040_p0 = scmp.ge.s32.totalorder %s6989_s15, 1  ;;  %p136_p1 = scmp.lt.s32.totalorder %s6989_s15, 3 }
   0x4   : > { %p6837_p2 = scmp.eq.s32.totalorder %s7039_s19, 0  ;;  %s6995_s21 = smov [#allocation5]  }
   0x5   : > { %p7044_p3 = pnand %p5040_p0, %p136_p1  ;;  %s163_s22 = sshll.u32 %s6995_s21, 4  ;;  %s164_s22 = int_to_ptr.vmem [resolvable:$true] %s163_s22 }
   0x6   : > { %s147_s25 = sshll.u32 %s8169_s1, 4  ;;  %s6996_s27 = smov [#allocation3]   ;;  %s148_s25 = int_to_ptr.hbm [resolvable:$true] %s147_s25 }
   0x7   : > { %p6827_p4 = pneg %p7044_p3  ;;  %s149_s28 = sshll.u32 %s6996_s27, 4  ;;  %s150_s28 = int_to_ptr.vmem [resolvable:$true] %s149_s28 }
   0x8   : > { %s6997_s29 = smov 16   ;;  %s6998_s30 = smov 1  }
   0x9   : > { %p7055_p5 = pnand %p6837_p2, %p6827_p4  ;;  %s175_s7 = sshll.u32 %s8171_s3, 4  ;;  %s176_s7 = int_to_ptr.hbm [resolvable:$true] %s175_s7 }
   0xa   : > { %s6999_s8 = smov 64   ;;  %s7000_s9 = smov 4  }
   0xb   : > { %6833 = dma.hbm_to_vmem [thread:$0]  (!%p7055_p5), %s162_s18, 112, %s164_s22, [#allocation6], %s6997_s29, %s6997_s29, %s6998_s30  }
   0xc   : > { %6830 = dma.hbm_to_vmem [thread:$0]  (!%p7055_p5), %s148_s25, 64512, %s150_s28, [#allocation4], %s6999_s8, %s6999_s8, %s7000_s9  }
   0xd   : > { %s7001_s10 = smov [#allocation7]   ;;  %s7002_s12 = smov 128  }
   0xe   : > { %s177_s11 = sshll.u32 %s7001_s10, 4  ;;  %s7003_s13 = smov 8   ;;  %s178_s11 = int_to_ptr.vmem [resolvable:$true] %s177_s11 }
   0xf   : > { %6836 = dma.hbm_to_vmem [thread:$0]  (!%p7055_p5), %s176_s7, 1280, %s178_s11, [#allocation6], %s7002_s12, %s7002_s12, %s7003_s13  }
  0x10   : > { %201 = sbr.rel (%p7044_p3) target bundleno = 1093 (0x445), region = 36 }
  0x15   : > { %6974 = dma.done.wait (%p6837_p2), [#allocation4], 64512  }
  0x16   : > { %6976 = vsyncadd (%p6837_p2), [#allocation4], 4294902784 }
  0x17   : > { %6978 = dma.done.wait (%p6837_p2), [#allocation6], 1392  }
  0x18   : > { %6980 = vsyncadd (%p6837_p2), [#allocation6], 4294965904  ;;  %p238_p6 = scmp.lt.s32.totalorder %s7039_s19, 1  ;;  %v7004_v0 = vmov 0   ;;  %v6342_v1 = vld [vmem:[#allocation3 + $0x78] sm:$0xff]  ;;  %v6341_v2 = vld [vmem:[#allocation3 + $0x70] sm:$0xff] }
  0x19   : > { %249 = vst [vmem:[#allocation2] sm:$0xf] %v7004_v0  ;;  %421 = vmatpush.bf16.msra.mxu0 %v6342_v1  ;;  %6763 = vmatpush.bf16.msra.mxu1 %v6342_v1  ;;  %v6358_v3 = vld [vmem:[#allocation3 + $0xf8] sm:$0xff]  ;;  %v6357_v5 = vld [vmem:[#allocation3 + $0xf0] sm:$0xff]  ;;  %v6340_v8 = vld [vmem:[#allocation3 + $0x68] sm:$0xff]  ;;  %vm356_vm0 = vcmask 1044480  }
  0x1a   : > { %s8182_s19 = smov (!%p238_p6, %s7039_s19), 1  ;;  %250 = vst [vmem:[#allocation2 + $0x4] sm:$0xf] %v7004_v0  ;;  %6764 = vmatpush.bf16.msra.mxu2 %v6342_v1  ;;  %913 = vmatpush.bf16.msra.mxu3 %v6358_v3  ;;  %v6356_v11 = vld [vmem:[#allocation3 + $0xe8] sm:$0xff]  ;;  %v6339_v12 = vld [vmem:[#allocation3 + $0x60] sm:$0xff]  ;;  %v6338_v14 = vld [vmem:[#allocation3 + $0x58] sm:$0xff] }
  0x1b   : > { %251 = vst [vmem:[#allocation2 + $0x30] sm:$0xf] %v7004_v0  ;;  %s6813_s14 = smul.u32 40, %s8182_s19  ;;  %v6355_v13 = vld [vmem:[#allocation3 + $0xe0] sm:$0xff]  ;;  %v6354_v20 = vld [vmem:[#allocation3 + $0xd8] sm:$0xff]  ;;  %v6337_v23 = vld [vmem:[#allocation3 + $0x50] sm:$0xff] }
  0x1c   : > { %252 = vst [vmem:[#allocation2 + $0x34] sm:$0xf] %v7004_v0  ;;  %s6814_s16 = smul.u32 80, %s8182_s19  ;;  %v6353_v27 = vld [vmem:[#allocation3 + $0xd0] sm:$0xff]  ;;  %v6336_v32 = vld [vmem:[#allocation3 + $0x48] sm:$0xff]  ;;  %v6335_v44 = vld [vmem:[#allocation3 + $0x40] sm:$0xff] }
  0x1d   : > { %s242_s20 = scalar_lea.vmem %s8168_s0, %s6813_s14  ;;  %422 = vmatpush.bf16.msra.mxu0 %v6341_v2  ;;  %6765 = vmatpush.bf16.msra.mxu1 %v6341_v2  ;;  %v6352_v39 = vld [vmem:[#allocation3 + $0xc8] sm:$0xff]  ;;  %v6334_v49 = vld [vmem:[#allocation3 + $0x38] sm:$0xff]  ;;  %v6351_v56 = vld [vmem:[#allocation3 + $0xc0] sm:$0xff]  ;;  %vm620_vm1 = vsmask.f32 4352  ;;  %vm1492_vm3 = vcmask 1046528  }
  0x1e   : > { %s7086_s23 = scalar_lea.vmem %s8172_s4, %s6814_s16  ;;  %v253_v4 = vld [vmem:[%s242_s20] sm:$0xff]   ;;  %v255_v6 = vld [vmem:[%s242_s20 + $0x8] sm:$0xff]   ;;  %v257_v7 = vld [vmem:[%s242_s20 + $0x10] sm:$0xff]   ;;  %6766 = vmatpush.bf16.msra.mxu2 %v6341_v2  ;;  %914 = vmatpush.bf16.msra.mxu3 %v6357_v5  ;;  %vm458_vm2 = vsmask.f32 5376  ;;  %s7319_s19 = smov 1  }
  0x1f   : > { %263 = vst [vmem:[#allocation2 + $0x8] sm:$0xff] %v253_v4   ;;  %v259_v9 = vld [vmem:[%s242_s20 + $0x18] sm:$0xff]   ;;  %v261_v10 = vld [vmem:[%s242_s20 + $0x20] sm:$0xff]   ;;  %v6350_v52 = vld [vmem:[#allocation3 + $0xb8] sm:$0xff]  ;;  %vm1132_vm4 = vsmask.f32 7424 }
  0x20   : > { %265 = vst [vmem:[#allocation2 + $0x10] sm:$0xff] %v255_v6   ;;  %v310_v16 = vld [vmem:[#allocation2] sm:$0x8]  ;;  %v6366_v53 = vld [vmem:[#allocation3 + $0x138] sm:$0xff]  ;;  %v6333_v60 = vld [vmem:[#allocation3 + $0x30] sm:$0xff] }
  0x21   : > { %267 = vst [vmem:[#allocation2 + $0x18] sm:$0xff] %v257_v7   ;;  %423 = vmatpush.bf16.msra.mxu0 %v6340_v8  ;;  %6767 = vmatpush.bf16.msra.mxu1 %v6340_v8  ;;  %v7088_v15 = vld [vmem:[#allocation2 + $0x4] sm:$0xf]  ;;  %v339_v21 = vunpack.c.l.b16 %v310_v16  ;;  %v6399_v61 = vld [vmem:[#allocation3 + $0x1f8] sm:$0xff]  ;;  %v6349_v62 = vld [vmem:[#allocation3 + $0xb0] sm:$0xff] }
  0x22   : > { %269 = vst [vmem:[#allocation2 + $0x20] sm:$0xff] %v259_v9   ;;  %6768 = vmatpush.bf16.msra.mxu2 %v6340_v8  ;;  %915 = vmatpush.bf16.msra.mxu3 %v6356_v11  ;;  %v6717_v17 = vld [vmem:[#allocation2 + $0x4] sm:$0x8]  ;;  %v340_v22 = vunpack.c.l.b16 %v7088_v15  ;;  %v6365_v63 = vld [vmem:[#allocation3 + $0x130] sm:$0xff]  ;;  %v283_v6 = vld [vmem:[#allocation2] sm:$0xc] }
  0x23   : > { %271 = vst [vmem:[#allocation2 + $0x28] sm:$0xff] %v261_v10   ;;  %v6332_v2 = vld [vmem:[#allocation3 + $0x28] sm:$0xff]  ;;  %v6398_v3 = vld [vmem:[#allocation3 + $0x1f0] sm:$0xff]  ;;  %v6331_v9 = vld [vmem:[#allocation3 + $0x20] sm:$0xff]  ;;  %vm1622_vm5 = vsmask.f32 6400 }
  0x24   : > { %v7095_v29 = vpack.c.b16 %v340_v22, %v339_v21  ;;  %v6348_v4 = vld [vmem:[#allocation3 + $0xa8] sm:$0xff]  ;;  %v6347_v10 = vld [vmem:[#allocation3 + $0xa0] sm:$0xff]  ;;  %v6330_v16 = vld [vmem:[#allocation3 + $0x18] sm:$0xff] }
  0x25   : > { %424 = vmatpush.bf16.msra.mxu0 %v6339_v12  ;;  %6769 = vmatpush.bf16.msra.mxu1 %v6339_v12  ;;  %v6364_v5 = vld [vmem:[#allocation3 + $0x128] sm:$0xff]  ;;  %v6363_v11 = vld [vmem:[#allocation3 + $0x120] sm:$0xff] }
  0x26   : > { %6770 = vmatpush.bf16.msra.mxu2 %v6339_v12  ;;  %v6796_v18 = vld [vmem:[#allocation2 + $0x4] sm:$0xf0]   ;;  %916 = vmatpush.bf16.msra.mxu3 %v6355_v13  ;;  %v357_v40 = vrot.slane %v7095_v29, 3  ;;  %v456_v12 = vunpack.c.l.b16 %v283_v6  ;;  %v6396_v6 = vld [vmem:[#allocation3 + $0x1e0] sm:$0xff] }
  0x27   : > { %v6798_v24 = vld [vmem:[#allocation2 + $0xc] sm:$0xff]   ;;  %v6718_v25 = vor.u32 %v6796_v18, %v6717_v17 }
  0x28   : > { %v7091_v28 = vld [vmem:[#allocation2 + $0x8] sm:$0xff]  ;;  %v7097_v30 = vld [vmem:[#allocation2 + $0x10] sm:$0xff]  ;;  %v7099_v31 = vld [vmem:[#allocation2 + $0x18] sm:$0xff]  ;;  %v816_v35 = vshrl.u32 %v6798_v24, 16  ;;  %v819_v36 = vshll.u32 %v6798_v24, 16 }
  0x29   : > { %425 = vmatpush.bf16.msra.mxu0 %v6338_v14  ;;  %6771 = vmatpush.bf16.msra.mxu1 %v6338_v14  ;;  %v808_v33 = vshrl.u32 %v6718_v25, 16  ;;  %v811_v34 = vshll.u32 %v6718_v25, 16  ;;  %v7101_v37 = vld [vmem:[#allocation2 + $0x20] sm:$0xff]  ;;  %v358_v41 = vrot.slane %v7091_v28, 3  ;;  %v360_v42 = vrot.slane %v7097_v30, 3  ;;  %v6800_v1 = vld [vmem:[#allocation2 + $0x14] sm:$0xff]  }
  0x2a   : > { %v293_v19 = vld [vmem:[#allocation2 + $0x28] sm:$0x7]  ;;  %6772 = vmatpush.bf16.msra.mxu2 %v6338_v14  ;;  %917 = vmatpush.bf16.msra.mxu3 %v6354_v20  ;;  %v362_v43 = vrot.slane %v7099_v31, 3  ;;  %v818_v47 = vrot.slane %v816_v35, 3  ;;  %v821_v48 = vrot.slane %v819_v36, 4  ;;  %v364_v50 = vrot.slane %v7101_v37, 3 }
  0x2b   : > { %v349_v26 = vunpack.c.l.b16 %v293_v19  ;;  %v810_v45 = vrot.slane %v808_v33, 3  ;;  %v813_v46 = vrot.slane %v811_v34, 4  ;;  %v359_v54 = vsel %vm356_vm0, %v357_v40, %v358_v41  ;;  %v6346_v17 = vld [vmem:[#allocation3 + $0x98] sm:$0xff]  ;;  %v6329_v24 = vld [vmem:[#allocation3 + $0x10] sm:$0xff]  ;;  %v6397_v36 = vld [vmem:[#allocation3 + $0x1e8] sm:$0xff] }
  0x2c   : > { %v363_v55 = vsel %vm356_vm0, %v360_v42, %v362_v43  ;;  %v7119_v58 = vor.u32 %v821_v48, %v818_v47  ;;  %v825_v7 = vshrl.u32 %v6800_v1, 16  ;;  %v828_v8 = vshll.u32 %v6800_v1, 16  ;;  %v6362_v18 = vld [vmem:[#allocation3 + $0x118] sm:$0xff]  ;;  %v6345_v25 = vld [vmem:[#allocation3 + $0x90] sm:$0xff]  ;;  %v6328_v40 = vld [vmem:[#allocation3 + $0x8] sm:$0xff] }
  0x2d   : > { %426 = vmatpush.bf16.msra.mxu0 %v6337_v23  ;;  %6773 = vmatpush.bf16.msra.mxu1 %v6337_v23  ;;  %v7103_v38 = vpack.c.b16 %v349_v26, %v349_v26  ;;  %v814_v57 = vor.u32 %v813_v46, %v810_v45  ;;  %v457_v19 = vpack.c.b16 %v340_v22, %v456_v12  ;;  %v6361_v26 = vld [vmem:[#allocation3 + $0x110] sm:$0xff]  ;;  %v468_v15 = vshrl.u32 %v7091_v28, 16 }
  0x2e   : > { %6774 = vmatpush.bf16.msra.mxu2 %v6337_v23  ;;  %918 = vmatpush.bf16.msra.mxu3 %v6353_v27  ;;  %v827_v13 = vrot.slane %v825_v7, 3  ;;  %v830_v14 = vrot.slane %v828_v8, 4  ;;  %v361_v20 = vsel %vm356_vm0, %v358_v41, %v360_v42  ;;  %v365_v21 = vsel %vm356_vm0, %v362_v43, %v364_v50  ;;  %v6344_v41 = vld [vmem:[#allocation3 + $0x88] sm:$0xff]  ;;  %v6690_v1 = vld [vmem:[#allocation2 + $0x8] sm:$0xff]  }
  0x2f   : > { %v366_v51 = vrot.slane %v7103_v38, 3  ;;  %v823_v0 = vsel %vm620_vm1, %v814_v57, %v7119_v58  ;;  %v471_v22 = vshll.u32 %v7091_v28, 16  ;;  %v622_v27 = vshrl.u32 %v7095_v29, 16  ;;  %v6360_v28 = vld [vmem:[#allocation3 + $0x108] sm:$0xff]  ;;  %v6379_v57 = vld [vmem:[#allocation3 + $0x178] sm:$0xff] }
  0x30   : > { %v7134_v23 = vor.u32 %v830_v14, %v827_v13  ;;  %v460_v33 = vshrl.u32 %v457_v19, 16  ;;  %v463_v34 = vshll.u32 %v457_v19, 16  ;;  %v470_v47 = vrot.slane %v468_v15, 2  ;;  %v6803_v12 = vld [vmem:[#allocation2 + $0x24] sm:$0xff]   ;;  %v6395_v14 = vld [vmem:[#allocation3 + $0x1d8] sm:$0xff] }
  0x31   : > { %427 = vmatpush.bf16.msra.mxu0 %v6336_v32  ;;  %6775 = vmatpush.bf16.msra.mxu1 %v6336_v32  ;;  %v367_v59 = vsel %vm356_vm0, %v364_v50, %v366_v51  ;;  %v624_v42 = vrot.slane %v622_v27, 3  ;;  %v473_v48 = vrot.slane %v471_v22, 3  ;;  %v6327_v51 = vld [vmem:[#allocation3] sm:$0xff]  ;;  %v477_v7 = vshrl.u32 %v7097_v30, 16  ;;  %v6405_v13 = vld [vmem:[#allocation3 + $0x228] sm:$0xff] }
  0x32   : > { %6776 = vmatpush.bf16.msra.mxu2 %v6336_v32  ;;  %919 = vmatpush.bf16.msra.mxu3 %v6352_v39  ;;  %v625_v32 = vshll.u32 %v7095_v29, 16  ;;  %v832_v35 = vsel %vm620_vm1, %v7119_v58, %v7134_v23  ;;  %v6802_v39 = vld [vmem:[#allocation2 + $0x1c] sm:$0xff]   ;;  %v630_v29 = vrot.slane %v471_v22, 4  ;;  %v462_v45 = vrot.slane %v460_v33, 2 }
  0x33   : > { %v465_v46 = vrot.slane %v463_v34, 3  ;;  %v837_v50 = vshll.u32 %v6802_v39, 16  ;;  %v480_v8 = vshll.u32 %v7097_v30, 16  ;;  %v6388_v30 = vld [vmem:[#allocation3 + $0x1a0] sm:$0xff]  ;;  %v7154_v34 = vld [vmem:[#allocation2 + $0x28] sm:$0xff]  }
  0x34   : > { %v627_v43 = vrot.slane %v625_v32, 4  ;;  %v6375_v32 = vld [vmem:[#allocation3 + $0x158] sm:$0xff] }
  0x35   : > { %428 = vmatpush.bf16.msra.mxu0 %v6335_v44  ;;  %6777 = vmatpush.bf16.msra.mxu1 %v6335_v44  ;;  %v466_v58 = vor.u32 %v465_v46, %v462_v45  ;;  %v482_v19 = vrot.slane %v480_v8, 3 }
  0x36   : > { %6778 = vmatpush.bf16.msra.mxu2 %v6335_v44  ;;  %920 = vmatpush.bf16.msra.mxu3 %v6351_v56  ;;  %v629_v44 = vrot.slane %v468_v15, 3  ;;  %v6391_v56 = vld [vmem:[#allocation3 + $0x1b8] sm:$0xff] }
  0x37   : > { %v6387_v15 = vld [vmem:[#allocation3 + $0x198] sm:$0xff] }
  0x38   : > { %429 = vmatmul.bf16.vlgmr.msra.gmra.mxu0 %v359_v54  ;;  %439 = vmatmul.bf16.vlgmr.msra.gmra.mxu1 %v363_v55  ;;  %v7143_v54 = vor.u32 %v630_v29, %v629_v44  ;;  %v6359_v55 = vld [vmem:[#allocation3 + $0x100] sm:$0xff]  ;;  %v6394_v44 = vld [vmem:[#allocation3 + $0x1d0] sm:$0xff] }
  0x39   : > { %565 = vmatpush.bf16.msrb.mxu1 %v6334_v49  ;;  %1032 = vmatpush.bf16.msrb.mxu0 %v6366_v53  ;;  %v834_v49 = vshrl.u32 %v6802_v39, 16  ;;  %v628_v53 = vor.u32 %v627_v43, %v624_v42  ;;  %v486_v42 = vshrl.u32 %v7099_v31, 16  ;;  %v489_v43 = vshll.u32 %v7099_v31, 16  ;;  %v6374_v29 = vld [vmem:[#allocation3 + $0x150] sm:$0xff] }
  0x3a   : > { %707 = vmatpush.bf16.msrb.mxu2 %v6350_v52  ;;  %1557 = vmatpush.bf16.msrb.mxu3 %v6399_v61  ;;  %v6343_v52 = vld [vmem:[#allocation3 + $0x80] sm:$0xff] }
  0x3b   : > { %449 = vmatmul.bf16.vlgmr.msra.gmra.mxu2 %v367_v59  ;;  %921 = vmatmul.bf16.vlgmr.msra.gmra.mxu3 %v823_v0  ;;  %v474_v59 = vor.u32 %v473_v48, %v470_v47  ;;  %v836_v61 = vrot.slane %v834_v49, 3  ;;  %v6385_v47 = vld [vmem:[#allocation3 + $0x188] sm:$0xff]  ;;  %v6402_v48 = vld [vmem:[#allocation3 + $0x210] sm:$0xff] }
  0x3c   : > { %v6393_v49 = vld [vmem:[#allocation3 + $0x1c8] sm:$0xff] }
  0x3d   : > { %566 = vmatpush.bf16.msrb.mxu1 %v6333_v60  ;;  %1033 = vmatpush.bf16.msrb.mxu0 %v6365_v63  ;;  %v6407_v60 = vld [vmem:[#allocation3 + $0x238] sm:$0xff]  ;;  %v632_v63 = vsel %vm620_vm1, %v628_v53, %v7143_v54  ;;  %v475_v0 = vsel %vm458_vm2, %v466_v58, %v474_v59  ;;  %v491_v53 = vrot.slane %v489_v43, 3 }
  0x3e   : > { %708 = vmatpush.bf16.msrb.mxu2 %v6349_v62  ;;  %1558 = vmatpush.bf16.msrb.mxu3 %v6398_v3  ;;  %v839_v62 = vrot.slane %v837_v50, 4  ;;  %v6378_v3 = vld [vmem:[#allocation3 + $0x170] sm:$0xff]  ;;  %v637_v50 = vrot.slane %v486_v42, 3 }
  0x41   : > { %567 = vmatpush.bf16.msrb.mxu1 %v6332_v2  ;;  %1034 = vmatpush.bf16.msrb.mxu0 %v6364_v5  ;;  %v6390_v2 = vld [vmem:[#allocation3 + $0x1b0] sm:$0xff] }
  0x42   : > { %709 = vmatpush.bf16.msrb.mxu2 %v6348_v4  ;;  %1559 = vmatpush.bf16.msrb.mxu3 %v6397_v36  ;;  %v840_v4 = vor.u32 %v839_v62, %v836_v61  ;;  %v6406_v5 = vld [vmem:[#allocation3 + $0x230] sm:$0xff]  ;;  %v6691_v36 = vld [vmem:[#allocation2 + $0x10] sm:$0xff]   ;;  %v6692_v61 = vld [vmem:[#allocation2 + $0x18] sm:$0xff]  }
  0x45   : > { %568 = vmatpush.bf16.msrb.mxu1 %v6331_v9  ;;  %1035 = vmatpush.bf16.msrb.mxu0 %v6363_v11  ;;  %v6389_v9 = vld [vmem:[#allocation3 + $0x1a8] sm:$0xff]  ;;  %v841_v11 = vsel %vm620_vm1, %v7134_v23, %v840_v4 }
  0x46   : > { %710 = vmatpush.bf16.msrb.mxu2 %v6347_v10  ;;  %v6377_v10 = vld [vmem:[#allocation3 + $0x168] sm:$0xff]  ;;  %1560 = vmatpush.bf16.msrb.mxu3 %v6396_v6  ;;  %v6372_v6 = vld [vmem:[#allocation3 + $0x140] sm:$0xff] }
  0x48   : > { %434 = vmatmul.bf16.gmra.mxu0 %v361_v20  ;;  %444 = vmatmul.bf16.gmra.mxu1 %v365_v21  ;;  %v6376_v20 = vld [vmem:[#allocation3 + $0x160] sm:$0xff]  ;;  %v843_v21 = vshrl.u32 %v6803_v12, 16 }
  0x49   : > { %569 = vmatpush.bf16.msrb.mxu1 %v6330_v16  ;;  %1036 = vmatpush.bf16.msrb.mxu0 %v6362_v18  ;;  %v633_v16 = vrot.slane %v477_v7, 3  ;;  %v479_v18 = vrot.slane %v477_v7, 2  ;;  %v7166_v7 = vld [vmem:[#allocation2 + $0xc] sm:$0xff]  }
  0x4a   : > { %711 = vmatpush.bf16.msrb.mxu2 %v6346_v17  ;;  %v634_v17 = vrot.slane %v480_v8, 4  ;;  %1561 = vmatpush.bf16.msrb.mxu3 %v6395_v14  ;;  %v845_v22 = vrot.slane %v843_v21, 3  ;;  %v6981_v8 = vld [vmem:[#allocation2 + $0xc] sm:$0xf0]  ;;  %v6400_v21 = vld [vmem:[#allocation3 + $0x200] sm:$0xff] }
  0x4b   : > { %926 = vmatmul.bf16.gmra.mxu3 %v832_v35 }
  0x4c   : > { %v635_v23 = vor.u32 %v634_v17, %v633_v16 }
  0x4d   : > { %570 = vmatpush.bf16.msrb.mxu1 %v6329_v24  ;;  %1037 = vmatpush.bf16.msrb.mxu0 %v6361_v26  ;;  %v846_v24 = vshll.u32 %v6803_v12, 16  ;;  %v483_v26 = vor.u32 %v482_v19, %v479_v18  ;;  %v7168_v18 = vld [vmem:[#allocation2 + $0x14] sm:$0xff] }
  0x4e   : > { %712 = vmatpush.bf16.msrb.mxu2 %v6345_v25  ;;  %v6404_v25 = vld [vmem:[#allocation3 + $0x220] sm:$0xff]  ;;  %v636_v33 = vsel %vm620_vm1, %v7143_v54, %v635_v23  ;;  %1562 = vmatpush.bf16.msrb.mxu3 %v6394_v44  ;;  %v6367_v44 = vld [vmem:[#allocation2 + $0x8] sm:$0xff] }
  0x4f   : > { %v848_v27 = vrot.slane %v846_v24, 4  ;;  %v484_v35 = vsel %vm458_vm2, %v474_v59, %v483_v26 }
  0x51   : > { %571 = vmatpush.bf16.msrb.mxu1 %v6328_v40  ;;  %1038 = vmatpush.bf16.msrb.mxu0 %v6360_v28  ;;  %v849_v39 = vor.u32 %v848_v27, %v845_v22  ;;  %v6594_v40 = vunpack.c.h.b16 %v7154_v34  ;;  %v6403_v28 = vld [vmem:[#allocation3 + $0x218] sm:$0xff]  ;;  %v504_v27 = vshrl.u32 %v7103_v38, 16 }
  0x52   : > { %713 = vmatpush.bf16.msrb.mxu2 %v6344_v41  ;;  %v6386_v41 = vld [vmem:[#allocation3 + $0x190] sm:$0xff]  ;;  %1563 = vmatpush.bf16.msrb.mxu3 %v6393_v49  ;;  %v1342_v49 = vshrl.u32 %v7168_v18, 16 }
  0x53   : > { %v850_v45 = vsel %vm620_vm1, %v840_v4, %v849_v39  ;;  %v806_v46 = vpack.c.b16 %v6594_v40, %v6594_v40  ;;  %v6392_v4 = vld [vmem:[#allocation3 + $0x1c0] sm:$0xff] }
  0x55   : > { %572 = vmatpush.bf16.msrb.mxu1 %v6327_v51  ;;  %1039 = vmatpush.bf16.msrb.mxu0 %v6359_v55  ;;  %v638_v51 = vrot.slane %v489_v43, 4  ;;  %v852_v31 = vshrl.u32 %v806_v46, 16  ;;  %v855_v54 = vshll.u32 %v806_v46, 16  ;;  %v1338_v46 = vshll.u32 %v7168_v18, 16 }
  0x56   : > { %714 = vmatpush.bf16.msrb.mxu2 %v6343_v52  ;;  %v488_v52 = vrot.slane %v486_v42, 2  ;;  %1564 = vmatpush.bf16.msrb.mxu3 %v6392_v4  ;;  %v7176_v42 = vld [vmem:[#allocation2 + $0x1c] sm:$0xff] }
  0x57   : > { %v639_v55 = vor.u32 %v638_v51, %v637_v50  ;;  %v857_v58 = vrot.slane %v855_v54, 4  ;;  %v1134_v54 = vshrl.u32 %v6367_v44, 16 }
  0x58   : > { %573 = vmatmul.bf16.vlgmr.msrb.gmra.mxu1 %v475_v0  ;;  %1040 = vmatmul.bf16.vlgmr.msrb.gmra.mxu0 %v6690_v1  ;;  %v495_v0 = vshrl.u32 %v7101_v37, 16  ;;  %v498_v1 = vshll.u32 %v7101_v37, 16  ;;  %v599_v37 = vld [vmem:[#allocation2 + $0x28] sm:$0xf] }
  0x59   : > { %1230 = vmatpush.bf16.msra.mxu1 %v6379_v57  ;;  %1709 = vmatpush.bf16.msra.mxu0 %v6407_v60  ;;  %v854_v57 = vrot.slane %v852_v31, 3  ;;  %v640_v59 = vsel %vm620_vm1, %v635_v23, %v639_v55  ;;  %v618_v16 = vunpack.c.l.b16 %v599_v37 }
  0x5a   : > { %1427 = vmatpush.bf16.msra.mxu2 %v6391_v56  ;;  %v492_v56 = vor.u32 %v491_v53, %v488_v52  ;;  %v497_v12 = vrot.slane %v495_v0, 2  ;;  %v1331_v53 = vshrl.u32 %v7166_v7, 16 }
  0x5b   : > { %715 = vmatmul.bf16.vlgmr.msrb.gmra.mxu2 %v632_v63  ;;  %931 = vmatmul.bf16.gmra.mxu3 %v841_v11  ;;  %v858_v62 = vor.u32 %v857_v58, %v854_v57  ;;  %v6373_v63 = vld [vmem:[#allocation3 + $0x148] sm:$0xff]  ;;  %v642_v11 = vrot.slane %v498_v1, 4 }
  0x5c   : > { %v493_v60 = vsel %vm458_vm2, %v483_v26, %v492_v56  ;;  %v1494_v26 = vrot.slane %v7168_v18, 1 }
  0x5d   : > { %1231 = vmatpush.bf16.msra.mxu1 %v6378_v3  ;;  %1710 = vmatpush.bf16.msra.mxu0 %v6406_v5  ;;  %v6401_v3 = vld [vmem:[#allocation3 + $0x208] sm:$0xff]  ;;  %v859_v5 = vsel %vm620_vm1, %v849_v39, %v858_v62  ;;  %v506_v39 = vrot.slane %v504_v27, 2 }
  0x5e   : > { %1428 = vmatpush.bf16.msra.mxu2 %v6390_v2  ;;  %v6384_v2 = vld [vmem:[#allocation3 + $0x180] sm:$0xff] }
  0x61   : > { %1232 = vmatpush.bf16.msra.mxu1 %v6377_v10  ;;  %1711 = vmatpush.bf16.msra.mxu0 %v6405_v13  ;;  %v641_v10 = vrot.slane %v495_v0, 3  ;;  %v500_v13 = vrot.slane %v498_v1, 3 }
  0x62   : > { %1429 = vmatpush.bf16.msra.mxu2 %v6389_v9  ;;  %v6982_v9 = vld [vmem:[#allocation2 + $0xc] sm:$0xe] }
  0x63   : > { %v643_v14 = vor.u32 %v642_v11, %v641_v10  ;;  %v501_v17 = vor.u32 %v500_v13, %v497_v12  ;;  %v6983_v19 = vor.u32 %v6982_v9, %v6981_v8  ;;  %v6369_v8 = vld [vmem:[#allocation2 + $0x18] sm:$0xff]  ;;  %v1350_v9 = vshrl.u32 %v7176_v42, 16 }
  0x64   : > { %v1149_v37 = vshll.u32 %v6369_v8, 16 }
  0x65   : > { %1233 = vmatpush.bf16.msra.mxu1 %v6376_v20  ;;  %1712 = vmatpush.bf16.msra.mxu0 %v6404_v25  ;;  %v619_v20 = vpack.c.b16 %v618_v16, %v618_v16  ;;  %v502_v24 = vsel %vm458_vm2, %v492_v56, %v501_v17  ;;  %v6693_v25 = vld [vmem:[#allocation2 + $0x20] sm:$0xff]   ;;  %v1493_v23 = vrot.slane %v6983_v19, 1  ;;  %v1624_v50 = vshrl.u32 %v6983_v19, 16 }
  0x66   : > { %1430 = vmatpush.bf16.msra.mxu2 %v6388_v30  ;;  %v644_v30 = vsel %vm620_vm1, %v639_v55, %v643_v14  ;;  %v1627_v51 = vshll.u32 %v6983_v19, 16  ;;  %v1635_v12 = vrot.slane %v1350_v9, 1  ;;  %v1151_v18 = vrot.slane %v1149_v37, 1 }
  0x67   : > { %v649_v22 = vshll.u32 %v619_v20, 16  ;;  %v1626_v57 = vrot.slane %v1624_v50, 1 }
  0x68   : > { %578 = vmatmul.bf16.gmra.mxu1 %v484_v35  ;;  %1045 = vmatmul.bf16.gmra.mxu0 %v6691_v36  ;;  %v1629_v58 = vrot.slane %v1627_v51, 2 }
  0x69   : > { %1234 = vmatpush.bf16.msra.mxu1 %v6375_v32  ;;  %1713 = vmatpush.bf16.msra.mxu0 %v6403_v28  ;;  %v507_v32 = vshll.u32 %v7103_v38, 16  ;;  %v651_v36 = vrot.slane %v649_v22, 4  ;;  %v1333_v38 = vshll.u32 %v7166_v7, 16  ;;  %v1346_v7 = vshll.u32 %v7176_v42, 16  ;;  %v6370_v22 = vld [vmem:[#allocation2 + $0x20] sm:$0xff] }
  0x6a   : > { %1431 = vmatpush.bf16.msra.mxu2 %v6387_v15  ;;  %v646_v15 = vshrl.u32 %v619_v20, 16  ;;  %v1630_v0 = vor.u32 %v1629_v58, %v1626_v57 }
  0x6b   : > { %720 = vmatmul.bf16.gmra.mxu2 %v636_v33  ;;  %936 = vmatmul.bf16.gmra.mxu3 %v850_v45  ;;  %v1495_v33 = vsel %vm1492_vm3, %v1493_v23, %v1494_v26  ;;  %v509_v40 = vrot.slane %v507_v32, 3  ;;  %v1496_v45 = vrot.slane %v7176_v42, 1  ;;  %v1335_v31 = vrot.slane %v1333_v38, 1 }
  0x6c   : > { %v648_v35 = vrot.slane %v646_v15, 3  ;;  %v1636_v13 = vrot.slane %v1346_v7, 2  ;;  %v1348_v16 = vrot.slane %v1346_v7, 1 }
  0x6d   : > { %1235 = vmatpush.bf16.msra.mxu1 %v6374_v29  ;;  %1714 = vmatpush.bf16.msra.mxu0 %v6402_v48  ;;  %v510_v28 = vor.u32 %v509_v40, %v506_v39  ;;  %v1136_v48 = vshll.u32 %v6367_v44, 16  ;;  %v1497_v52 = vsel %vm1492_vm3, %v1494_v26, %v1496_v45  ;;  %v1157_v40 = vshll.u32 %v6370_v22, 16 }
  0x6e   : > { %1432 = vmatpush.bf16.msra.mxu2 %v6386_v41  ;;  %v652_v41 = vor.u32 %v651_v36, %v648_v35  ;;  %v1637_v19 = vor.u32 %v1636_v13, %v1635_v12  ;;  %v1153_v35 = vshrl.u32 %v6369_v8, 16 }
  0x6f   : > { %v511_v29 = vsel %vm458_vm2, %v501_v17, %v510_v28  ;;  %v1138_v55 = vrot.slane %v1136_v48, 1  ;;  %v1159_v38 = vrot.slane %v1157_v40, 1 }
  0x70   : > { %v653_v43 = vsel %vm620_vm1, %v643_v14, %v652_v41 }
  0x71   : > { %1236 = vmatpush.bf16.msra.mxu1 %v6373_v63  ;;  %1715 = vmatpush.bf16.msra.mxu0 %v6401_v3  ;;  %v1139_v62 = vor.u32 %v1138_v55, %v1134_v54 }
  0x72   : > { %1433 = vmatpush.bf16.msra.mxu2 %v6385_v47  ;;  %v6368_v47 = vld [vmem:[#allocation2 + $0x10] sm:$0xff] }
  0x73   : > { %v1141_v56 = vshll.u32 %v6368_v47, 16  ;;  %v1145_v11 = vshrl.u32 %v6368_v47, 16 }
  0x75   : > { %1237 = vmatpush.bf16.msra.mxu1 %v6372_v6  ;;  %1716 = vmatpush.bf16.msra.mxu0 %v6400_v21  ;;  %v1143_v63 = vrot.slane %v1141_v56, 1  ;;  %v6371_v56 = vld [vmem:[#allocation2 + $0x28] sm:$0xff] }
  0x76   : > { %1434 = vmatpush.bf16.msra.mxu2 %v6384_v2  ;;  %v7187_v2 = vld [vmem:[#allocation2 + $0x24] sm:$0xff] }
  0x77   : > { %v1144_v4 = vsel %vm1132_vm4, %v1139_v62, %v1143_v63  ;;  %v1498_v6 = vrot.slane %v7187_v2, 1  ;;  %v1147_v17 = vor.u32 %v1145_v11, %v1143_v63  ;;  %v1354_v15 = vshll.u32 %v7187_v2, 16 }
  0x78   : > { %583 = vmatmul.bf16.gmra.mxu1 %v493_v60  ;;  %1050 = vmatmul.bf16.gmra.mxu0 %v6692_v61  ;;  %v1336_v60 = vor.u32 %v1335_v31, %v1331_v53  ;;  %v1340_v61 = vrot.slane %v1338_v46, 1  ;;  %v1358_v27 = vshrl.u32 %v7187_v2, 16 }
  0x79   : > { %v1499_v10 = vsel %vm1492_vm3, %v1496_v45, %v1498_v6  ;;  %v1640_v28 = vrot.slane %v1354_v15, 2  ;;  %v1356_v44 = vrot.slane %v1354_v15, 1  ;;  %v1155_v45 = vor.u32 %v1153_v35, %v1151_v18 }
  0x7a   : > { %v1341_v3 = vsel %vm1132_vm4, %v1336_v60, %v1340_v61  ;;  %v1344_v14 = vor.u32 %v1342_v49, %v1340_v61  ;;  %v1639_v41 = vrot.slane %v1358_v27, 1  ;;  %v1161_v60 = vshrl.u32 %v6370_v22, 16 }
  0x7b   : > { %725 = vmatmul.bf16.gmra.mxu2 %v640_v59  ;;  %941 = vmatmul.bf16.gmra.mxu3 %v859_v5  ;;  %v1632_v59 = vrot.slane %v1338_v46, 2  ;;  %v1160_v51 = vsel %vm1132_vm4, %v1155_v45, %v1159_v38  ;;  %v1165_v61 = vshll.u32 %v6371_v56, 16 }
  0x7c   : > { %v1349_v20 = vsel %vm1132_vm4, %v1344_v14, %v1348_v16  ;;  %v1641_v46 = vor.u32 %v1640_v28, %v1639_v41 }
  0x88   : > { %588 = vmatmul.bf16.gmra.mxu1 %v502_v24  ;;  %1055 = vmatmul.bf16.gmra.mxu0 %v6693_v25  ;;  %v1152_v25 = vsel %vm1132_vm4, %v1147_v17, %v1151_v18 }
  0x8b   : > { %730 = vmatmul.bf16.gmra.mxu2 %v644_v30  ;;  %1565 = vmatmul.bf16.vlgmr.msrb.gmra.mxu3 %v1495_v33  ;;  %v7196_v30 = vld [vmem:[#allocation2 + $0x2c] sm:$0xff]  ;;  %v1284_v33 = vld [vmem:[#allocation2 + $0x34] sm:$0x1] }
  0x8c   : > { %v1500_v26 = vrot.slane %v7196_v30, 1  ;;  %v1323_v42 = vunpack.c.l.b16 %v1284_v33  ;;  %v1362_v55 = vshll.u32 %v7196_v30, 16  ;;  %v1366_v57 = vshrl.u32 %v7196_v30, 16 }
  0x8e   : > { %v1501_v32 = vsel %vm1492_vm3, %v1498_v6, %v1500_v26  ;;  %v1329_v47 = vpack.c.b16 %v1323_v42, %v1323_v42  ;;  %v1643_v62 = vrot.slane %v1366_v57, 1  ;;  %v1644_v63 = vrot.slane %v1362_v55, 2 }
  0x8f   : > { %v1364_v2 = vrot.slane %v1362_v55, 1  ;;  %v1167_v6 = vrot.slane %v1165_v61, 1 }
  0x90   : > { %v1502_v53 = vrot.slane %v1329_v47, 1  ;;  %v1645_v7 = vor.u32 %v1644_v63, %v1643_v62 }
  0x91   : > { %v1368_v28 = vor.u32 %v1366_v57, %v1364_v2 }
  0x92   : > { %v1503_v58 = vsel %vm1492_vm3, %v1500_v26, %v1502_v53  ;;  %v1646_v13 = vsel %vm1622_vm5, %v1641_v46, %v1645_v7  ;;  %v1370_v26 = vshll.u32 %v1329_v47, 16 }
  0x94   : > { %v1372_v42 = vrot.slane %v1370_v26, 1 }
  0x98   : > { %593 = vmatmul.bf16.gmra.mxu1 %v511_v29  ;;  %1060 = vmatmul.bf16.gmra.mxu0 %v7154_v34  ;;  %v1631_v34 = vrot.slane %v1342_v49, 1 }
  0x9a   : > { %v1633_v1 = vor.u32 %v1632_v59, %v1631_v34 }
  0x9b   : > { %735 = vmatmul.bf16.gmra.mxu2 %v653_v43  ;;  %1570 = vmatmul.bf16.gmra.mxu3 %v1497_v52  ;;  %v1352_v43 = vor.u32 %v1350_v9, %v1348_v16  ;;  %v1642_v52 = vsel %vm1622_vm5, %v1637_v19, %v1641_v46  ;;  %v1086_v9 = vld [vmem:[#allocation2 + $0x30] sm:$0x1] }
  0x9c   : > { %v1634_v5 = vsel %vm1622_vm5, %v1630_v0, %v1633_v1  ;;  %v1638_v23 = vsel %vm1622_vm5, %v1633_v1, %v1637_v19  ;;  %v1601_v0 = vld [vmem:[#allocation2 + $0x34] sm:$0x3]  ;;  %v1360_v1 = vor.u32 %v1358_v27, %v1356_v44  ;;  %v1125_v14 = vunpack.c.l.b16 %v1086_v9 }
  0x9d   : > { %v1357_v48 = vsel %vm1132_vm4, %v1352_v43, %v1356_v44  ;;  %v1620_v8 = vunpack.c.l.b16 %v1601_v0 }
  0x9e   : > { %v1131_v30 = vpack.c.b16 %v1125_v14, %v1125_v14 }
  0x9f   : > { %v1621_v16 = vpack.c.b16 %v1620_v8, %v1620_v8 }
  0xa0   : > { %v1173_v33 = vshll.u32 %v1131_v30, 16 }
  0xa8   : > { %1238 = vmatmul.bf16.vlgmr.msra.gmra.mxu1 %v1144_v4  ;;  %1717 = vmatmul.bf16.vlgmr.msra.gmra.mxu0 %v1634_v5  ;;  %v1163_v5 = vor.u32 %v1161_v60, %v1159_v38  ;;  %v1175_v38 = vrot.slane %v1173_v33, 1 }
  0xaa   : > { %v1168_v12 = vsel %vm1132_vm4, %v1163_v5, %v1167_v6 }
  0xab   : > { %1435 = vmatmul.bf16.vlgmr.msra.gmra.mxu2 %v1341_v3  ;;  %1575 = vmatmul.bf16.gmra.mxu3 %v1499_v10  ;;  %v1365_v10 = vsel %vm1132_vm4, %v1360_v1, %v1364_v2 }
  0xb5   : > { %v7199_v21 = vpop.f32.mrf.mxu0  ;;  %v7201_v24 = vpop.f32.mrf.mxu1 }
  0xb8   : > { %1243 = vmatmul.bf16.gmra.mxu1 %v1152_v25  ;;  %1722 = vmatmul.bf16.gmra.mxu0 %v1638_v23  ;;  %v1651_v25 = vshll.u32 %v1621_v16, 16 }
  0xba   : > { %v1653_v40 = vrot.slane %v1651_v25, 2 }
  0xbb   : > { %1440 = vmatmul.bf16.gmra.mxu2 %v1349_v20  ;;  %1580 = vmatmul.bf16.gmra.mxu3 %v1501_v32  ;;  %v1648_v20 = vshrl.u32 %v1621_v16, 16  ;;  %v1169_v32 = vshrl.u32 %v6371_v56, 16 }
  0xbd   : > { %v7209_v36 = vpop.f32.mrf.mxu0  ;;  %v7211_v39 = vpop.f32.mrf.mxu1  ;;  %v1650_v35 = vrot.slane %v1648_v20, 1  ;;  %v1171_v45 = vor.u32 %v1169_v32, %v1167_v6 }
  0xbe   : > { %v922_v29 = vpop.f32.mrf.mxu3  ;;  %v7220_v31 = vpop.f32.mrf.mxu2 }
  0xbf   : > { %v1654_v46 = vor.u32 %v1653_v40, %v1650_v35  ;;  %v1176_v53 = vsel %vm1132_vm4, %v1171_v45, %v1175_v38 }
  0xc1   : > { %v1655_v55 = vsel %vm1622_vm5, %v1645_v7, %v1654_v46 }
  0xc5   : > { %v7214_v49 = vpop.f32.mrf.mxu0  ;;  %v7216_v50 = vpop.f32.mrf.mxu1 }
  0xc6   : > { %v924_v54 = vpop.f32.mrf.mxu3  ;;  %v7229_v4 = vpop.f32.mrf.mxu2 }
  0xc8   : > { %1248 = vmatmul.bf16.gmra.mxu1 %v1160_v51  ;;  %1727 = vmatmul.bf16.gmra.mxu0 %v1642_v52 }
  0xcb   : > { %1445 = vmatmul.bf16.gmra.mxu2 %v1357_v48  ;;  %1585 = vmatmul.bf16.gmra.mxu3 %v1503_v58 }
  0xcd   : > { %v7225_v34 = vpop.f32.mrf.mxu0  ;;  %v7227_v59 = vpop.f32.mrf.mxu1 }
  0xce   : > { %v927_v3 = vpop.f32.mrf.mxu3 }
  0xd5   : > { %v574_v11 = vpop.f32.mrf.mxu1  ;;  %v1041_v37 = vpop.f32.mrf.mxu0 }
  0xd6   : > { %v575_v17 = vadd.f32 %v574_v11, %v7199_v21  ;;  %v929_v18 = vpop.f32.mrf.mxu3 }
  0xd8   : > { %1253 = vmatmul.bf16.gmra.mxu1 %v1168_v12  ;;  %1732 = vmatmul.bf16.gmra.mxu0 %v1646_v13 }
  0xdb   : > { %1450 = vmatmul.bf16.gmra.mxu2 %v1365_v10 }
  0xdd   : > { %v576_v22 = vpop.f32.mrf.mxu1  ;;  %v1043_v27 = vpop.f32.mrf.mxu0 }
  0xde   : > { %v716_v19 = vpop.f32.mrf.mxu2  ;;  %v577_v41 = vadd.f32 %v576_v22, %v7209_v36  ;;  %v932_v43 = vpop.f32.mrf.mxu3 }
  0xdf   : > { %v741_v23 = vadd.f32 %v716_v19, %v575_v17 }
  0xe1   : > { %v947_v15 = vadd.f32 %v922_v29, %v741_v23  ;;  %v1373_v29 = vsel %vm1132_vm4, %v1368_v28, %v1372_v42 }
  0xe3   : > { %v7236_v21 = vadd.f32 %v1041_v37, %v947_v15 }
  0xe5   : > { %v579_v51 = vpop.f32.mrf.mxu1  ;;  %v1046_v52 = vpop.f32.mrf.mxu0 }
  0xe6   : > { %v718_v44 = vpop.f32.mrf.mxu2  ;;  %v580_v36 = vadd.f32 %v579_v51, %v7214_v49  ;;  %v934_v57 = vpop.f32.mrf.mxu3 }
  0xe7   : > { %v742_v48 = vadd.f32 %v718_v44, %v577_v41 }
  0xe8   : > { %1258 = vmatmul.bf16.gmra.mxu1 %v1176_v53  ;;  %1737 = vmatmul.bf16.gmra.mxu0 %v1655_v55 }
  0xe9   : > { %v948_v47 = vadd.f32 %v924_v54, %v742_v48 }
  0xeb   : > { %1455 = vmatmul.bf16.gmra.mxu2 %v1373_v29  ;;  %v7242_v56 = vadd.f32 %v1043_v27, %v948_v47 }
  0xed   : > { %v581_v62 = vpop.f32.mrf.mxu1  ;;  %v1048_v63 = vpop.f32.mrf.mxu0 }
  0xee   : > { %v721_v58 = vpop.f32.mrf.mxu2  ;;  %v582_v54 = vadd.f32 %v581_v62, %v7225_v34  ;;  %v937_v1 = vpop.f32.mrf.mxu3 }
  0xef   : > { %v743_v60 = vadd.f32 %v721_v58, %v580_v36 }
  0xf1   : > { %v949_v61 = vadd.f32 %v927_v3, %v743_v60 }
  0xf3   : > { %v7245_v0 = vadd.f32 %v1046_v52, %v949_v61 }
  0xf5   : > { %v584_v49 = vpop.f32.mrf.mxu1  ;;  %v1051_v7 = vpop.f32.mrf.mxu0 }
  0xf6   : > { %v723_v2 = vpop.f32.mrf.mxu2  ;;  %v585_v8 = vadd.f32 %v584_v49, %v7201_v24  ;;  %v939_v37 = vpop.f32.mrf.mxu3 }
  0xf7   : > { %v744_v5 = vadd.f32 %v723_v2, %v582_v54 }
  0xf9   : > { %v950_v6 = vadd.f32 %v929_v18, %v744_v5  ;;  %v7269_v5 = vld [vmem:[#allocation5] ss:$0 sm:$0xff] }
  0xfb   : > { %v7248_v9 = vadd.f32 %v1048_v63, %v950_v6 }
  0xfd   : > { %v586_v12 = vpop.f32.mrf.mxu1  ;;  %v1053_v13 = vpop.f32.mrf.mxu0 }
  0xfe   : > { %v726_v10 = vpop.f32.mrf.mxu2  ;;  %v587_v34 = vadd.f32 %v586_v12, %v7211_v39  ;;  %v942_v18 = vpop.f32.mrf.mxu3 }
  0xff   : > { %v745_v11 = vadd.f32 %v726_v10, %v585_v8 }
 0x101   : > { %v951_v3 = vadd.f32 %v932_v43, %v745_v11 }
 0x103   : > { %v7251_v14 = vadd.f32 %v1051_v7, %v951_v3 }
 0x105   : > { %v589_v30 = vpop.f32.mrf.mxu1  ;;  %v1056_v20 = vpop.f32.mrf.mxu0 }
 0x106   : > { %v728_v16 = vpop.f32.mrf.mxu2  ;;  %v590_v24 = vadd.f32 %v589_v30, %v7216_v50  ;;  %v944_v39 = vpop.f32.mrf.mxu3 }
 0x107   : > { %v746_v17 = vadd.f32 %v728_v16, %v587_v34  ;;  %v7274_v34 = vld [vmem:[#allocation7] sm:$0xff] }
 0x109   : > { %v952_v19 = vadd.f32 %v934_v57, %v746_v17 }
 0x10b   : > { %v7254_v25 = vadd.f32 %v1053_v13, %v952_v19 }
 0x10d   : > { %v591_v22 = vpop.f32.mrf.mxu1  ;;  %v1058_v27 = vpop.f32.mrf.mxu0 }
 0x10e   : > { %v731_v23 = vpop.f32.mrf.mxu2  ;;  %v592_v32 = vadd.f32 %v591_v22, %v7227_v59  ;;  %v1566_v44 = vpop.f32.mrf.mxu3 }
 0x10f   : > { %v747_v26 = vadd.f32 %v731_v23, %v590_v24 }
 0x111   : > { %v953_v15 = vadd.f32 %v937_v1, %v747_v26 }
 0x113   : > { %v7257_v33 = vadd.f32 %v1056_v20, %v953_v15 }
 0x115   : > { %v594_v28 = vpop.f32.mrf.mxu1  ;;  %v1061_v42 = vpop.f32.mrf.mxu0 }
 0x116   : > { %v733_v35 = vpop.f32.mrf.mxu2  ;;  %v595_v43 = vadd.f32 %v594_v28, %v7220_v31  ;;  %v1568_v53 = vpop.f32.mrf.mxu3 }
 0x117   : > { %v748_v40 = vadd.f32 %v733_v35, %v592_v32 }
 0x119   : > { %v954_v41 = vadd.f32 %v939_v37, %v748_v40 }
 0x11b   : > { %v7260_v50 = vadd.f32 %v1058_v27, %v954_v41 }
 0x11d   : > { %v596_v48 = vpop.f32.mrf.mxu1  ;;  %v1063_v29 = vpop.f32.mrf.mxu0 }
 0x11e   : > { %v736_v45 = vpop.f32.mrf.mxu2  ;;  %v597_v59 = vadd.f32 %v596_v48, %v7229_v4  ;;  %v1571_v63 = vpop.f32.mrf.mxu3 }
 0x11f   : > { %v749_v38 = vadd.f32 %v736_v45, %v595_v43  ;;  %v7284_v45 = vld [vmem:[#allocation7 + $0x10] sm:$0xff] }
 0x121   : > { %v955_v46 = vadd.f32 %v942_v18, %v749_v38  ;;  %v7286_v38 = vld [vmem:[#allocation7 + $0x18] sm:$0xff] }
 0x123   : > { %v7263_v47 = vadd.f32 %v1061_v42, %v955_v46 }
 0x125   : > { %v1239_v36 = vpop.f32.mrf.mxu1  ;;  %v1718_v57 = vpop.f32.mrf.mxu0 }
 0x126   : > { %v738_v51 = vpop.f32.mrf.mxu2  ;;  %v1264_v31 = vadd.f32 %v1239_v36, %v7236_v21  ;;  %v1573_v3 = vpop.f32.mrf.mxu3 }
 0x127   : > { %v750_v52 = vadd.f32 %v738_v51, %v597_v59 }
 0x129   : > { %v956_v55 = vadd.f32 %v944_v39, %v750_v52 }
 0x12b   : > { %v7266_v58 = vadd.f32 %v1063_v29, %v956_v55 }
 0x12d   : > { %v1241_v54 = vpop.f32.mrf.mxu1  ;;  %v1720_v1 = vpop.f32.mrf.mxu0 }
 0x12e   : > { %v1436_v60 = vpop.f32.mrf.mxu2  ;;  %v1265_v4 = vadd.f32 %v1241_v54, %v7242_v56  ;;  %v7276_v56 = vld [vmem:[#allocation7 + $0x8] sm:$0xff]  ;;  %v1576_v27 = vpop.f32.mrf.mxu3 }
 0x12f   : > { %v1461_v61 = vadd.f32 %v1436_v60, %v1264_v31 }
 0x131   : > { %v1591_v62 = vadd.f32 %v1566_v44, %v1461_v61 }
 0x133   : > { %v1743_v2 = vadd.f32 %v1718_v57, %v1591_v62 }
 0x135   : > { %v1757_v7 = vadd.f32 %v7269_v5, %v1743_v2  ;;  %v1244_v10 = vpop.f32.mrf.mxu1  ;;  %v1723_v21 = vpop.f32.mrf.mxu0 }
 0x136   : > { %v1438_v6 = vpop.f32.mrf.mxu2  ;;  %v1266_v37 = vadd.f32 %v1244_v10, %v7245_v0  ;;  %v1578_v29 = vpop.f32.mrf.mxu3 }
 0x137   : > { %v1462_v49 = vadd.f32 %v1438_v6, %v1265_v4  ;;  %v1767_v12 = vmax.f32 %v1757_v7, 0.0  ;;  %v7294_v7 = vld [vmem:[#allocation7 + $0x20] sm:$0xff] }
 0x139   : > { %v1592_v8 = vadd.f32 %v1568_v53, %v1462_v49  ;;  %v1777_v18 = vmul.f32 %v1767_v12, %v7274_v34 }
 0x13b   : > { %v1744_v11 = vadd.f32 %v1720_v1, %v1592_v8  ;;  %v7296_v8 = vld [vmem:[#allocation7 + $0x28] sm:$0xff] }
 0x13d   : > { %v1758_v13 = vadd.f32 %v7269_v5, %v1744_v11  ;;  %v1246_v24 = vpop.f32.mrf.mxu1  ;;  %v1725_v23 = vpop.f32.mrf.mxu0 }
 0x13e   : > { %v1441_v16 = vpop.f32.mrf.mxu2  ;;  %v1267_v0 = vadd.f32 %v1246_v24, %v7248_v9 }
 0x13f   : > { %v1768_v17 = vmax.f32 %v1758_v13, 0.0  ;;  %v1463_v19 = vadd.f32 %v1441_v16, %v1266_v37 }
 0x141   : > { %v1778_v30 = vmul.f32 %v1768_v17, %v7276_v56  ;;  %v1593_v20 = vadd.f32 %v1571_v63, %v1463_v19  ;;  %v1581_v63 = vpop.f32.mrf.mxu3 }
 0x143   : > { %v6598_v26 = vpack.c.bf16 %v1778_v30, %v1777_v18  ;;  %v1745_v15 = vadd.f32 %v1723_v21, %v1593_v20 }
 0x145   : > { %6695 = vst [vmem:[#allocation2 + $0x8] sm:$0xff] %v6598_v26   ;;  %v1759_v39 = vadd.f32 %v7269_v5, %v1745_v15  ;;  %v1249_v40 = vpop.f32.mrf.mxu1  ;;  %v1728_v41 = vpop.f32.mrf.mxu0 }
 0x146   : > { %v1443_v22 = vpop.f32.mrf.mxu2  ;;  %v1268_v42 = vadd.f32 %v1249_v40, %v7251_v14 }
 0x147   : > { %v1464_v32 = vadd.f32 %v1443_v22, %v1267_v0  ;;  %v1769_v43 = vmax.f32 %v1759_v39, 0.0 }
 0x149   : > { %v1594_v35 = vadd.f32 %v1573_v3, %v1464_v32  ;;  %v1779_v59 = vmul.f32 %v1769_v43, %v7284_v45  ;;  %v1583_v16 = vpop.f32.mrf.mxu3  ;;  %v7306_v32 = vld [vmem:[#allocation7 + $0x38] sm:$0xff] }
 0x14b   : > { %v1746_v28 = vadd.f32 %v1725_v23, %v1594_v35 }
 0x14d   : > { %v1760_v44 = vadd.f32 %v7269_v5, %v1746_v28  ;;  %v1251_v53 = vpop.f32.mrf.mxu1  ;;  %v1730_v55 = vpop.f32.mrf.mxu0 }
 0x14e   : > { %v1446_v9 = vpop.f32.mrf.mxu2  ;;  %v1269_v14 = vadd.f32 %v1251_v53, %v7254_v25 }
 0x14f   : > { %v1770_v46 = vmax.f32 %v1760_v44, 0.0  ;;  %v1465_v48 = vadd.f32 %v1446_v9, %v1268_v42 }
 0x151   : > { %v1780_v51 = vmul.f32 %v1770_v46, %v7286_v38  ;;  %v1595_v52 = vadd.f32 %v1576_v27, %v1465_v48  ;;  %v7304_v27 = vld [vmem:[#allocation7 + $0x30] sm:$0xff] }
 0x153   : > { %v6603_v36 = vpack.c.bf16 %v1780_v51, %v1779_v59  ;;  %v1747_v57 = vadd.f32 %v1728_v41, %v1595_v52 }
 0x155   : > { %6696 = vst [vmem:[#allocation2 + $0x10] sm:$0xff] %v6603_v36   ;;  %v1761_v61 = vadd.f32 %v7269_v5, %v1747_v57  ;;  %v1254_v54 = vpop.f32.mrf.mxu1  ;;  %v1733_v2 = vpop.f32.mrf.mxu0  ;;  %v7313_v57 = vld [vmem:[#allocation7 + $0x40] sm:$0xff] }
 0x156   : > { %v1448_v31 = vpop.f32.mrf.mxu2  ;;  %v1270_v4 = vadd.f32 %v1254_v54, %v7257_v33 }
 0x157   : > { %v1466_v60 = vadd.f32 %v1448_v31, %v1269_v14  ;;  %v1771_v6 = vmax.f32 %v1761_v61, 0.0  ;;  %v7315_v31 = vld [vmem:[#allocation7 + $0x48] sm:$0xff] }
 0x159   : > { %v1596_v62 = vadd.f32 %v1578_v29, %v1466_v60  ;;  %v1781_v11 = vmul.f32 %v1771_v6, %v7294_v7 }
 0x15b   : > { %v1748_v1 = vadd.f32 %v1730_v55, %v1596_v62 }
 0x15d   : > { %v1762_v49 = vadd.f32 %v7269_v5, %v1748_v1  ;;  %v1256_v12 = vpop.f32.mrf.mxu1  ;;  %v1735_v19 = vpop.f32.mrf.mxu0 }
 0x15e   : > { %v1451_v25 = vpop.f32.mrf.mxu2  ;;  %v1271_v33 = vadd.f32 %v1256_v12, %v7260_v50  ;;  %v1586_v50 = vpop.f32.mrf.mxu3 }
 0x15f   : > { %v1772_v10 = vmax.f32 %v1762_v49, 0.0  ;;  %v1467_v21 = vadd.f32 %v1451_v25, %v1270_v4 }
 0x161   : > { %v1782_v37 = vmul.f32 %v1772_v10, %v7296_v8  ;;  %v1597_v3 = vadd.f32 %v1581_v63, %v1467_v21 }
 0x163   : > { %v6608_v13 = vpack.c.bf16 %v1782_v37, %v1781_v11  ;;  %v1749_v17 = vadd.f32 %v1733_v2, %v1597_v3 }
 0x165   : > { %6697 = vst [vmem:[#allocation2 + $0x18] sm:$0xff] %v6608_v13   ;;  %v1763_v20 = vadd.f32 %v7269_v5, %v1749_v17  ;;  %v1259_v23 = vpop.f32.mrf.mxu1  ;;  %v1738_v41 = vpop.f32.mrf.mxu0 }
 0x166   : > { %v1453_v18 = vpop.f32.mrf.mxu2  ;;  %v1272_v0 = vadd.f32 %v1259_v23, %v7263_v47  ;;  %v1588_v51 = vpop.f32.mrf.mxu3 }
 0x167   : > { %v1468_v30 = vadd.f32 %v1453_v18, %v1271_v33  ;;  %v1773_v15 = vmax.f32 %v1763_v20, 0.0 }
 0x169   : > { %v1598_v24 = vadd.f32 %v1583_v16, %v1468_v30  ;;  %v1783_v28 = vmul.f32 %v1773_v15, %v7304_v27 }
 0x16b   : > { %v1750_v26 = vadd.f32 %v1735_v19, %v1598_v24 }
 0x16d   : > { %v1764_v22 = vadd.f32 %v7269_v5, %v1750_v26  ;;  %v1261_v44 = vpop.f32.mrf.mxu1  ;;  %v1740_v53 = vpop.f32.mrf.mxu0 }
 0x16e   : > { %v1456_v39 = vpop.f32.mrf.mxu2  ;;  %v1273_v46 = vadd.f32 %v1261_v44, %v7266_v58 }
 0x16f   : > { %v1774_v35 = vmax.f32 %v1764_v22, 0.0  ;;  %v1469_v40 = vadd.f32 %v1456_v39, %v1272_v0 }
 0x171   : > { %v1784_v42 = vmul.f32 %v1774_v35, %v7306_v32  ;;  %v1599_v43 = vadd.f32 %v1586_v50, %v1469_v40 }
 0x173   : > { %v6613_v9 = vpack.c.bf16 %v1784_v42, %v1783_v28  ;;  %v1751_v47 = vadd.f32 %v1738_v41, %v1599_v43 }
 0x175   : > { %6698 = vst [vmem:[#allocation2 + $0x20] sm:$0xff] %v6613_v9   ;;  %v1765_v48 = vadd.f32 %v7269_v5, %v1751_v47 }
 0x176   : > { %v1458_v29 = vpop.f32.mrf.mxu2 }
 0x177   : > { %v1470_v59 = vadd.f32 %v1458_v29, %v1273_v46  ;;  %v1775_v36 = vmax.f32 %v1765_v48, 0.0 }
 0x179   : > { %v1600_v52 = vadd.f32 %v1588_v51, %v1470_v59  ;;  %v1785_v61 = vmul.f32 %v1775_v36, %v7313_v57 }
 0x17b   : > { %v1752_v55 = vadd.f32 %v1740_v53, %v1600_v52 }
 0x17d   : > { %v1766_v14 = vadd.f32 %v7269_v5, %v1752_v55 }
 0x17f   : > { %v1776_v60 = vmax.f32 %v1766_v14, 0.0 }
 0x181   : > { %v1786_v58 = vmul.f32 %v1776_v60, %v7315_v31 }
 0x183   : > { %v6618_v62 = vpack.c.bf16 %v1786_v58, %v1785_v61 }
 0x185   : > { %6699 = vst [vmem:[#allocation2 + $0x28] sm:$0xff] %v6618_v62  }
 0x186 LB: >> { %s6408_s24 = smul.u32 576, %s6993_s19  ;;  %v7333_v6 = vld [vmem:[#allocation2 + $0x10] sm:$0xf]  ;;  %v7335_v49 = vld [vmem:[#allocation2 + $0x14] sm:$0xf]  ;;  %s3287_s26 = scalar_lea.vmem [#allocation5], %s6993_s19  ;;  %s6993_s19 = sphi %s7319_s19, %s1812_s19  }
 0x187   : >> { %v7337_v25 = vld [vmem:[#allocation2 + $0x18] sm:$0xf]  ;;  %v7339_v10 = vld [vmem:[#allocation2 + $0x1c] sm:$0xf]  ;;  %v7343_v37 = vld [vmem:[#allocation2 + $0x8] sm:$0xf]  ;;  %v1892_v3 = vunpack.c.l.b16 %v7333_v6  ;;  %v1893_v12 = vunpack.c.l.b16 %v7335_v49 }
 0x188   : >> { %s7325_s25 = scalar_lea.vmem [#allocation3], %s6408_s24  ;;  %v1894_v13 = vunpack.c.l.b16 %v7337_v25  ;;  %v1895_v33 = vunpack.c.l.b16 %v7339_v10  ;;  %v7349_v16 = vld [vmem:[#allocation2 + $0xc] sm:$0xf]  ;;  %v1834_v17 = vld [vmem:[#allocation2 + $0x4] sm:$0xf]  ;;  %v1890_v30 = vunpack.c.l.b16 %v7343_v37  ;;  %s1812_s19 = sadd.s32 1, %s6993_s19  }
 0x189   : >> { %v6424_v5 = vld [vmem:[%s7325_s25 + $0x78] sm:$0xff]  ;;  %v6423_v54 = vld [vmem:[%s7325_s25 + $0x70] sm:$0xff]  ;;  %v6422_v4 = vld [vmem:[%s7325_s25 + $0x68] sm:$0xff]  ;;  %v1889_v18 = vunpack.c.l.b16 %v1834_v17  ;;  %v1891_v20 = vunpack.c.l.b16 %v7349_v16  ;;  %v7359_v0 = vpack.c.b16 %v1893_v12, %v1892_v3  ;;  %p1809_p7 = scmp.ge.s32.totalorder %s1812_s19, 7  }
 0x18a   : >> { %v6416_v63 = vld [vmem:[%s7325_s25 + $0x38] sm:$0xff]  ;;  %6779 = vmatpush.bf16.msra.mxu2 %v6424_v5  ;;  %v6415_v1 = vld [vmem:[%s7325_s25 + $0x30] sm:$0xff]  ;;  %1969 = vmatpush.bf16.msra.mxu0 %v6424_v5  ;;  %v6414_v2 = vld [vmem:[%s7325_s25 + $0x28] sm:$0xff]  ;;  %v7365_v15 = vpack.c.b16 %v1895_v33, %v1894_v13 }
 0x18b   : >> { %6787 = vmatpush.bf16.msra.mxu3 %v6416_v63  ;;  %2112 = vmatpush.bf16.msra.mxu1 %v6416_v63  ;;  %v6421_v21 = vld [vmem:[%s7325_s25 + $0x60] sm:$0xff]  ;;  %v6420_v23 = vld [vmem:[%s7325_s25 + $0x58] sm:$0xff]  ;;  %v7371_v50 = vpack.c.b16 %v1891_v20, %v1890_v30  ;;  %v6419_v35 = vld [vmem:[%s7325_s25 + $0x50] sm:$0xff]  ;;  %v2024_v41 = vshrl.u32 %v7359_v0, 16  ;;  %v2027_v28 = vshll.u32 %v7359_v0, 16  ;;  %v1908_v60 = vrot.slane %v7359_v0, 3 }
 0x18c   : >> { %v6413_v11 = vld [vmem:[%s7325_s25 + $0x20] sm:$0xff]  ;;  %v6412_v26 = vld [vmem:[%s7325_s25 + $0x18] sm:$0xff]  ;;  %v6411_v40 = vld [vmem:[%s7325_s25 + $0x10] sm:$0xff]  ;;  %v2033_v42 = vshrl.u32 %v7365_v15, 16  ;;  %v2036_v43 = vshll.u32 %v7365_v15, 16  ;;  %v1910_v61 = vrot.slane %v7365_v15, 3 }
 0x18d   : >> { %v1833_v19 = vld [vmem:[#allocation2] sm:$0xc]  ;;  %v2015_v46 = vshrl.u32 %v7371_v50, 16  ;;  %v2018_v48 = vshll.u32 %v7371_v50, 16  ;;  %v6418_v29 = vld [vmem:[%s7325_s25 + $0x48] sm:$0xff]  ;;  %v2026_v51 = vrot.slane %v2024_v41, 2 }
 0x18e   : >> { %6780 = vmatpush.bf16.msra.mxu2 %v6423_v54  ;;  %1970 = vmatpush.bf16.msra.mxu0 %v6423_v54  ;;  %v2004_v24 = vunpack.c.l.b16 %v1833_v19  ;;  %v1856_v22 = vld [vmem:[#allocation2] sm:$0x8]  ;;  %v6410_v59 = vld [vmem:[%s7325_s25 + $0x8] sm:$0xff]  ;;  %v2029_v52 = vrot.slane %v2027_v28, 3  ;;  %v2035_v53 = vrot.slane %v2033_v42, 2  ;;  %v2038_v55 = vrot.slane %v2036_v43, 3 }
 0x18f   : >> { %6788 = vmatpush.bf16.msra.mxu3 %v6415_v1  ;;  %2113 = vmatpush.bf16.msra.mxu1 %v6415_v1  ;;  %v1888_v44 = vunpack.c.l.b16 %v1856_v22  ;;  %v7391_v36 = vld [vmem:[#allocation2 + $0x20] sm:$0xf]  ;;  %v7393_v14 = vld [vmem:[#allocation2 + $0x24] sm:$0xf]  ;;  %v2017_v63 = vrot.slane %v2015_v46, 2  ;;  %v2020_v54 = vrot.slane %v2018_v48, 3 }
 0x190   : >> { %v2005_v39 = vpack.c.b16 %v1889_v18, %v2004_v24  ;;  %v6417_v1 = vld [vmem:[%s7325_s25 + $0x40] sm:$0xff]  ;;  %v1897_v17 = vunpack.c.l.b16 %v7393_v14  ;;  %v6432_v19 = vld [vmem:[%s7325_s25 + $0xb8] sm:$0xff] }
 0x191   : >> { %v7397_v58 = vpack.c.b16 %v1889_v18, %v1888_v44  ;;  %v6440_v18 = vld [vmem:[%s7325_s25 + $0xf8] sm:$0xff]  ;;  %v7415_v22 = vor.u32 %v2020_v54, %v2017_v63  ;;  %v6438_v63 = vld [vmem:[%s7325_s25 + $0xe8] sm:$0xff] }
 0x192   : >> { %6781 = vmatpush.bf16.msra.mxu2 %v6422_v4  ;;  %1971 = vmatpush.bf16.msra.mxu0 %v6422_v4  ;;  %v2007_v9 = vshrl.u32 %v2005_v39, 16  ;;  %v2010_v47 = vshll.u32 %v2005_v39, 16  ;;  %v6409_v4 = vld [vmem:[%s7325_s25] sm:$0xff]  ;;  %v1911_v39 = vsel %vm356_vm0, %v1908_v60, %v1910_v61  ;;  %v6448_v44 = vld [vmem:[%s7325_s25 + $0x138] sm:$0xff] }
 0x193   : >> { %6789 = vmatpush.bf16.msra.mxu3 %v6414_v2  ;;  %2114 = vmatpush.bf16.msra.mxu1 %v6414_v2  ;;  %v7405_v2 = vor.u32 %v2029_v52, %v2026_v51  ;;  %v1905_v24 = vrot.slane %v7397_v58, 3 }
 0x194   : >> { %v2009_v62 = vrot.slane %v2007_v9, 2  ;;  %v2012_v5 = vrot.slane %v2010_v47, 3  ;;  %v6461_v9 = vld [vmem:[%s7325_s25 + $0x178] sm:$0xff]  ;;  %v6431_v47 = vld [vmem:[%s7325_s25 + $0xb0] sm:$0xff] }
 0x196   : >> { %6782 = vmatpush.bf16.msra.mxu2 %v6421_v21  ;;  %1972 = vmatpush.bf16.msra.mxu0 %v6421_v21  ;;  %v7407_v21 = vor.u32 %v2038_v55, %v2035_v53  ;;  %v6447_v55 = vld [vmem:[%s7325_s25 + $0x130] sm:$0xff] }
 0x197   : >> { %6790 = vmatpush.bf16.msra.mxu3 %v6413_v11  ;;  %2115 = vmatpush.bf16.msra.mxu1 %v6413_v11  ;;  %v1896_v11 = vunpack.c.l.b16 %v7391_v36 }
 0x19a   : >> { %6783 = vmatpush.bf16.msra.mxu2 %v6420_v23  ;;  %1973 = vmatpush.bf16.msra.mxu0 %v6420_v23  ;;  %v1906_v23 = vrot.slane %v7371_v50, 3 }
 0x19b   : >> { %6791 = vmatpush.bf16.msra.mxu3 %v6412_v26  ;;  %2116 = vmatpush.bf16.msra.mxu1 %v6412_v26  ;;  %v2013_v26 = vor.u32 %v2012_v5, %v2009_v62  ;;  %v6460_v62 = vld [vmem:[%s7325_s25 + $0x170] sm:$0xff]  ;;  %v6430_v5 = vld [vmem:[%s7325_s25 + $0xa8] sm:$0xff] }
 0x19d   : >> { %v2022_v51 = vsel %vm458_vm2, %v2013_v26, %v7415_v22  ;;  %v1835_v26 = vld [vmem:[#allocation2 + $0x28] sm:$0x7] }
 0x19e   : >> { %6784 = vmatpush.bf16.msra.mxu2 %v6419_v35  ;;  %1974 = vmatpush.bf16.msra.mxu0 %v6419_v35  ;;  %v2040_v35 = vsel %vm458_vm2, %v7405_v2, %v7407_v21 }
 0x19f   : >> { %6792 = vmatpush.bf16.msra.mxu3 %v6411_v40  ;;  %2117 = vmatpush.bf16.msra.mxu1 %v6411_v40  ;;  %v7429_v40 = vpack.c.b16 %v1897_v17, %v1896_v11 }
 0x1a1   : >> { %v2042_v52 = vshrl.u32 %v7429_v40, 16  ;;  %v2045_v53 = vshll.u32 %v7429_v40, 16 }
 0x1a2   : >> { %6785 = vmatpush.bf16.msra.mxu2 %v6418_v29  ;;  %1975 = vmatpush.bf16.msra.mxu0 %v6418_v29  ;;  %v6439_v29 = vld [vmem:[%s7325_s25 + $0xf0] sm:$0xff] }
 0x1a3   : >> { %6793 = vmatpush.bf16.msra.mxu3 %v6410_v59  ;;  %2118 = vmatpush.bf16.msra.mxu1 %v6410_v59  ;;  %v1907_v59 = vsel %vm356_vm0, %v1905_v24, %v1906_v23  ;;  %v2044_v54 = vrot.slane %v2042_v52, 2  ;;  %v6437_v24 = vld [vmem:[%s7325_s25 + $0xe0] sm:$0xff] }
 0x1a6   : >> { %6786 = vmatpush.bf16.msra.mxu2 %v6417_v1  ;;  %1976 = vmatpush.bf16.msra.mxu0 %v6417_v1  ;;  %v2047_v1 = vrot.slane %v2045_v53, 3 }
 0x1a7   : >> { %6794 = vmatpush.bf16.msra.mxu3 %v6409_v4  ;;  %2119 = vmatpush.bf16.msra.mxu1 %v6409_v4  ;;  %v6446_v4 = vld [vmem:[%s7325_s25 + $0x128] sm:$0xff] }
 0x1a9   : >> { %1987 = vmatmul.bf16.vlgmr.msra.gmra.mxu2 %v1911_v39  ;;  %1977 = vmatmul.bf16.vlgmr.msra.gmra.mxu0 %v1907_v59  ;;  %v1912_v39 = vrot.slane %v7429_v40, 3  ;;  %v6436_v59 = vld [vmem:[%s7325_s25 + $0xd8] sm:$0xff] }
 0x1aa   : >> { %2256 = vmatpush.bf16.msrb.mxu2 %v6432_v19  ;;  %2130 = vmatmul.bf16.vlgmr.msra.gmra.mxu3 %v2040_v35  ;;  %v6459_v19 = vld [vmem:[%s7325_s25 + $0x168] sm:$0xff]  ;;  %v7455_v35 = vor.u32 %v2047_v1, %v2044_v54  ;;  %v6427_v54 = vld [vmem:[%s7325_s25 + $0x90] sm:$0xff] }
 0x1ab   : >> { %2439 = vmatpush.bf16.msrb.mxu3 %v6440_v18  ;;  %2557 = vmatpush.bf16.msrb.mxu0 %v6448_v44  ;;  %v6429_v18 = vld [vmem:[%s7325_s25 + $0xa0] sm:$0xff]  ;;  %v6435_v1 = vld [vmem:[%s7325_s25 + $0xd0] sm:$0xff] }
 0x1ac   : >> { %2757 = vmatpush.bf16.msrb.mxu1 %v6461_v9  ;;  %v6445_v44 = vld [vmem:[%s7325_s25 + $0x120] sm:$0xff]  ;;  %v1898_v9 = vunpack.c.l.b16 %v1835_v26  ;;  %v6443_v26 = vld [vmem:[%s7325_s25 + $0x110] sm:$0xff] }
 0x1ad   : >> { %2120 = vmatmul.bf16.vlgmr.msra.gmra.mxu1 %v2022_v51  ;;  %v1913_v51 = vsel %vm356_vm0, %v1910_v61, %v1912_v39  ;;  %v1909_v61 = vsel %vm356_vm0, %v1906_v23, %v1908_v60  ;;  %v6426_v60 = vld [vmem:[%s7325_s25 + $0x88] sm:$0xff] }
 0x1ae   : >> { %2257 = vmatpush.bf16.msrb.mxu2 %v6431_v47  ;;  %v6458_v47 = vld [vmem:[%s7325_s25 + $0x160] sm:$0xff]  ;;  %v6449_v23 = vld [vmem:[#allocation2 + $0x8] sm:$0xff] }
 0x1af   : >> { %2440 = vmatpush.bf16.msrb.mxu3 %v6439_v29  ;;  %2558 = vmatpush.bf16.msrb.mxu0 %v6447_v55  ;;  %v6428_v29 = vld [vmem:[%s7325_s25 + $0x98] sm:$0xff]  ;;  %v2049_v55 = vsel %vm458_vm2, %v7407_v21, %v7455_v35  ;;  %v2031_v21 = vsel %vm458_vm2, %v7415_v22, %v7405_v2  ;;  %v6434_v2 = vld [vmem:[%s7325_s25 + $0xc8] sm:$0xff]  ;;  %v7495_v22 = vld [vmem:[#allocation2 + $0x10] sm:$0xff] }
 0x1b0   : >> { %2758 = vmatpush.bf16.msrb.mxu1 %v6460_v62  ;;  %v7469_v62 = vpack.c.b16 %v1898_v9, %v1898_v9  ;;  %v2663_v9 = vshll.u32 %v6449_v23, 16 }
 0x1b2   : >> { %2258 = vmatpush.bf16.msrb.mxu2 %v6430_v5  ;;  %v6444_v5 = vld [vmem:[%s7325_s25 + $0x118] sm:$0xff] }
 0x1b3   : >> { %2441 = vmatpush.bf16.msrb.mxu3 %v6438_v63  ;;  %2559 = vmatpush.bf16.msrb.mxu0 %v6446_v4  ;;  %v6457_v63 = vld [vmem:[%s7325_s25 + $0x158] sm:$0xff]  ;;  %v2182_v4 = vrot.slane %v2024_v41, 3 }
 0x1b4   : >> { %2759 = vmatpush.bf16.msrb.mxu1 %v6459_v19  ;;  %v2183_v19 = vrot.slane %v2027_v28, 4  ;;  %v2300_v28 = vld [vmem:[#allocation2 + $0x4] sm:$0x8] }
 0x1b6   : >> { %2259 = vmatpush.bf16.msrb.mxu2 %v6429_v18  ;;  %v2051_v18 = vshrl.u32 %v7469_v62, 16  ;;  %v7493_v41 = vor.u32 %v2183_v19, %v2182_v4  ;;  %v2665_v4 = vrot.slane %v2663_v9, 1  ;;  %v2668_v19 = vshll.u32 %v7495_v22, 16 }
 0x1b7   : >> { %2442 = vmatpush.bf16.msrb.mxu3 %v6437_v24  ;;  %2560 = vmatpush.bf16.msrb.mxu0 %v6445_v44  ;;  %v2054_v24 = vshll.u32 %v7469_v62, 16  ;;  %v6456_v44 = vld [vmem:[%s7325_s25 + $0x150] sm:$0xff] }
 0x1b8   : >> { %2760 = vmatpush.bf16.msrb.mxu1 %v6458_v47  ;;  %v2053_v47 = vrot.slane %v2051_v18, 2  ;;  %v1914_v18 = vrot.slane %v7469_v62, 3  ;;  %v6480_v62 = vld [vmem:[%s7325_s25 + $0x1f0] sm:$0xff] }
 0x1b9   : >> { %1992 = vmatmul.bf16.gmra.mxu2 %v1913_v51  ;;  %1982 = vmatmul.bf16.gmra.mxu0 %v1909_v61  ;;  %v6455_v51 = vld [vmem:[%s7325_s25 + $0x148] sm:$0xff]  ;;  %v7507_v61 = vpack.c.b16 %v1894_v13, %v1893_v12  ;;  %v2328_v13 = vpack.c.b16 %v1892_v3, %v1891_v20  ;;  %v2171_v3 = vshrl.u32 %v7397_v58, 16 }
 0x1ba   : >> { %2260 = vmatpush.bf16.msrb.mxu2 %v6428_v29  ;;  %2135 = vmatmul.bf16.gmra.mxu3 %v2049_v55  ;;  %v2056_v29 = vrot.slane %v2054_v24, 3  ;;  %v6425_v55 = vld [vmem:[%s7325_s25 + $0x80] sm:$0xff]  ;;  %v1915_v9 = vsel %vm356_vm0, %v1912_v39, %v1914_v18  ;;  %v2179_v18 = vrot.slane %v2018_v48, 4 }
 0x1bb   : >> { %2443 = vmatpush.bf16.msrb.mxu3 %v6436_v59  ;;  %2561 = vmatpush.bf16.msrb.mxu0 %v6444_v5  ;;  %v6442_v59 = vld [vmem:[%s7325_s25 + $0x108] sm:$0xff]  ;;  %v6433_v5 = vld [vmem:[%s7325_s25 + $0xc0] sm:$0xff]  ;;  %v2345_v39 = vshll.u32 %v2328_v13, 16  ;;  %v2354_v48 = vshll.u32 %v7507_v61, 16 }
 0x1bc   : >> { %2761 = vmatpush.bf16.msrb.mxu1 %v6457_v63  ;;  %v2324_v63 = vunpack.c.l.b16 %v2300_v28  ;;  %v2057_v24 = vor.u32 %v2056_v29, %v2053_v47  ;;  %v2670_v28 = vrot.slane %v2668_v19, 1 }
 0x1bd   : >> { %2125 = vmatmul.bf16.gmra.mxu1 %v2031_v21  ;;  %v2661_v21 = vshrl.u32 %v6449_v23, 16 }
 0x1be   : >> { %2261 = vmatpush.bf16.msrb.mxu2 %v6427_v54  ;;  %v6473_v54 = vld [vmem:[%s7325_s25 + $0x1b8] sm:$0xff]  ;;  %v2327_v12 = vpack.c.b16 %v1890_v30, %v2324_v63  ;;  %v2058_v47 = vsel %vm458_vm2, %v7455_v35, %v2057_v24  ;;  %v2174_v30 = vshll.u32 %v7397_v58, 16  ;;  %v2186_v63 = vrot.slane %v2033_v42, 3 }
 0x1bf   : >> { %2444 = vmatpush.bf16.msrb.mxu3 %v6435_v1  ;;  %2562 = vmatpush.bf16.msrb.mxu0 %v6443_v26  ;;  %v6481_v1 = vld [vmem:[%s7325_s25 + $0x1f8] sm:$0xff]  ;;  %v6441_v26 = vld [vmem:[%s7325_s25 + $0x100] sm:$0xff]  ;;  %v2666_v23 = vor.u32 %v2665_v4, %v2661_v21  ;;  %v2187_v58 = vrot.slane %v2036_v43, 4  ;;  %v2173_v4 = vrot.slane %v2171_v3, 3  ;;  %v2347_v43 = vrot.slane %v2345_v39, 4 }
 0x1c0   : >> { %2762 = vmatpush.bf16.msrb.mxu1 %v6456_v44  ;;  %v6454_v44 = vld [vmem:[%s7325_s25 + $0x140] sm:$0xff]  ;;  %v2334_v20 = vshrl.u32 %v2327_v12, 16  ;;  %v2337_v29 = vshll.u32 %v2327_v12, 16  ;;  %v2176_v19 = vrot.slane %v2174_v30, 4  ;;  %v2351_v12 = vshrl.u32 %v7507_v61, 16 }
 0x1c1   : >> { %v2671_v35 = vsel %vm1132_vm4, %v2666_v23, %v2670_v28  ;;  %v7540_v21 = vor.u32 %v2187_v58, %v2186_v63  ;;  %v2356_v30 = vrot.slane %v2354_v48, 4  ;;  %v6478_v63 = vld [vmem:[%s7325_s25 + $0x1e0] sm:$0xff]  ;;  %v6469_v58 = vld [vmem:[%s7325_s25 + $0x198] sm:$0xff]  ;;  %v6467_v48 = vld [vmem:[%s7325_s25 + $0x188] sm:$0xff] }
 0x1c2   : >> { %2262 = vmatpush.bf16.msrb.mxu2 %v6426_v60  ;;  %v6489_v60 = vld [vmem:[%s7325_s25 + $0x238] sm:$0xff]  ;;  %v2336_v24 = vrot.slane %v2334_v20, 3  ;;  %v2339_v42 = vrot.slane %v2337_v29, 4  ;;  %v2353_v3 = vrot.slane %v2351_v12, 3  ;;  %v6476_v12 = vld [vmem:[%s7325_s25 + $0x1d0] sm:$0xff] }
 0x1c3   : >> { %2445 = vmatpush.bf16.msrb.mxu3 %v6434_v2  ;;  %2563 = vmatpush.bf16.msrb.mxu0 %v6442_v59  ;;  %v6472_v2 = vld [vmem:[%s7325_s25 + $0x1b0] sm:$0xff]  ;;  %v2342_v59 = vshrl.u32 %v2328_v13, 16  ;;  %v2177_v13 = vor.u32 %v2176_v19, %v2173_v4 }
 0x1c4   : >> { %2763 = vmatpush.bf16.msrb.mxu1 %v6455_v51  ;;  %v6471_v51 = vld [vmem:[%s7325_s25 + $0x1a8] sm:$0xff] }
 0x1c6   : >> { %2263 = vmatpush.bf16.msrb.mxu2 %v6425_v55  ;;  %v6488_v55 = vld [vmem:[%s7325_s25 + $0x230] sm:$0xff] }
 0x1c7   : >> { %2446 = vmatpush.bf16.msrb.mxu3 %v6433_v5  ;;  %2564 = vmatpush.bf16.msrb.mxu0 %v6441_v26  ;;  %v6479_v5 = vld [vmem:[%s7325_s25 + $0x1e8] sm:$0xff]  ;;  %v2344_v26 = vrot.slane %v2342_v59, 3 }
 0x1c8   : >> { %2764 = vmatpush.bf16.msrb.mxu1 %v6454_v44  ;;  %v6470_v44 = vld [vmem:[%s7325_s25 + $0x1a0] sm:$0xff] }
 0x1c9   : >> { %1997 = vmatmul.bf16.gmra.mxu2 %v1915_v9  ;;  %v2348_v23 = vor.u32 %v2347_v43, %v2344_v26  ;;  %v2672_v9 = vshrl.u32 %v7495_v22, 16  ;;  %v6468_v43 = vld [vmem:[%s7325_s25 + $0x190] sm:$0xff] }
 0x1ca   : >> { %2957 = vmatpush.bf16.msra.mxu2 %v6473_v54  ;;  %2140 = vmatmul.bf16.gmra.mxu3 %v2058_v47  ;;  %v2178_v54 = vrot.slane %v2015_v46, 3  ;;  %v6451_v46 = vld [vmem:[#allocation2 + $0x18] sm:$0xff] }
 0x1cb   : >> { %3089 = vmatpush.bf16.msra.mxu3 %v6481_v1  ;;  %3243 = vmatpush.bf16.msra.mxu0 %v6489_v60  ;;  %v6487_v1 = vld [vmem:[%s7325_s25 + $0x228] sm:$0xff]  ;;  %v7549_v60 = vsel %vm620_vm1, %v7493_v41, %v7540_v21  ;;  %v2676_v47 = vshll.u32 %v6451_v46, 16  ;;  %v2674_v39 = vor.u32 %v2672_v9, %v2670_v28  ;;  %v6477_v28 = vld [vmem:[%s7325_s25 + $0x1d8] sm:$0xff]  ;;  %v2680_v4 = vshrl.u32 %v6451_v46, 16  ;;  %v6484_v46 = vld [vmem:[%s7325_s25 + $0x210] sm:$0xff] }
 0x1cc   : >> { %2565 = vmatmul.bf16.vlgmr.msrb.gmra.mxu0 %v7371_v50  ;;  %v2180_v50 = vor.u32 %v2179_v18, %v2178_v54  ;;  %v6486_v54 = vld [vmem:[%s7325_s25 + $0x220] sm:$0xff] }
 0x1cd   : >> { %2765 = vmatmul.bf16.vlgmr.msrb.gmra.mxu1 %v2671_v35  ;;  %v2678_v35 = vrot.slane %v2676_v47, 1 }
 0x1ce   : >> { %2958 = vmatpush.bf16.msra.mxu2 %v6472_v2  ;;  %v2330_v2 = vpack.c.b16 %v1896_v11, %v1895_v33  ;;  %v2181_v33 = vsel %vm620_vm1, %v2177_v13, %v2180_v50  ;;  %v6475_v13 = vld [vmem:[%s7325_s25 + $0x1c8] sm:$0xff] }
 0x1cf   : >> { %3090 = vmatpush.bf16.msra.mxu3 %v6480_v62  ;;  %3244 = vmatpush.bf16.msra.mxu0 %v6488_v55  ;;  %v2340_v62 = vor.u32 %v2339_v42, %v2336_v24  ;;  %v2682_v18 = vor.u32 %v2680_v4, %v2678_v35  ;;  %v2185_v42 = vsel %vm620_vm1, %v2180_v50, %v7493_v41  ;;  %v6453_v41 = vld [vmem:[#allocation2 + $0x28] sm:$0xff] }
 0x1d0   : >> { %v2360_v20 = vshrl.u32 %v2330_v2, 16  ;;  %v2363_v61 = vshll.u32 %v2330_v2, 16  ;;  %v7581_v50 = vld [vmem:[#allocation2 + $0x28] sm:$0xf] }
 0x1d1   : >> { %v2349_v11 = vsel %vm620_vm1, %v2340_v62, %v2348_v23  ;;  %8177 = vst [vmem:[#allocation10_spill] sm:$0xff] %v7581_v50  ;;  %v2692_v62 = vshll.u32 %v6453_v41, 16 }
 0x1d2   : >> { %2959 = vmatpush.bf16.msra.mxu2 %v6471_v51  ;;  %v2362_v29 = vrot.slane %v2360_v20, 3  ;;  %v2365_v59 = vrot.slane %v2363_v61, 4  ;;  %v2357_v51 = vor.u32 %v2356_v30, %v2353_v3  ;;  %v6466_v30 = vld [vmem:[%s7325_s25 + $0x180] sm:$0xff]  ;;  %v6483_v20 = vld [vmem:[%s7325_s25 + $0x208] sm:$0xff] }
 0x1d3   : >> { %3091 = vmatpush.bf16.msra.mxu3 %v6479_v5  ;;  %3245 = vmatpush.bf16.msra.mxu0 %v6487_v1  ;;  %v2679_v5 = vsel %vm1132_vm4, %v2674_v39, %v2678_v35  ;;  %v6452_v1 = vld [vmem:[#allocation2 + $0x20] sm:$0xff]  ;;  %v2694_v47 = vrot.slane %v2692_v62, 1  ;;  %v2611_v39 = vld [vmem:[#allocation2 + $0x30] sm:$0x1] }
 0x1d4   : >> { %v7560_v22 = vor.u32 %v2365_v59, %v2362_v29  ;;  %v2684_v19 = vshll.u32 %v6452_v1, 16  ;;  %v2358_v26 = vsel %vm620_vm1, %v2348_v23, %v2357_v51  ;;  %v2688_v2 = vshrl.u32 %v6452_v1, 16  ;;  %v6474_v61 = vld [vmem:[%s7325_s25 + $0x1c0] sm:$0xff] }
 0x1d5   : >> { %v2325_v23 = vunpack.c.l.b16 %v7581_v50  ;;  %v2653_v35 = vunpack.c.l.b16 %v2611_v39 }
 0x1d6   : >> { %2960 = vmatpush.bf16.msra.mxu2 %v6470_v44  ;;  %v2367_v55 = vsel %vm620_vm1, %v2357_v51, %v7560_v22  ;;  %v2686_v24 = vrot.slane %v2684_v19, 1  ;;  %v6485_v44 = vld [vmem:[%s7325_s25 + $0x218] sm:$0xff] }
 0x1d7   : >> { %3092 = vmatpush.bf16.msra.mxu3 %v6478_v63  ;;  %3246 = vmatpush.bf16.msra.mxu0 %v6486_v54  ;;  %v7597_v63 = vld [vmem:[#allocation2 + $0x2c] sm:$0xf] }
 0x1d8   : >> { %v2690_v9 = vor.u32 %v2688_v2, %v2686_v24  ;;  %8178 = vst [vmem:[#allocation11_spill] sm:$0xff] %v7597_v63  ;;  %v2326_v19 = vunpack.c.l.b16 %v7597_v63 }
 0x1d9   : >> { %2264 = vmatmul.bf16.vlgmr.msrb.gmra.mxu2 %v2181_v33  ;;  %v6482_v33 = vld [vmem:[%s7325_s25 + $0x200] sm:$0xff] }
 0x1da   : >> { %2447 = vmatmul.bf16.vlgmr.msrb.gmra.mxu3 %v2349_v11  ;;  %2961 = vmatpush.bf16.msra.mxu2 %v6469_v58  ;;  %v2695_v3 = vsel %vm1132_vm4, %v2690_v9, %v2694_v47  ;;  %v2191_v11 = vrot.slane %v2045_v53, 4  ;;  %v2696_v58 = vshrl.u32 %v6453_v41, 16 }
 0x1db   : >> { %3093 = vmatpush.bf16.msra.mxu3 %v6477_v28  ;;  %3247 = vmatpush.bf16.msra.mxu0 %v6485_v44  ;;  %v2503_v44 = vpack.c.b16 %v2326_v19, %v2325_v23 }
 0x1dc   : >> { %2570 = vmatmul.bf16.gmra.mxu0 %v7359_v0  ;;  %v2687_v0 = vsel %vm1132_vm4, %v2682_v18, %v2686_v24  ;;  %v6985_v18 = vld [vmem:[#allocation2 + $0xc] sm:$0xe] }
 0x1dd   : >> { %2770 = vmatmul.bf16.gmra.mxu1 %v2679_v5  ;;  %v2146_v5 = vld [vmem:[#allocation2 + $0x28] sm:$0xf]  ;;  %v2801_v24 = vld [vmem:[#allocation2 + $0xc] sm:$0xff]  }
 0x1de   : >> { %2962 = vmatpush.bf16.msra.mxu2 %v6468_v43  ;;  %v2168_v4 = vunpack.c.l.b16 %v2146_v5  ;;  %v2332_v43 = vpack.c.b16 %v2326_v19, %v2326_v19  ;;  %v2863_v5 = vshll.u32 %v2801_v24, 16 }
 0x1df   : >> { %3094 = vmatpush.bf16.msra.mxu3 %v6476_v12  ;;  %3248 = vmatpush.bf16.msra.mxu0 %v6484_v46 }
 0x1e0   : >> { %v2378_v2 = vshrl.u32 %v2332_v43, 16  ;;  %v2381_v62 = vshll.u32 %v2332_v43, 16  ;;  %v2865_v19 = vrot.slane %v2863_v5, 1 }
 0x1e2   : >> { %2963 = vmatpush.bf16.msra.mxu2 %v6467_v48  ;;  %v7605_v48 = vld [vmem:[#allocation2 + $0x14] sm:$0xff] }
 0x1e3   : >> { %3095 = vmatpush.bf16.msra.mxu3 %v6475_v13  ;;  %3249 = vmatpush.bf16.msra.mxu0 %v6483_v20 }
 0x1e6   : >> { %2964 = vmatpush.bf16.msra.mxu2 %v6466_v30  ;;  %v2383_v30 = vrot.slane %v2381_v62, 4 }
 0x1e7   : >> { %3096 = vmatpush.bf16.msra.mxu3 %v6474_v61  ;;  %3250 = vmatpush.bf16.msra.mxu0 %v6482_v33 }
 0x1e9   : >> { %2269 = vmatmul.bf16.gmra.mxu2 %v2185_v42  ;;  %v6984_v42 = vld [vmem:[#allocation2 + $0xc] sm:$0xf0] }
 0x1ea   : >> { %2452 = vmatmul.bf16.gmra.mxu3 %v2358_v26  ;;  %v6986_v46 = vor.u32 %v6985_v18, %v6984_v42 }
 0x1ec   : >> { %2575 = vmatmul.bf16.gmra.mxu0 %v7365_v15  ;;  %v2331_v15 = vpack.c.b16 %v2325_v23, %v1897_v17  ;;  %v2659_v17 = vpack.c.b16 %v2653_v35, %v2653_v35  ;;  %v3158_v9 = vshrl.u32 %v6986_v46, 16 }
 0x1ed   : >> { %2775 = vmatmul.bf16.gmra.mxu1 %v2687_v0  ;;  %v2169_v0 = vpack.c.b16 %v2168_v4, %v2168_v4  ;;  %v2861_v4 = vshrl.u32 %v2801_v24, 16 }
 0x1ee   : >> { %v2369_v29 = vshrl.u32 %v2331_v15, 16  ;;  %v2372_v59 = vshll.u32 %v2331_v15, 16  ;;  %v2700_v54 = vshll.u32 %v2659_v17, 16  ;;  %v3160_v20 = vrot.slane %v3158_v9, 1 }
 0x1ef   : >> { %v2195_v41 = vshrl.u32 %v2169_v0, 16  ;;  %v2198_v13 = vshll.u32 %v2169_v0, 16 }
 0x1f0   : >> { %v2371_v51 = vrot.slane %v2369_v29, 3  ;;  %v2702_v26 = vrot.slane %v2700_v54, 1 }
 0x1f1   : >> { %v2197_v23 = vrot.slane %v2195_v41, 3  ;;  %v2200_v15 = vrot.slane %v2198_v13, 4 }
 0x1f3   : >> { %v2201_v39 = vor.u32 %v2200_v15, %v2197_v23 }
 0x1f9   : >> { %2274 = vmatmul.bf16.gmra.mxu2 %v7549_v60  ;;  %v2190_v60 = vrot.slane %v2042_v52, 3  ;;  %v2698_v52 = vor.u32 %v2696_v58, %v2694_v47  ;;  %v3161_v47 = vshll.u32 %v6986_v46, 16 }
 0x1fa   : >> { %2457 = vmatmul.bf16.gmra.mxu3 %v2367_v55  ;;  %v2374_v55 = vrot.slane %v2372_v59, 4 }
 0x1fb   : >> { %v2192_v28 = vor.u32 %v2191_v11, %v2190_v60  ;;  %v2703_v12 = vsel %vm1132_vm4, %v2698_v52, %v2702_v26  ;;  %v3163_v61 = vrot.slane %v3161_v47, 2  ;;  %v2866_v52 = vor.u32 %v2865_v19, %v2861_v4 }
 0x1fc   : >> { %2580 = vmatmul.bf16.gmra.mxu0 %v7429_v40  ;;  %v2375_v1 = vor.u32 %v2374_v55, %v2371_v51  ;;  %v7612_v55 = vld [vmem:[#allocation2 + $0x1c] sm:$0xff]  ;;  %v3025_v26 = vrot.slane %v6986_v46, 1 }
 0x1fd   : >> { %2780 = vmatmul.bf16.gmra.mxu1 %v2695_v3  ;;  %v2193_v40 = vsel %vm620_vm1, %v7540_v21, %v2192_v28  ;;  %v2868_v21 = vshll.u32 %v7605_v48, 16  ;;  %v2380_v3 = vrot.slane %v2378_v2, 3  ;;  %v3164_v33 = vor.u32 %v3163_v61, %v3160_v20 }
 0x1fe   : >> { %v2376_v53 = vsel %vm620_vm1, %v7560_v22, %v2375_v1  ;;  %v2872_v22 = vshrl.u32 %v7605_v48, 16  ;;  %v2202_v60 = vsel %vm620_vm1, %v2192_v28, %v2201_v39  ;;  %v2876_v58 = vshll.u32 %v7612_v55, 16 }
 0x1ff   : >> { %v3166_v59 = vrot.slane %v2868_v21, 2  ;;  %v2384_v35 = vor.u32 %v2383_v30, %v2380_v3  ;;  %v2880_v54 = vshrl.u32 %v7612_v55, 16  ;;  %v2870_v28 = vrot.slane %v2868_v21, 1 }
 0x200   : >> { %v3165_v29 = vrot.slane %v2872_v22, 1  ;;  %v3170_v42 = vrot.slane %v2876_v58, 2  ;;  %v2878_v47 = vrot.slane %v2876_v58, 1  ;;  %v3028_v23 = vrot.slane %v7612_v55, 1 }
 0x201   : >> { %v2385_v11 = vsel %vm620_vm1, %v2375_v1, %v2384_v35  ;;  %v3169_v18 = vrot.slane %v2880_v54, 1  ;;  %v3026_v1 = vrot.slane %v7605_v48, 1  ;;  %v2874_v9 = vor.u32 %v2872_v22, %v2870_v28  ;;  %v7639_v35 = vld [vmem:[#allocation2 + $0x2c] sm:$0xff] }
 0x202   : >> { %v3167_v17 = vor.u32 %v3166_v59, %v3165_v29  ;;  %v2882_v58 = vor.u32 %v2880_v54, %v2878_v47 }
 0x203   : >> { %v3027_v0 = vsel %vm1492_vm3, %v3025_v26, %v3026_v1  ;;  %v2879_v61 = vsel %vm1132_vm4, %v2874_v9, %v2878_v47  ;;  %v3029_v29 = vsel %vm1492_vm3, %v3026_v1, %v3028_v23 }
 0x204   : >> { %v3168_v51 = vsel %vm1622_vm5, %v3164_v33, %v3167_v17 }
 0x209   : >> { %2279 = vmatmul.bf16.gmra.mxu2 %v2193_v40  ;;  %v3171_v40 = vor.u32 %v3170_v42, %v3169_v18  ;;  %v3133_v18 = vld [vmem:[#allocation2 + $0x34] sm:$0x3] }
 0x20a   : >> { %2462 = vmatmul.bf16.gmra.mxu3 %v2376_v53  ;;  %v2871_v53 = vsel %vm1132_vm4, %v2866_v52, %v2870_v28  ;;  %v3155_v26 = vunpack.c.l.b16 %v3133_v18 }
 0x20b   : >> { %v3172_v24 = vsel %vm1622_vm5, %v3167_v17, %v3171_v40 }
 0x20c   : >> { %2585 = vmatmul.bf16.gmra.mxu0 %v2503_v44  ;;  %v7622_v44 = vld [vmem:[#allocation2 + $0x24] sm:$0xff]  ;;  %v3156_v54 = vpack.c.b16 %v3155_v26, %v3155_v26 }
 0x20d   : >> { %2785 = vmatmul.bf16.gmra.mxu1 %v2703_v12  ;;  %v2884_v48 = vshll.u32 %v7622_v44, 16  ;;  %v2888_v13 = vshrl.u32 %v7622_v44, 16  ;;  %v3030_v19 = vrot.slane %v7622_v44, 1 }
 0x20f   : >> { %v3173_v62 = vrot.slane %v2888_v13, 1  ;;  %v3174_v21 = vrot.slane %v2884_v48, 2  ;;  %v2886_v4 = vrot.slane %v2884_v48, 1  ;;  %v3185_v48 = vshll.u32 %v3156_v54, 16 }
 0x211   : >> { %v3175_v20 = vor.u32 %v3174_v21, %v3173_v62  ;;  %v2887_v1 = vsel %vm1132_vm4, %v2882_v58, %v2886_v4  ;;  %v3187_v9 = vrot.slane %v3185_v48, 2  ;;  %v2890_v47 = vor.u32 %v2888_v13, %v2886_v4 }
 0x213   : >> { %v3176_v39 = vsel %vm1622_vm5, %v3171_v40, %v3175_v20  ;;  %v3031_v40 = vsel %vm1492_vm3, %v3028_v23, %v3030_v19  ;;  %v3032_v23 = vrot.slane %v7639_v35, 1 }
 0x219   : >> { %2284 = vmatmul.bf16.gmra.mxu2 %v2202_v60  ;;  %v2892_v60 = vshll.u32 %v7639_v35, 16 }
 0x21a   : >> { %2467 = vmatmul.bf16.gmra.mxu3 %v2385_v11  ;;  %v2896_v11 = vshrl.u32 %v7639_v35, 16 }
 0x21b   : >> { %v3178_v5 = vrot.slane %v2892_v60, 2 }
 0x21c   : >> { %3251 = vmatmul.bf16.vlgmr.msra.gmra.mxu0 %v3168_v51  ;;  %v3177_v55 = vrot.slane %v2896_v11, 1 }
 0x21e   : >> { %v3179_v28 = vor.u32 %v3178_v5, %v3177_v55 }
 0x226   : >> { %v7619_v43 = vpop.f32.mrf.mxu0 }
 0x229   : >> { %2965 = vmatmul.bf16.vlgmr.msra.gmra.mxu2 %v2871_v53 }
 0x22a   : >> { %3097 = vmatmul.bf16.vlgmr.msra.gmra.mxu3 %v3027_v0  ;;  %v3180_v0 = vsel %vm1622_vm5, %v3175_v20, %v3179_v28 }
 0x22c   : >> { %v1988_v12 = vpop.f32.mrf.mxu2  ;;  %3256 = vmatmul.bf16.gmra.mxu0 %v3172_v24 }
 0x22d   : >> { %v2131_v41 = vpop.f32.mrf.mxu3 }
 0x22e   : >> { %v7624_v46 = vadd.f32 %v2131_v41, %v1988_v12  ;;  %v7628_v2 = vpop.f32.mrf.mxu0  ;;  %v3182_v41 = vshrl.u32 %v3156_v54, 16 }
 0x230   : >> { %v3184_v21 = vrot.slane %v3182_v41, 1 }
 0x234   : >> { %v1990_v15 = vpop.f32.mrf.mxu2 }
 0x235   : >> { %v2133_v3 = vpop.f32.mrf.mxu3 }
 0x236   : >> { %v7632_v30 = vadd.f32 %v2133_v3, %v1990_v15  ;;  %v7636_v59 = vpop.f32.mrf.mxu0  ;;  %v2894_v15 = vrot.slane %v2892_v60, 1  ;;  %v2811_v3 = vld [vmem:[#allocation2 + $0x34] sm:$0x1] }
 0x237   : >> { %v2853_v55 = vunpack.c.l.b16 %v2811_v3 }
 0x238   : >> { %v2898_v54 = vor.u32 %v2896_v11, %v2894_v15 }
 0x239   : >> { %2970 = vmatmul.bf16.gmra.mxu2 %v2879_v61  ;;  %v2859_v60 = vpack.c.b16 %v2853_v55, %v2853_v55 }
 0x23a   : >> { %3102 = vmatmul.bf16.gmra.mxu3 %v3029_v29  ;;  %v3188_v29 = vor.u32 %v3187_v9, %v3184_v21 }
 0x23b   : >> { %v2900_v26 = vshll.u32 %v2859_v60, 16 }
 0x23c   : >> { %v1993_v22 = vpop.f32.mrf.mxu2  ;;  %3261 = vmatmul.bf16.gmra.mxu0 %v3176_v39  ;;  %v2121_v39 = vpop.f32.mrf.mxu1  ;;  %v3189_v13 = vsel %vm1622_vm5, %v3179_v28, %v3188_v29  ;;  %v6509_v28 = vld [vmem:[%s7325_s25 + $0x78] sm:$0xff] }
 0x23d   : >> { %v2136_v33 = vpop.f32.mrf.mxu3  ;;  %v2122_v35 = vadd.f32 %v2121_v39, %v7619_v43  ;;  %3488 = vmatpush.bf16.msra.mxu1 %v6509_v28  ;;  %v6508_v39 = vld [vmem:[%s7325_s25 + $0x70] sm:$0xff] }
 0x23e   : >> { %v7641_v17 = vadd.f32 %v2136_v33, %v1993_v22  ;;  %v7645_v51 = vpop.f32.mrf.mxu0  ;;  %v2895_v22 = vsel %vm1132_vm4, %v2890_v47, %v2894_v15  ;;  %v3033_v33 = vsel %vm1492_vm3, %v3030_v19, %v3032_v23 }
 0x241   : >> { %3489 = vmatpush.bf16.msra.mxu1 %v6508_v39 }
 0x244   : >> { %v7648_v42 = vpop.f32.mrf.mxu2 }
 0x245   : >> { %v7650_v52 = vpop.f32.mrf.mxu3 }
 0x249   : >> { %2975 = vmatmul.bf16.gmra.mxu2 %v2887_v1  ;;  %v2566_v53 = vpop.f32.mrf.mxu0 }
 0x24a   : >> { %3107 = vmatmul.bf16.gmra.mxu3 %v3031_v40  ;;  %v7668_v40 = vpop.f32.mrf.mxu1 }
 0x24c   : >> { %v1998_v24 = vpop.f32.mrf.mxu2  ;;  %3266 = vmatmul.bf16.gmra.mxu0 %v3180_v0 }
 0x24d   : >> { %v2141_v12 = vpop.f32.mrf.mxu3 }
 0x24e   : >> { %v7655_v44 = vadd.f32 %v2141_v12, %v1998_v24  ;;  %v2902_v24 = vrot.slane %v2900_v26, 1  ;;  %v3034_v12 = vrot.slane %v2859_v60, 1 }
 0x250   : >> { %v2903_v48 = vsel %vm1132_vm4, %v2898_v54, %v2902_v24  ;;  %v3035_v21 = vsel %vm1492_vm3, %v3032_v23, %v3034_v12  ;;  %v6505_v12 = vld [vmem:[%s7325_s25 + $0x58] sm:$0xff] }
 0x251   : >> { %v7657_v62 = vpop.f32.mrf.mxu0 }
 0x252   : >> { %v2126_v9 = vpop.f32.mrf.mxu1 }
 0x253   : >> { %v2127_v11 = vadd.f32 %v2126_v9, %v7636_v59 }
 0x254   : >> { %v7660_v61 = vpop.f32.mrf.mxu2 }
 0x255   : >> { %v7662_v20 = vpop.f32.mrf.mxu3 }
 0x259   : >> { %2980 = vmatmul.bf16.gmra.mxu2 %v2895_v22  ;;  %v2571_v5 = vpop.f32.mrf.mxu0 }
 0x25a   : >> { %3112 = vmatmul.bf16.gmra.mxu3 %v3033_v33 }
 0x25c   : >> { %v2265_v58 = vpop.f32.mrf.mxu2  ;;  %3271 = vmatmul.bf16.gmra.mxu0 %v3189_v13  ;;  %v6507_v13 = vld [vmem:[%s7325_s25 + $0x68] sm:$0xff] }
 0x25d   : >> { %v2448_v4 = vpop.f32.mrf.mxu3  ;;  %v2290_v18 = vadd.f32 %v2265_v58, %v2122_v35  ;;  %3490 = vmatpush.bf16.msra.mxu1 %v6507_v13  ;;  %v6516_v13 = vld [vmem:[%s7325_s25 + $0xb0] sm:$0xff] }
 0x25f   : >> { %v2473_v1 = vadd.f32 %v2448_v4, %v2290_v18  ;;  %v6506_v18 = vld [vmem:[%s7325_s25 + $0x60] sm:$0xff] }
 0x261   : >> { %v7670_v0 = vadd.f32 %v2566_v53, %v2473_v1  ;;  %v7672_v19 = vpop.f32.mrf.mxu0  ;;  %3491 = vmatpush.bf16.msra.mxu1 %v6506_v18 }
 0x264   : >> { %v7675_v41 = vpop.f32.mrf.mxu2 }
 0x265   : >> { %v7677_v43 = vpop.f32.mrf.mxu3  ;;  %3492 = vmatpush.bf16.msra.mxu1 %v6505_v12  ;;  %v6498_v12 = vld [vmem:[%s7325_s25 + $0x20] sm:$0xff] }
 0x269   : >> { %2985 = vmatmul.bf16.gmra.mxu2 %v2903_v48  ;;  %v2576_v53 = vpop.f32.mrf.mxu0 }
 0x26a   : >> { %3117 = vmatmul.bf16.gmra.mxu3 %v3035_v21 }
 0x26c   : >> { %v2270_v47 = vpop.f32.mrf.mxu2 }
 0x26d   : >> { %v2453_v15 = vpop.f32.mrf.mxu3  ;;  %v2292_v3 = vadd.f32 %v2270_v47, %v2127_v11  ;;  %v6501_v11 = vld [vmem:[%s7325_s25 + $0x38] sm:$0xff] }
 0x26e   : >> { %v6517_v47 = vld [vmem:[%s7325_s25 + $0xb8] sm:$0xff]  ;;  %3631 = vmatpush.bf16.msrb.mxu2 %v6501_v11  ;;  %v6504_v11 = vld [vmem:[%s7325_s25 + $0x50] sm:$0xff] }
 0x26f   : >> { %v2475_v29 = vadd.f32 %v2453_v15, %v2292_v3  ;;  %3771 = vmatpush.bf16.msrb.mxu3 %v6517_v47  ;;  %v6497_v47 = vld [vmem:[%s7325_s25 + $0x18] sm:$0xff]  ;;  %3493 = vmatpush.bf16.msra.mxu1 %v6504_v11  ;;  %v6511_v11 = vld [vmem:[%s7325_s25 + $0x88] sm:$0xff] }
 0x271   : >> { %v7683_v22 = vadd.f32 %v2571_v5, %v2475_v29  ;;  %v7685_v33 = vpop.f32.mrf.mxu0 }
 0x273   : >> { %3772 = vmatpush.bf16.msrb.mxu3 %v6516_v13  ;;  %v6525_v13 = vld [vmem:[%s7325_s25 + $0xf8] sm:$0xff] }
 0x274   : >> { %v7687_v55 = vpop.f32.mrf.mxu2  ;;  %3976 = vmatpush.bf16.msrb.mxu0 %v6525_v13  ;;  %v6523_v13 = vld [vmem:[%s7325_s25 + $0xe8] sm:$0xff] }
 0x275   : >> { %v7689_v23 = vpop.f32.mrf.mxu3 }
 0x279   : >> { %v2581_v60 = vpop.f32.mrf.mxu0 }
 0x27c   : >> { %v2275_v59 = vpop.f32.mrf.mxu2 }
 0x27d   : >> { %v2458_v35 = vpop.f32.mrf.mxu3  ;;  %v2294_v58 = vadd.f32 %v2275_v59, %v7624_v46  ;;  %v7703_v46 = vpop.f32.mrf.mxu1  ;;  %v6515_v59 = vld [vmem:[%s7325_s25 + $0xa8] sm:$0xff] }
 0x27e   : >> { %3773 = vmatpush.bf16.msrb.mxu3 %v6515_v59  ;;  %v2124_v59 = vadd.f32 %v7668_v40, %v7628_v2  ;;  %v6502_v2 = vld [vmem:[%s7325_s25 + $0x40] sm:$0xff]  ;;  %v6495_v40 = vld [vmem:[%s7325_s25 + $0x8] sm:$0xff] }
 0x27f   : >> { %v2477_v4 = vadd.f32 %v2458_v35, %v2294_v58 }
 0x281   : >> { %v7694_v5 = vadd.f32 %v2576_v53, %v2477_v4  ;;  %v7696_v26 = vpop.f32.mrf.mxu0 }
 0x284   : >> { %v7698_v1 = vpop.f32.mrf.mxu2 }
 0x285   : >> { %v7700_v54 = vpop.f32.mrf.mxu3  ;;  %v2766_v39 = vpop.f32.mrf.mxu1 }
 0x289   : >> { %v2586_v24 = vpop.f32.mrf.mxu0 }
 0x28c   : >> { %v2280_v28 = vpop.f32.mrf.mxu2 }
 0x28d   : >> { %v2463_v48 = vpop.f32.mrf.mxu3  ;;  %v2296_v21 = vadd.f32 %v2280_v28, %v7641_v17  ;;  %v6500_v17 = vld [vmem:[%s7325_s25 + $0x30] sm:$0xff]  ;;  %v6514_v28 = vld [vmem:[%s7325_s25 + $0xa0] sm:$0xff] }
 0x28e   : >> { %3632 = vmatpush.bf16.msrb.mxu2 %v6500_v17  ;;  %3774 = vmatpush.bf16.msrb.mxu3 %v6514_v28  ;;  %v6513_v17 = vld [vmem:[%s7325_s25 + $0x98] sm:$0xff]  ;;  %v6524_v28 = vld [vmem:[%s7325_s25 + $0xf0] sm:$0xff] }
 0x28f   : >> { %v2479_v53 = vadd.f32 %v2463_v48, %v2296_v21  ;;  %v2768_v48 = vpop.f32.mrf.mxu1  ;;  %3977 = vmatpush.bf16.msrb.mxu0 %v6524_v28 }
 0x291   : >> { %v7706_v9 = vadd.f32 %v2581_v60, %v2479_v53  ;;  %v7710_v15 = vpop.f32.mrf.mxu0  ;;  %v6499_v60 = vld [vmem:[%s7325_s25 + $0x28] sm:$0xff] }
 0x292   : >> { %3633 = vmatpush.bf16.msrb.mxu2 %v6499_v60  ;;  %3775 = vmatpush.bf16.msrb.mxu3 %v6513_v17 }
 0x293   : >> { %3978 = vmatpush.bf16.msrb.mxu0 %v6523_v13 }
 0x294   : >> { %v7712_v3 = vpop.f32.mrf.mxu2 }
 0x295   : >> { %v7714_v29 = vpop.f32.mrf.mxu3 }
 0x296   : >> { %3634 = vmatpush.bf16.msrb.mxu2 %v6498_v12 }
 0x299   : >> { %v3252_v18 = vpop.f32.mrf.mxu0 }
 0x29a   : >> { %3635 = vmatpush.bf16.msrb.mxu2 %v6497_v47  ;;  %v2791_v47 = vadd.f32 %v2766_v39, %v7670_v0 }
 0x29c   : >> { %v2285_v35 = vpop.f32.mrf.mxu2 }
 0x29d   : >> { %v2468_v58 = vpop.f32.mrf.mxu3  ;;  %v2298_v4 = vadd.f32 %v2285_v35, %v7655_v44  ;;  %v6496_v35 = vld [vmem:[%s7325_s25 + $0x10] sm:$0xff] }
 0x29e   : >> { %3636 = vmatpush.bf16.msrb.mxu2 %v6496_v35  ;;  %v6510_v35 = vld [vmem:[%s7325_s25 + $0x80] sm:$0xff] }
 0x29f   : >> { %v2481_v21 = vadd.f32 %v2468_v58, %v2298_v4  ;;  %v6512_v58 = vld [vmem:[%s7325_s25 + $0x90] sm:$0xff]  ;;  %v2291_v4 = vadd.f32 %v7675_v41, %v2124_v59 }
 0x2a0   : >> { %3776 = vmatpush.bf16.msrb.mxu3 %v6512_v58  ;;  %v6522_v58 = vld [vmem:[%s7325_s25 + $0xe0] sm:$0xff] }
 0x2a1   : >> { %v7723_v53 = vadd.f32 %v2586_v24, %v2481_v21  ;;  %v6503_v24 = vld [vmem:[%s7325_s25 + $0x48] sm:$0xff]  ;;  %v3254_v12 = vpop.f32.mrf.mxu0  ;;  %v2771_v21 = vpop.f32.mrf.mxu1  ;;  %v2474_v17 = vadd.f32 %v7677_v43, %v2291_v4  ;;  %3979 = vmatpush.bf16.msrb.mxu0 %v6522_v58 }
 0x2a2   : >> { %3494 = vmatpush.bf16.msra.mxu1 %v6503_v24  ;;  %3637 = vmatpush.bf16.msrb.mxu2 %v6495_v40  ;;  %v6494_v24 = vld [vmem:[%s7325_s25] sm:$0xff]  ;;  %v2793_v58 = vadd.f32 %v2771_v21, %v7683_v22 }
 0x2a3   : >> { %v2592_v28 = vadd.f32 %v7657_v62, %v2474_v17 }
 0x2a4   : >> { %v7729_v60 = vpop.f32.mrf.mxu2  ;;  %3777 = vmatpush.bf16.msrb.mxu3 %v6511_v11 }
 0x2a5   : >> { %v7731_v44 = vpop.f32.mrf.mxu3  ;;  %v2792_v43 = vadd.f32 %v2768_v48, %v2592_v28  ;;  %v6533_v48 = vld [vmem:[%s7325_s25 + $0x138] sm:$0xff] }
 0x2a6   : >> { %3495 = vmatpush.bf16.msra.mxu1 %v6502_v2  ;;  %3638 = vmatpush.bf16.msrb.mxu2 %v6494_v24  ;;  %v6521_v2 = vld [vmem:[%s7325_s25 + $0xd8] sm:$0xff]  ;;  %v3379_v24 = vld [vmem:[#allocation2] sm:$0x8] }
 0x2a7   : >> { %3980 = vmatpush.bf16.msrb.mxu0 %v6521_v2 }
 0x2a8   : >> { %3778 = vmatpush.bf16.msrb.mxu3 %v6510_v35  ;;  %v3352_v35 = vld [vmem:[#allocation2] sm:$0xc] }
 0x2a9   : >> { %v3257_v0 = vpop.f32.mrf.mxu0  ;;  %v2773_v39 = vpop.f32.mrf.mxu1 }
 0x2aa   : >> { %4094 = vmatpush.bf16.msrb.mxu1 %v6533_v48 }
 0x2ac   : >> { %v2966_v63 = vpop.f32.mrf.mxu2 }
 0x2ad   : >> { %v3098_v41 = vpop.f32.mrf.mxu3  ;;  %v2991_v59 = vadd.f32 %v2966_v63, %v2791_v47  ;;  %v7752_v63 = vld [vmem:[%s3287_s26] ss:$0 sm:$0xff]  ;;  %v2129_v47 = vadd.f32 %v7703_v46, %v7645_v51 }
 0x2af   : >> { %v3123_v50 = vadd.f32 %v3098_v41, %v2991_v59  ;;  %v2293_v17 = vadd.f32 %v7687_v55, %v2129_v47  ;;  %v6520_v59 = vld [vmem:[%s7325_s25 + $0xd0] sm:$0xff] }
 0x2b0   : >> { %3981 = vmatpush.bf16.msrb.mxu0 %v6520_v59 }
 0x2b1   : >> { %v3277_v4 = vadd.f32 %v3252_v18, %v3123_v50  ;;  %v3353_v18 = vld [vmem:[#allocation2 + $0x4] sm:$0xf]  ;;  %v2476_v51 = vadd.f32 %v7689_v23, %v2293_v17  ;;  %v3259_v55 = vpop.f32.mrf.mxu0 }
 0x2b2   : >> { %v6518_v17 = vld [vmem:[%s7325_s25 + $0xc0] sm:$0xff] }
 0x2b3   : >> { %v3292_v13 = vadd.f32 %v7752_v63, %v3277_v4  ;;  %v2594_v48 = vadd.f32 %v7672_v19, %v2476_v51 }
 0x2b4   : >> { %v2968_v40 = vpop.f32.mrf.mxu2 }
 0x2b5   : >> { %v3100_v11 = vpop.f32.mrf.mxu3  ;;  %v2992_v62 = vadd.f32 %v2968_v40, %v2792_v43  ;;  %v3302_v46 = vmax.f32 %v3292_v13, 0.0  ;;  %v6519_v43 = vld [vmem:[%s7325_s25 + $0xc8] sm:$0xff]  ;;  %v3407_v40 = vunpack.c.l.b16 %v3379_v24 }
 0x2b6   : >> { %3982 = vmatpush.bf16.msrb.mxu0 %v6519_v43 }
 0x2b7   : >> { %v3124_v41 = vadd.f32 %v3100_v11, %v2992_v62  ;;  %v3408_v11 = vunpack.c.l.b16 %v3353_v18  ;;  %v3312_v22 = vmul.f32 %v3302_v46, %v7274_v34  ;;  %v2794_v18 = vadd.f32 %v2773_v39, %v2594_v48 }
 0x2b9   : >> { %v3278_v50 = vadd.f32 %v3254_v12, %v3124_v41  ;;  %v2776_v12 = vpop.f32.mrf.mxu1  ;;  %v3523_v41 = vunpack.c.l.b16 %v3352_v35  ;;  %v3418_v13 = vpack.c.b16 %v3408_v11, %v3407_v40  ;;  %v2295_v35 = vadd.f32 %v7698_v1, %v7632_v30 }
 0x2ba   : >> { %3983 = vmatpush.bf16.msrb.mxu0 %v6518_v17 }
 0x2bb   : >> { %v3293_v28 = vadd.f32 %v7752_v63, %v3278_v50  ;;  %v3524_v50 = vpack.c.b16 %v3408_v11, %v3523_v41  ;;  %v3686_v51 = vshrl.u32 %v3418_v13, 16  ;;  %v2478_v39 = vadd.f32 %v7700_v54, %v2295_v35 }
 0x2bc   : >> { %v2971_v4 = vpop.f32.mrf.mxu2 }
 0x2bd   : >> { %v3103_v2 = vpop.f32.mrf.mxu3  ;;  %v3303_v47 = vmax.f32 %v3293_v28, 0.0  ;;  %v2993_v62 = vadd.f32 %v2971_v4, %v2793_v58  ;;  %v3262_v28 = vpop.f32.mrf.mxu0  ;;  %v3526_v43 = vshrl.u32 %v3524_v50, 16  ;;  %v3529_v4 = vshll.u32 %v3524_v50, 16 }
 0x2be   : >> { %v3688_v41 = vrot.slane %v3686_v51, 3 }
 0x2bf   : >> { %v3313_v23 = vmul.f32 %v3303_v47, %v7276_v56  ;;  %v3125_v21 = vadd.f32 %v3103_v2, %v2993_v62  ;;  %v3689_v2 = vshll.u32 %v3418_v13, 16  ;;  %v6532_v62 = vld [vmem:[%s7325_s25 + $0x130] sm:$0xff]  ;;  %v3528_v48 = vrot.slane %v3526_v43, 2 }
 0x2c0   : >> { %4095 = vmatpush.bf16.msrb.mxu1 %v6532_v62 }
 0x2c1   : >> { %v7769_v59 = vpack.c.bf16 %v3313_v23, %v3312_v22  ;;  %v3279_v24 = vadd.f32 %v3257_v0, %v3125_v21  ;;  %v2778_v40 = vpop.f32.mrf.mxu1  ;;  %v3531_v22 = vrot.slane %v3529_v4, 3  ;;  %v3691_v30 = vrot.slane %v3689_v2, 4 }
 0x2c2   : >> { %v3424_v23 = vrot.slane %v3418_v13, 3  ;;  %v2795_v21 = vadd.f32 %v2776_v12, %v7694_v5 }
 0x2c3   : >> { %6700 = vst [vmem:[#allocation2 + $0x8] sm:$0xff] %v7769_v59   ;;  %v3294_v11 = vadd.f32 %v7752_v63, %v3279_v24  ;;  %v3692_v43 = vor.u32 %v3691_v30, %v3688_v41 }
 0x2c4   : >> { %v2973_v19 = vpop.f32.mrf.mxu2 }
 0x2c5   : >> { %v3105_v58 = vpop.f32.mrf.mxu3  ;;  %v2994_v46 = vadd.f32 %v2973_v19, %v2794_v18  ;;  %v3304_v17 = vmax.f32 %v3294_v11, 0.0  ;;  %v2596_v18 = vadd.f32 %v7685_v33, %v2478_v39 }
 0x2c7   : >> { %v3126_v47 = vadd.f32 %v3105_v58, %v2994_v46  ;;  %v3532_v46 = vor.u32 %v3531_v22, %v3528_v48  ;;  %v3314_v33 = vmul.f32 %v3304_v17, %v7284_v45  ;;  %v2139_v48 = vadd.f32 %v7650_v52, %v7648_v42  ;;  %v6531_v52 = vld [vmem:[%s7325_s25 + $0x128] sm:$0xff] }
 0x2c8   : >> { %v2796_v17 = vadd.f32 %v2778_v40, %v2596_v18  ;;  %4096 = vmatpush.bf16.msrb.mxu1 %v6531_v52 }
 0x2c9   : >> { %v3280_v0 = vadd.f32 %v3259_v55, %v3126_v47  ;;  %v3264_v47 = vpop.f32.mrf.mxu0  ;;  %v2781_v22 = vpop.f32.mrf.mxu1 }
 0x2ca   : >> { %v7777_v1 = vld [vmem:[#allocation2 + $0x8] sm:$0xff] }
 0x2cb   : >> { %v3295_v50 = vadd.f32 %v7752_v63, %v3280_v0  ;;  %v3425_v54 = vrot.slane %v7777_v1, 3  ;;  %v3534_v55 = vshrl.u32 %v7777_v1, 16  ;;  %v3537_v35 = vshll.u32 %v7777_v1, 16  ;;  %v6741_v0 = vld [vmem:[#allocation2 + $0x4] sm:$0x8] }
 0x2cc   : >> { %v2976_v24 = vpop.f32.mrf.mxu2  ;;  %v6805_v41 = vld [vmem:[#allocation2 + $0x4] sm:$0xf0]  }
 0x2cd   : >> { %v3108_v19 = vpop.f32.mrf.mxu3  ;;  %v3305_v58 = vmax.f32 %v3295_v50, 0.0  ;;  %v2995_v51 = vadd.f32 %v2976_v24, %v2795_v21  ;;  %v3426_v5 = vsel %vm356_vm0, %v3424_v23, %v3425_v54  ;;  %v3536_v12 = vrot.slane %v3534_v55, 2 }
 0x2ce   : >> { %v3539_v13 = vrot.slane %v3537_v35, 3  ;;  %v3693_v4 = vrot.slane %v3534_v55, 3  ;;  %3496 = vmatmul.bf16.vlgmr.msra.gmra.mxu1 %v3426_v5  ;;  %v3694_v62 = vrot.slane %v3537_v35, 4  ;;  %v2297_v24 = vadd.f32 %v7712_v3, %v2139_v48 }
 0x2cf   : >> { %v3315_v2 = vmul.f32 %v3305_v58, %v7286_v38  ;;  %v3127_v11 = vadd.f32 %v3108_v19, %v2995_v51  ;;  %v6742_v42 = vor.u32 %v6805_v41, %v6741_v0 }
 0x2d0   : >> { %v7790_v39 = vor.u32 %v3539_v13, %v3536_v12  ;;  %v7796_v21 = vor.u32 %v3694_v62, %v3693_v4  ;;  %v2480_v18 = vadd.f32 %v7714_v29, %v2297_v24 }
 0x2d1   : >> { %v7794_v30 = vpack.c.bf16 %v3315_v2, %v3314_v33  ;;  %v3281_v23 = vadd.f32 %v3262_v28, %v3127_v11  ;;  %v3871_v3 = vshrl.u32 %v6742_v42, 16  ;;  %v3874_v51 = vshll.u32 %v6742_v42, 16  ;;  %v3267_v13 = vpop.f32.mrf.mxu0  ;;  %v2783_v11 = vpop.f32.mrf.mxu1 }
 0x2d2   : >> { %v3541_v50 = vsel %vm458_vm2, %v3532_v46, %v7790_v39  ;;  %v3696_v19 = vsel %vm620_vm1, %v3692_v43, %v7796_v21  ;;  %v6530_v46 = vld [vmem:[%s7325_s25 + $0x120] sm:$0xff]  ;;  %v2797_v43 = vadd.f32 %v2781_v22, %v7706_v9  ;;  %v2598_v2 = vadd.f32 %v7696_v26, %v2480_v18 }
 0x2d3   : >> { %6701 = vst [vmem:[#allocation2 + $0x10] sm:$0xff] %v7794_v30   ;;  %3639 = vmatmul.bf16.vlgmr.msrb.gmra.mxu2 %v3541_v50  ;;  %3779 = vmatmul.bf16.vlgmr.msrb.gmra.mxu3 %v3696_v19  ;;  %v3296_v28 = vadd.f32 %v7752_v63, %v3281_v23  ;;  %v3873_v0 = vrot.slane %v3871_v3, 3  ;;  %v3876_v29 = vrot.slane %v3874_v51, 4  ;;  %v2144_v51 = vadd.f32 %v7662_v20, %v7660_v61 }
 0x2d4   : >> { %v2978_v55 = vpop.f32.mrf.mxu2  ;;  %4097 = vmatpush.bf16.msrb.mxu1 %v6530_v46 }
 0x2d5   : >> { %v3110_v35 = vpop.f32.mrf.mxu3  ;;  %v2996_v40 = vadd.f32 %v2978_v55, %v2796_v17  ;;  %v3306_v5 = vmax.f32 %v3296_v28, 0.0 }
 0x2d7   : >> { %v3128_v58 = vadd.f32 %v3110_v35, %v2996_v40  ;;  %v3316_v9 = vmul.f32 %v3306_v5, %v7294_v7 }
 0x2d9   : >> { %v3282_v12 = vadd.f32 %v3264_v47, %v3128_v58  ;;  %v3269_v61 = vpop.f32.mrf.mxu0 }
 0x2da   : >> { %v7809_v4 = vld [vmem:[#allocation2 + $0x10] sm:$0xff] }
 0x2db   : >> { %v6807_v33 = vld [vmem:[#allocation2 + $0xc] sm:$0xff]   ;;  %v3297_v62 = vadd.f32 %v7752_v63, %v3282_v12  ;;  %v3427_v23 = vrot.slane %v7809_v4, 3  ;;  %v3543_v47 = vshrl.u32 %v7809_v4, 16  ;;  %v3546_v17 = vshll.u32 %v7809_v4, 16 }
 0x2dc   : >> { %v2981_v41 = vpop.f32.mrf.mxu2  ;;  %v3879_v50 = vshrl.u32 %v6807_v33, 16  ;;  %v3882_v19 = vshll.u32 %v6807_v33, 16  ;;  %v3877_v12 = vor.u32 %v3876_v29, %v3873_v0  ;;  %v2798_v33 = vadd.f32 %v2783_v11, %v2598_v2  ;;  %v6528_v0 = vld [vmem:[%s7325_s25 + $0x110] sm:$0xff]  ;;  %v6546_v29 = vld [vmem:[%s7325_s25 + $0x178] sm:$0xff] }
 0x2dd   : >> { %v3113_v48 = vpop.f32.mrf.mxu3  ;;  %v3307_v22 = vmax.f32 %v3297_v62, 0.0  ;;  %v2997_v24 = vadd.f32 %v2981_v41, %v2797_v43  ;;  %v3428_v26 = vsel %vm356_vm0, %v3425_v54, %v3427_v23  ;;  %v3545_v42 = vrot.slane %v3543_v47, 2  ;;  %4290 = vmatpush.bf16.msra.mxu2 %v6546_v29 }
 0x2de   : >> { %v3548_v52 = vrot.slane %v3546_v17, 3  ;;  %v3697_v55 = vrot.slane %v3543_v47, 3  ;;  %3501 = vmatmul.bf16.gmra.mxu1 %v3428_v26  ;;  %v3698_v40 = vrot.slane %v3546_v17, 4  ;;  %v3881_v18 = vrot.slane %v3879_v50, 3  ;;  %v2786_v47 = vpop.f32.mrf.mxu1  ;;  %v6545_v50 = vld [vmem:[%s7325_s25 + $0x170] sm:$0xff] }
 0x2df   : >> { %v3317_v35 = vmul.f32 %v3307_v22, %v7296_v8  ;;  %v3129_v28 = vadd.f32 %v3113_v48, %v2997_v24  ;;  %v3884_v3 = vrot.slane %v3882_v19, 4  ;;  %v2299_v62 = vadd.f32 %v7729_v60, %v2144_v51  ;;  %v6558_v48 = vld [vmem:[%s7325_s25 + $0x1b8] sm:$0xff]  ;;  %v6527_v19 = vld [vmem:[%s7325_s25 + $0x108] sm:$0xff] }
 0x2e0   : >> { %v7823_v58 = vor.u32 %v3548_v52, %v3545_v42  ;;  %v7829_v54 = vor.u32 %v3698_v40, %v3697_v55  ;;  %4486 = vmatpush.bf16.msra.mxu3 %v6558_v48  ;;  %v2799_v52 = vadd.f32 %v2786_v47, %v7723_v53 }
 0x2e1   : >> { %v7827_v46 = vpack.c.bf16 %v3317_v35, %v3316_v9  ;;  %v3283_v1 = vadd.f32 %v3267_v13, %v3129_v28  ;;  %v7834_v43 = vor.u32 %v3884_v3, %v3881_v18  ;;  %v6529_v13 = vld [vmem:[%s7325_s25 + $0x118] sm:$0xff]  ;;  %v6557_v9 = vld [vmem:[%s7325_s25 + $0x1b0] sm:$0xff]  ;;  %4291 = vmatpush.bf16.msra.mxu2 %v6545_v50  ;;  %v6544_v35 = vld [vmem:[%s7325_s25 + $0x168] sm:$0xff] }
 0x2e2   : >> { %v3550_v5 = vsel %vm458_vm2, %v7790_v39, %v7823_v58  ;;  %v3700_v20 = vsel %vm620_vm1, %v7796_v21, %v7829_v54  ;;  %4098 = vmatpush.bf16.msrb.mxu1 %v6529_v13  ;;  %v2482_v21 = vadd.f32 %v7731_v44, %v2299_v62  ;;  %v3272_v62 = vpop.f32.mrf.mxu0  ;;  %v6543_v50 = vld [vmem:[%s7325_s25 + $0x160] sm:$0xff] }
 0x2e3   : >> { %6702 = vst [vmem:[#allocation2 + $0x18] sm:$0xff] %v7827_v46   ;;  %3644 = vmatmul.bf16.gmra.mxu2 %v3550_v5  ;;  %3784 = vmatmul.bf16.gmra.mxu3 %v3700_v20  ;;  %v3886_v2 = vsel %vm620_vm1, %v3877_v12, %v7834_v43  ;;  %v3298_v60 = vadd.f32 %v7752_v63, %v3283_v1  ;;  %v6556_v5 = vld [vmem:[%s7325_s25 + $0x1a8] sm:$0xff] }
 0x2e4   : >> { %v2983_v41 = vpop.f32.mrf.mxu2  ;;  %3984 = vmatmul.bf16.vlgmr.msrb.gmra.mxu0 %v3886_v2  ;;  %v2600_v55 = vadd.f32 %v7710_v15, %v2482_v21  ;;  %4487 = vmatpush.bf16.msra.mxu3 %v6557_v9  ;;  %v6555_v9 = vld [vmem:[%s7325_s25 + $0x1a0] sm:$0xff] }
 0x2e5   : >> { %v3115_v39 = vpop.f32.mrf.mxu3  ;;  %v2998_v11 = vadd.f32 %v2983_v41, %v2798_v33  ;;  %v3308_v22 = vmax.f32 %v3298_v60, 0.0  ;;  %4292 = vmatpush.bf16.msra.mxu2 %v6544_v35 }
 0x2e6   : >> { %4099 = vmatpush.bf16.msrb.mxu1 %v6528_v0  ;;  %v2788_v0 = vpop.f32.mrf.mxu1 }
 0x2e7   : >> { %v3130_v17 = vadd.f32 %v3115_v39, %v2998_v11  ;;  %v3318_v12 = vmul.f32 %v3308_v22, %v7304_v27  ;;  %v2800_v22 = vadd.f32 %v2788_v0, %v2600_v55 }
 0x2e8   : >> { %4488 = vmatpush.bf16.msra.mxu3 %v6556_v5 }
 0x2e9   : >> { %v3284_v24 = vadd.f32 %v3269_v61, %v3130_v17  ;;  %4293 = vmatpush.bf16.msra.mxu2 %v6543_v50 }
 0x2ea   : >> { %v7852_v26 = vld [vmem:[#allocation2 + $0x18] sm:$0xff]  ;;  %4100 = vmatpush.bf16.msrb.mxu1 %v6527_v19 }
 0x2eb   : >> { %v6809_v42 = vld [vmem:[#allocation2 + $0x14] sm:$0xff]   ;;  %v3299_v44 = vadd.f32 %v7752_v63, %v3284_v24  ;;  %v3429_v18 = vrot.slane %v7852_v26, 3  ;;  %v3552_v3 = vshrl.u32 %v7852_v26, 16  ;;  %v3555_v51 = vshll.u32 %v7852_v26, 16 }
 0x2ec   : >> { %v2986_v28 = vpop.f32.mrf.mxu2  ;;  %v3888_v1 = vshrl.u32 %v6809_v42, 16  ;;  %v3891_v15 = vshll.u32 %v6809_v42, 16  ;;  %4489 = vmatpush.bf16.msra.mxu3 %v6555_v9  ;;  %v7891_v35 = vld [vmem:[#allocation2 + $0x14] sm:$0xff] }
 0x2ed   : >> { %v3118_v40 = vpop.f32.mrf.mxu3  ;;  %v3309_v53 = vmax.f32 %v3299_v44, 0.0  ;;  %v2999_v33 = vadd.f32 %v2986_v28, %v2799_v52  ;;  %v3430_v61 = vsel %vm356_vm0, %v3427_v23, %v3429_v18  ;;  %v3554_v20 = vrot.slane %v3552_v3, 2  ;;  %v6566_v52 = vld [vmem:[%s7325_s25 + $0x1f8] sm:$0xff] }
 0x2ee   : >> { %v3557_v13 = vrot.slane %v3555_v51, 3  ;;  %v3701_v41 = vrot.slane %v3552_v3, 3  ;;  %3506 = vmatmul.bf16.gmra.mxu1 %v3430_v61  ;;  %v3702_v60 = vrot.slane %v3555_v51, 4  ;;  %v3890_v11 = vrot.slane %v3888_v1, 3  ;;  %4614 = vmatpush.bf16.msra.mxu0 %v6566_v52  ;;  %v6526_v3 = vld [vmem:[%s7325_s25 + $0x100] sm:$0xff]  ;;  %v3274_v51 = vpop.f32.mrf.mxu0  ;;  %v6565_v1 = vld [vmem:[%s7325_s25 + $0x1f0] sm:$0xff] }
 0x2ef   : >> { %v3319_v39 = vmul.f32 %v3309_v53, %v7306_v32  ;;  %v3131_v2 = vadd.f32 %v3118_v40, %v2999_v33  ;;  %v3893_v48 = vrot.slane %v3891_v15, 4  ;;  %v6554_v40 = vld [vmem:[%s7325_s25 + $0x198] sm:$0xff]  ;;  %v6553_v53 = vld [vmem:[%s7325_s25 + $0x190] sm:$0xff]  ;;  %4101 = vmatpush.bf16.msrb.mxu1 %v6526_v3 }
 0x2f0   : >> { %v7869_v29 = vor.u32 %v3557_v13, %v3554_v20  ;;  %v7873_v47 = vor.u32 %v3702_v60, %v3701_v41  ;;  %4490 = vmatpush.bf16.msra.mxu3 %v6554_v40  ;;  %v4397_v20 = vshll.u32 %v7891_v35, 16 }
 0x2f1   : >> { %v7871_v4 = vpack.c.bf16 %v3319_v39, %v3318_v12  ;;  %v3285_v23 = vadd.f32 %v3272_v62, %v3131_v2  ;;  %v7878_v17 = vor.u32 %v3893_v48, %v3890_v11  ;;  %v6541_v12 = vld [vmem:[%s7325_s25 + $0x150] sm:$0xff]  ;;  %v6564_v62 = vld [vmem:[%s7325_s25 + $0x1e8] sm:$0xff] }
 0x2f2   : >> { %v3559_v21 = vsel %vm458_vm2, %v7823_v58, %v7869_v29  ;;  %v3704_v19 = vsel %vm620_vm1, %v7829_v54, %v7873_v47  ;;  %v6542_v54 = vld [vmem:[%s7325_s25 + $0x158] sm:$0xff]  ;;  %4615 = vmatpush.bf16.msra.mxu0 %v6565_v1  ;;  %v6539_v1 = vld [vmem:[%s7325_s25 + $0x140] sm:$0xff] }
 0x2f3   : >> { %6703 = vst [vmem:[#allocation2 + $0x20] sm:$0xff] %v7871_v4   ;;  %v3300_v24 = vadd.f32 %v7752_v63, %v3285_v23  ;;  %3649 = vmatmul.bf16.gmra.mxu2 %v3559_v21  ;;  %3789 = vmatmul.bf16.gmra.mxu3 %v3704_v19  ;;  %v3895_v58 = vsel %vm620_vm1, %v7834_v43, %v7878_v17  ;;  %v6540_v23 = vld [vmem:[%s7325_s25 + $0x148] sm:$0xff]  ;;  %v4401_v21 = vshrl.u32 %v7891_v35, 16  ;;  %v6563_v19 = vld [vmem:[%s7325_s25 + $0x1e0] sm:$0xff] }
 0x2f4   : >> { %v2988_v42 = vpop.f32.mrf.mxu2  ;;  %3989 = vmatmul.bf16.gmra.mxu0 %v3895_v58  ;;  %4294 = vmatpush.bf16.msra.mxu2 %v6542_v54 }
 0x2f5   : >> { %v3000_v55 = vadd.f32 %v2988_v42, %v2800_v22  ;;  %v3120_v44 = vpop.f32.mrf.mxu3  ;;  %v3310_v5 = vmax.f32 %v3300_v24, 0.0  ;;  %4491 = vmatpush.bf16.msra.mxu3 %v6553_v53 }
 0x2f6   : >> { %4616 = vmatpush.bf16.msra.mxu0 %v6564_v62 }
 0x2f7   : >> { %v3132_v28 = vadd.f32 %v3120_v44, %v3000_v55  ;;  %v3320_v11 = vmul.f32 %v3310_v5, %v7313_v57  ;;  %v6551_v5 = vld [vmem:[%s7325_s25 + $0x180] sm:$0xff] }
 0x2f8   : >> { %4295 = vmatpush.bf16.msra.mxu2 %v6541_v12  ;;  %v4687_v12 = vrot.slane %v4397_v20, 2 }
 0x2f9   : >> { %v3286_v43 = vadd.f32 %v3274_v51, %v3132_v28  ;;  %v6574_v51 = vld [vmem:[%s7325_s25 + $0x238] sm:$0xff] }
 0x2fa   : >> { %v7899_v33 = vld [vmem:[#allocation2 + $0x20] sm:$0xff]  ;;  %4617 = vmatpush.bf16.msra.mxu0 %v6563_v19  ;;  %4764 = vmatpush.bf16.msra.mxu1 %v6574_v51 }
 0x2fb   : >> { %v6811_v15 = vld [vmem:[#allocation2 + $0x1c] sm:$0xff]   ;;  %v3301_v61 = vadd.f32 %v7752_v63, %v3286_v43  ;;  %v3431_v13 = vrot.slane %v7899_v33, 3  ;;  %v3561_v41 = vshrl.u32 %v7899_v33, 16  ;;  %v3564_v39 = vshll.u32 %v7899_v33, 16  ;;  %v6552_v63 = vld [vmem:[%s7325_s25 + $0x188] sm:$0xff] }
 0x2fc   : >> { %v3897_v2 = vshrl.u32 %v6811_v15, 16  ;;  %v7907_v60 = vld [vmem:[#allocation2 + $0x1c] sm:$0xff]  ;;  %v3900_v48 = vshll.u32 %v6811_v15, 16  ;;  %4296 = vmatpush.bf16.msra.mxu2 %v6540_v23  ;;  %4492 = vmatpush.bf16.msra.mxu3 %v6552_v63  ;;  %v4686_v43 = vrot.slane %v4401_v21, 1 }
 0x2fd   : >> { %v3311_v0 = vmax.f32 %v3301_v61, 0.0  ;;  %v3432_v50 = vsel %vm356_vm0, %v3429_v18, %v3431_v13  ;;  %v3563_v9 = vrot.slane %v3561_v41, 2  ;;  %v3566_v22 = vrot.slane %v3564_v39, 3  ;;  %v6562_v15 = vld [vmem:[%s7325_s25 + $0x1d8] sm:$0xff] }
 0x2fe   : >> { %v3705_v24 = vrot.slane %v3561_v41, 3  ;;  %3511 = vmatmul.bf16.gmra.mxu1 %v3432_v50  ;;  %v3706_v58 = vrot.slane %v3564_v39, 4  ;;  %v3899_v52 = vrot.slane %v3897_v2, 3  ;;  %v3902_v55 = vrot.slane %v3900_v48, 4  ;;  %4618 = vmatpush.bf16.msra.mxu0 %v6562_v15  ;;  %v6561_v39 = vld [vmem:[%s7325_s25 + $0x1d0] sm:$0xff] }
 0x2ff   : >> { %v3321_v42 = vmul.f32 %v3311_v0, %v7315_v31  ;;  %v7920_v44 = vor.u32 %v3566_v22, %v3563_v9  ;;  %v4405_v26 = vshll.u32 %v7907_v60, 16  ;;  %v4409_v40 = vshrl.u32 %v7907_v60, 16 }
 0x300   : >> { %v7925_v18 = vor.u32 %v3706_v58, %v3705_v24  ;;  %v3903_v54 = vor.u32 %v3902_v55, %v3899_v52  ;;  %4297 = vmatpush.bf16.msra.mxu2 %v6539_v1  ;;  %4493 = vmatpush.bf16.msra.mxu3 %v6551_v5  ;;  %v7949_v41 = vor.u32 %v4687_v12, %v4686_v43  ;;  %v6559_v55 = vld [vmem:[%s7325_s25 + $0x1c0] sm:$0xff] }
 0x301   : >> { %v7923_v28 = vpack.c.bf16 %v3321_v42, %v3320_v11  ;;  %v3568_v3 = vsel %vm458_vm2, %v7869_v29, %v7920_v44  ;;  %v4690_v62 = vrot.slane %v4409_v40, 1  ;;  %v4691_v61 = vrot.slane %v4405_v26, 2  ;;  %v6560_v11 = vld [vmem:[%s7325_s25 + $0x1c8] sm:$0xff] }
 0x302   : >> { %v3708_v53 = vsel %vm620_vm1, %v7873_v47, %v7925_v18  ;;  %v3904_v29 = vsel %vm620_vm1, %v7878_v17, %v3903_v54  ;;  %v6573_v17 = vld [vmem:[%s7325_s25 + $0x230] sm:$0xff]  ;;  %4619 = vmatpush.bf16.msra.mxu0 %v6561_v39 }
 0x303   : >> { %6704 = vst [vmem:[#allocation2 + $0x28] sm:$0xff] %v7923_v28   ;;  %3654 = vmatmul.bf16.gmra.mxu2 %v3568_v3  ;;  %3794 = vmatmul.bf16.gmra.mxu3 %v3708_v53  ;;  %v7951_v47 = vor.u32 %v4691_v61, %v4690_v62  ;;  %v4334_v53 = vld [vmem:[#allocation2 + $0xc] sm:$0xff]  }
 0x304   : >> { %3994 = vmatmul.bf16.gmra.mxu0 %v3904_v29  ;;  %4765 = vmatpush.bf16.msra.mxu1 %v6573_v17  ;;  %v7964_v29 = vld [vmem:[#allocation2 + $0xc] sm:$0xf0] }
 0x305   : >> { %v7958_v2 = vsel %vm1622_vm5, %v7949_v41, %v7951_v47 }
 0x306   : >> { %4620 = vmatpush.bf16.msra.mxu0 %v6560_v11 }
 0x30a   : >> { %v3362_v0 = vld [vmem:[#allocation2 + $0x28] sm:$0x7]  ;;  %v7966_v15 = vld [vmem:[#allocation2 + $0x2c] sm:$0xff]  ;;  %4621 = vmatpush.bf16.msra.mxu0 %v6559_v55 }
 0x30b   : >> { %v6812_v48 = vld [vmem:[#allocation2 + $0x24] sm:$0xff]   ;;  %v3417_v63 = vunpack.c.l.b16 %v3362_v0  ;;  %v4425_v33 = vshrl.u32 %v7966_v15, 16 }
 0x30c   : >> { %v3665_v23 = vld [vmem:[#allocation2 + $0x28] sm:$0xf]  ;;  %v3906_v9 = vshrl.u32 %v6812_v48, 16  ;;  %v3909_v22 = vshll.u32 %v6812_v48, 16 }
 0x30d   : >> { %v3683_v50 = vunpack.c.l.b16 %v3665_v23  ;;  %v7961_v24 = vld [vmem:[#allocation2 + $0x24] sm:$0xff]  ;;  %v3423_v19 = vpack.c.b16 %v3417_v63, %v3417_v63  ;;  %v6664_v23 = vunpack.c.h.b16 %v7923_v28 }
 0x30e   : >> { %v3908_v58 = vrot.slane %v3906_v9, 3  ;;  %v3911_v52 = vrot.slane %v3909_v22, 4  ;;  %v4417_v62 = vshrl.u32 %v7961_v24, 16  ;;  %v4421_v22 = vshll.u32 %v7966_v15, 16 }
 0x30f   : >> { %v3684_v42 = vpack.c.b16 %v3683_v50, %v3683_v50  ;;  %v3433_v3 = vrot.slane %v3423_v19, 3  ;;  %v3570_v51 = vshrl.u32 %v3423_v19, 16  ;;  %v3573_v1 = vshll.u32 %v3423_v19, 16 }
 0x310   : >> { %v3912_v43 = vor.u32 %v3911_v52, %v3908_v58  ;;  %v4413_v50 = vshll.u32 %v7961_v24, 16  ;;  %v6534_v58 = vld [vmem:[#allocation2 + $0x8] sm:$0xff] }
 0x311   : >> { %v3710_v5 = vshrl.u32 %v3684_v42, 16  ;;  %v3713_v12 = vshll.u32 %v3684_v42, 16  ;;  %v3434_v61 = vsel %vm356_vm0, %v3431_v13, %v3433_v3  ;;  %v3572_v39 = vrot.slane %v3570_v51, 2  ;;  %v6572_v52 = vld [vmem:[%s7325_s25 + $0x228] sm:$0xff]  ;;  %v6535_v51 = vld [vmem:[#allocation2 + $0x10] sm:$0xff] }
 0x312   : >> { %v3575_v17 = vrot.slane %v3573_v1, 3  ;;  %3516 = vmatmul.bf16.gmra.mxu1 %v3434_v61  ;;  %v3913_v0 = vsel %vm620_vm1, %v3903_v54, %v3912_v43  ;;  %v4694_v54 = vrot.slane %v4417_v62, 1  ;;  %v3869_v42 = vpack.c.b16 %v6664_v23, %v6664_v23  ;;  %v6571_v1 = vld [vmem:[%s7325_s25 + $0x220] sm:$0xff] }
 0x313   : >> { %v3712_v11 = vrot.slane %v3710_v5, 3  ;;  %v3715_v48 = vrot.slane %v3713_v12, 4  ;;  %v4695_v55 = vrot.slane %v4413_v50, 2  ;;  %v4698_v3 = vrot.slane %v4425_v33, 1  ;;  %4766 = vmatpush.bf16.msra.mxu1 %v6572_v52 }
 0x314   : >> { %v3576_v63 = vor.u32 %v3575_v17, %v3572_v39  ;;  %3999 = vmatmul.bf16.gmra.mxu0 %v3913_v0  ;;  %v3915_v12 = vshrl.u32 %v3869_v42, 16  ;;  %v3918_v61 = vshll.u32 %v3869_v42, 16  ;;  %v4196_v39 = vshll.u32 %v6534_v58, 16 }
 0x315   : >> { %v3716_v9 = vor.u32 %v3715_v48, %v3712_v11  ;;  %v4696_v5 = vor.u32 %v4695_v55, %v4694_v54  ;;  %v4392_v11 = vshll.u32 %v4334_v53, 16  ;;  %v4201_v48 = vshll.u32 %v6535_v51, 16 }
 0x316   : >> { %v3577_v13 = vsel %vm458_vm2, %v7920_v44, %v3576_v63  ;;  %v4699_v44 = vrot.slane %v4421_v22, 2  ;;  %v3917_v23 = vrot.slane %v3915_v12, 3  ;;  %v3920_v63 = vrot.slane %v3918_v61, 4  ;;  %v6873_v12 = vld [vmem:[#allocation2 + $0xc] sm:$0xe] }
 0x317   : >> { %3659 = vmatmul.bf16.gmra.mxu2 %v3577_v13  ;;  %v3717_v19 = vsel %vm620_vm1, %v7925_v18, %v3716_v9  ;;  %v7995_v17 = vsel %vm1622_vm5, %v7951_v47, %v4696_v5  ;;  %4767 = vmatpush.bf16.msra.mxu1 %v6571_v1  ;;  %v4198_v9 = vrot.slane %v4196_v39, 1  ;;  %v4394_v13 = vrot.slane %v4392_v11, 1 }
 0x318   : >> { %3799 = vmatmul.bf16.gmra.mxu3 %v3717_v19  ;;  %v7991_v18 = vor.u32 %v4699_v44, %v4698_v3  ;;  %v4194_v54 = vshrl.u32 %v6534_v58, 16  ;;  %v4203_v19 = vrot.slane %v4201_v48, 1  ;;  %v3921_v42 = vor.u32 %v3920_v63, %v3917_v23  ;;  %v6570_v58 = vld [vmem:[%s7325_s25 + $0x218] sm:$0xff] }
 0x319   : >> { %v4390_v52 = vshrl.u32 %v4334_v53, 16  ;;  %v4399_v47 = vrot.slane %v4397_v20, 1  ;;  %v8009_v61 = vor.u32 %v6873_v12, %v7964_v29  ;;  %v4551_v20 = vrot.slane %v7891_v35, 1 }
 0x31a   : >> { %v7999_v0 = vsel %vm1622_vm5, %v4696_v5, %v7991_v18  ;;  %v4199_v55 = vor.u32 %v4198_v9, %v4194_v54  ;;  %v3922_v3 = vsel %vm620_vm1, %v3912_v43, %v3921_v42  ;;  %v4205_v43 = vshrl.u32 %v6535_v51, 16  ;;  %v6568_v54 = vld [vmem:[%s7325_s25 + $0x208] sm:$0xff] }
 0x31b   : >> { %v4395_v44 = vor.u32 %v4394_v13, %v4390_v52  ;;  %4768 = vmatpush.bf16.msra.mxu1 %v6570_v58  ;;  %v4550_v11 = vrot.slane %v8009_v61, 1  ;;  %v4407_v48 = vrot.slane %v4405_v26, 1  ;;  %v4403_v9 = vor.u32 %v4401_v21, %v4399_v47  ;;  %v6569_v13 = vld [vmem:[%s7325_s25 + $0x210] sm:$0xff] }
 0x31c   : >> { %v4204_v1 = vsel %vm1132_vm4, %v4199_v55, %v4203_v19  ;;  %v4207_v23 = vor.u32 %v4205_v43, %v4203_v19  ;;  %v4553_v26 = vrot.slane %v7907_v60, 1  ;;  %v4415_v35 = vrot.slane %v4413_v50, 1 }
 0x31d   : >> { %v4400_v5 = vsel %vm1132_vm4, %v4395_v44, %v4399_v47  ;;  %v4552_v63 = vsel %vm1492_vm3, %v4550_v11, %v4551_v20  ;;  %v4408_v51 = vsel %vm1132_vm4, %v4403_v9, %v4407_v48  ;;  %v4411_v55 = vor.u32 %v4409_v40, %v4407_v48  ;;  %v4148_v40 = vld [vmem:[#allocation2 + $0x30] sm:$0x1] }
 0x31e   : >> { %v4554_v47 = vsel %vm1492_vm3, %v4551_v20, %v4553_v26  ;;  %v4555_v50 = vrot.slane %v7961_v24, 1  ;;  %v4419_v60 = vor.u32 %v4417_v62, %v4415_v35  ;;  %v4186_v48 = vunpack.c.l.b16 %v4148_v40 }
 0x31f   : >> { %4769 = vmatpush.bf16.msra.mxu1 %v6569_v13  ;;  %v4416_v44 = vsel %vm1132_vm4, %v4411_v55, %v4415_v35  ;;  %v4557_v35 = vrot.slane %v7966_v15, 1  ;;  %v4682_v15 = vshll.u32 %v8009_v61, 16 }
 0x320   : >> { %v4556_v20 = vsel %vm1492_vm3, %v4553_v26, %v4555_v50  ;;  %v4192_v13 = vpack.c.b16 %v4186_v48, %v4186_v48 }
 0x322   : >> { %4102 = vmatmul.bf16.vlgmr.msrb.gmra.mxu1 %v7769_v59  ;;  %v6536_v59 = vld [vmem:[#allocation2 + $0x18] sm:$0xff] }
 0x323   : >> { %v4209_v53 = vshll.u32 %v6536_v59, 16  ;;  %4770 = vmatpush.bf16.msra.mxu1 %v6568_v54  ;;  %v4213_v19 = vshrl.u32 %v6536_v59, 16  ;;  %v4233_v54 = vshll.u32 %v4192_v13, 16 }
 0x324   : >> { %4004 = vmatmul.bf16.gmra.mxu0 %v3922_v3 }
 0x325   : >> { %v4211_v39 = vrot.slane %v4209_v53, 1  ;;  %v4235_v55 = vrot.slane %v4233_v54, 1 }
 0x327   : >> { %4298 = vmatmul.bf16.vlgmr.msra.gmra.mxu2 %v4204_v1  ;;  %v4212_v29 = vsel %vm1132_vm4, %v4207_v23, %v4211_v39  ;;  %v4215_v21 = vor.u32 %v4213_v19, %v4211_v39  ;;  %v6538_v1 = vld [vmem:[#allocation2 + $0x28] sm:$0xff]  ;;  %v4423_v39 = vrot.slane %v4421_v22, 1  ;;  %v4344_v23 = vld [vmem:[#allocation2 + $0x34] sm:$0x1] }
 0x328   : >> { %4494 = vmatmul.bf16.vlgmr.msra.gmra.mxu3 %v4400_v5  ;;  %v6567_v5 = vld [vmem:[%s7325_s25 + $0x200] sm:$0xff]  ;;  %v4225_v58 = vshll.u32 %v6538_v1, 16  ;;  %v4382_v9 = vunpack.c.l.b16 %v4344_v23 }
 0x329   : >> { %4771 = vmatpush.bf16.msra.mxu1 %v6567_v5 }
 0x32a   : >> { %v4227_v59 = vrot.slane %v4225_v58, 1  ;;  %v4558_v58 = vsel %vm1492_vm3, %v4555_v50, %v4557_v35 }
 0x332   : >> { %4107 = vmatmul.bf16.gmra.mxu1 %v7794_v30  ;;  %v6537_v30 = vld [vmem:[#allocation2 + $0x20] sm:$0xff] }
 0x333   : >> { %v4217_v42 = vshll.u32 %v6537_v30, 16  ;;  %v4221_v12 = vshrl.u32 %v6537_v30, 16  ;;  %v4388_v30 = vpack.c.b16 %v4382_v9, %v4382_v9 }
 0x334   : >> { %4622 = vmatmul.bf16.vlgmr.msra.gmra.mxu0 %v4552_v63  ;;  %v4424_v63 = vsel %vm1132_vm4, %v4419_v60, %v4423_v39 }
 0x335   : >> { %v4219_v52 = vrot.slane %v4217_v42, 1  ;;  %v4429_v22 = vshll.u32 %v4388_v30, 16 }
 0x337   : >> { %4303 = vmatmul.bf16.gmra.mxu2 %v4212_v29  ;;  %v4220_v3 = vsel %vm1132_vm4, %v4215_v21, %v4219_v52  ;;  %v4223_v53 = vor.u32 %v4221_v12, %v4219_v52  ;;  %v4229_v52 = vshrl.u32 %v6538_v1, 16  ;;  %v4431_v5 = vrot.slane %v4429_v22, 1 }
 0x338   : >> { %4499 = vmatmul.bf16.gmra.mxu3 %v4408_v51 }
 0x339   : >> { %v4228_v11 = vsel %vm1132_vm4, %v4223_v53, %v4227_v59 }
 0x342   : >> { %4112 = vmatmul.bf16.gmra.mxu1 %v7827_v46 }
 0x344   : >> { %4627 = vmatmul.bf16.gmra.mxu0 %v4554_v47  ;;  %v4231_v47 = vor.u32 %v4229_v52, %v4227_v59 }
 0x346   : >> { %v4236_v1 = vsel %vm1132_vm4, %v4231_v47, %v4235_v55 }
 0x347   : >> { %4308 = vmatmul.bf16.gmra.mxu2 %v4220_v3 }
 0x348   : >> { %4504 = vmatmul.bf16.gmra.mxu3 %v4416_v44  ;;  %v4427_v44 = vor.u32 %v4425_v33, %v4423_v39  ;;  %v4684_v39 = vrot.slane %v4682_v15, 2 }
 0x34a   : >> { %v4432_v60 = vsel %vm1132_vm4, %v4427_v44, %v4431_v5 }
 0x34b   : >> { %v3497_v46 = vpop.f32.mrf.mxu1 }
 0x352   : >> { %4117 = vmatmul.bf16.gmra.mxu1 %v7871_v4 }
 0x353   : >> { %v3499_v43 = vpop.f32.mrf.mxu1 }
 0x354   : >> { %4632 = vmatmul.bf16.gmra.mxu0 %v4556_v20 }
 0x356   : >> { %v3640_v4 = vpop.f32.mrf.mxu2  ;;  %v3780_v62 = vpop.f32.mrf.mxu3 }
 0x357   : >> { %4313 = vmatmul.bf16.gmra.mxu2 %v4228_v11  ;;  %v3641_v24 = vadd.f32 %v3640_v4, %v3497_v46 }
 0x358   : >> { %4509 = vmatmul.bf16.gmra.mxu3 %v4424_v63 }
 0x359   : >> { %v3805_v29 = vadd.f32 %v3780_v62, %v3641_v24  ;;  %v4559_v24 = vrot.slane %v4388_v30, 1 }
 0x35b   : >> { %v3502_v51 = vpop.f32.mrf.mxu1 }
 0x35e   : >> { %v3642_v42 = vpop.f32.mrf.mxu2  ;;  %v3782_v19 = vpop.f32.mrf.mxu3 }
 0x35f   : >> { %v3643_v26 = vadd.f32 %v3642_v42, %v3499_v43 }
 0x361   : >> { %v3806_v21 = vadd.f32 %v3782_v19, %v3643_v26  ;;  %v3985_v3 = vpop.f32.mrf.mxu0 }
 0x362   : >> { %4122 = vmatmul.bf16.gmra.mxu1 %v7923_v28  ;;  %v8046_v46 = vadd.f32 %v3985_v3, %v3805_v29  ;;  %v4679_v28 = vshrl.u32 %v8009_v61, 16  ;;  %v4560_v61 = vsel %vm1492_vm3, %v4557_v35, %v4559_v24 }
 0x363   : >> { %v3504_v12 = vpop.f32.mrf.mxu1 }
 0x364   : >> { %4637 = vmatmul.bf16.gmra.mxu0 %v4558_v58  ;;  %v4681_v50 = vrot.slane %v4679_v28, 1 }
 0x366   : >> { %v3645_v59 = vpop.f32.mrf.mxu2  ;;  %v3785_v53 = vpop.f32.mrf.mxu3  ;;  %v4685_v4 = vor.u32 %v4684_v39, %v4681_v50 }
 0x367   : >> { %4318 = vmatmul.bf16.gmra.mxu2 %v4236_v1  ;;  %v3646_v40 = vadd.f32 %v3645_v59, %v3502_v51 }
 0x368   : >> { %4514 = vmatmul.bf16.gmra.mxu3 %v4432_v60  ;;  %v4689_v9 = vsel %vm1622_vm5, %v4685_v4, %v7949_v41 }
 0x369   : >> { %v3807_v33 = vadd.f32 %v3785_v53, %v3646_v40  ;;  %v3987_v20 = vpop.f32.mrf.mxu0 }
 0x36a   : >> { %v8053_v43 = vadd.f32 %v3987_v20, %v3806_v21 }
 0x36b   : >> { %v3507_v11 = vpop.f32.mrf.mxu1 }
 0x36e   : >> { %v3647_v48 = vpop.f32.mrf.mxu2  ;;  %v3787_v63 = vpop.f32.mrf.mxu3 }
 0x36f   : >> { %v3648_v23 = vadd.f32 %v3647_v48, %v3504_v12 }
 0x371   : >> { %v3808_v62 = vadd.f32 %v3787_v63, %v3648_v23  ;;  %v3990_v29 = vpop.f32.mrf.mxu0  ;;  %v4658_v63 = vld [vmem:[#allocation2 + $0x34] sm:$0x3] }
 0x372   : >> { %4772 = vmatmul.bf16.vlgmr.msra.gmra.mxu1 %v4689_v9  ;;  %v4012_v13 = vadd.f32 %v3990_v29, %v3807_v33 }
 0x373   : >> { %v3509_v51 = vpop.f32.mrf.mxu1 }
 0x374   : >> { %4642 = vmatmul.bf16.gmra.mxu0 %v4560_v61 }
 0x376   : >> { %v3650_v54 = vpop.f32.mrf.mxu2  ;;  %v3790_v22 = vpop.f32.mrf.mxu3 }
 0x377   : >> { %v3651_v42 = vadd.f32 %v3650_v54, %v3507_v11 }
 0x379   : >> { %v3809_v26 = vadd.f32 %v3790_v22, %v3651_v42  ;;  %v3992_v19 = vpop.f32.mrf.mxu0 }
 0x37a   : >> { %v4013_v52 = vadd.f32 %v3992_v19, %v3808_v62  ;;  %v4676_v62 = vunpack.c.l.b16 %v4658_v63 }
 0x37b   : >> { %v3512_v21 = vpop.f32.mrf.mxu1 }
 0x37e   : >> { %v3652_v47 = vpop.f32.mrf.mxu2  ;;  %v3792_v55 = vpop.f32.mrf.mxu3 }
 0x37f   : >> { %v3653_v30 = vadd.f32 %v3652_v47, %v3509_v51  ;;  %v4677_v51 = vpack.c.b16 %v4676_v62, %v4676_v62 }
 0x381   : >> { %v3810_v3 = vadd.f32 %v3792_v55, %v3653_v30  ;;  %v3995_v44 = vpop.f32.mrf.mxu0  ;;  %v4703_v19 = vshrl.u32 %v4677_v51, 16 }
 0x382   : >> { %4777 = vmatmul.bf16.gmra.mxu1 %v7958_v2  ;;  %v4014_v41 = vadd.f32 %v3995_v44, %v3809_v26 }
 0x383   : >> { %v3514_v58 = vpop.f32.mrf.mxu1  ;;  %v4705_v55 = vrot.slane %v4703_v19, 1 }
 0x386   : >> { %v3655_v5 = vpop.f32.mrf.mxu2  ;;  %v3795_v12 = vpop.f32.mrf.mxu3 }
 0x387   : >> { %v3656_v35 = vadd.f32 %v3655_v5, %v3512_v21  ;;  %v4706_v21 = vshll.u32 %v4677_v51, 16 }
 0x389   : >> { %v3811_v1 = vadd.f32 %v3795_v12, %v3656_v35  ;;  %v3997_v60 = vpop.f32.mrf.mxu0 }
 0x38a   : >> { %v4015_v59 = vadd.f32 %v3997_v60, %v3810_v3  ;;  %v4708_v3 = vrot.slane %v4706_v21, 2 }
 0x38e   : >> { %v3657_v40 = vpop.f32.mrf.mxu2  ;;  %v3797_v15 = vpop.f32.mrf.mxu3 }
 0x38f   : >> { %v3517_v53 = vpop.f32.mrf.mxu1  ;;  %v3658_v28 = vadd.f32 %v3657_v40, %v3514_v58  ;;  %v4709_v58 = vor.u32 %v4708_v3, %v4705_v55 }
 0x391   : >> { %v3812_v33 = vadd.f32 %v3797_v15, %v3658_v28  ;;  %v4000_v20 = vpop.f32.mrf.mxu0  ;;  %v4710_v12 = vsel %vm1622_vm5, %v7991_v18, %v4709_v58 }
 0x392   : >> { %4782 = vmatmul.bf16.gmra.mxu1 %v7995_v17  ;;  %v4016_v50 = vadd.f32 %v4000_v20, %v3811_v1 }
 0x397   : >> { %v3519_v39 = vpop.f32.mrf.mxu1 }
 0x399   : >> { %v4002_v23 = vpop.f32.mrf.mxu0 }
 0x39a   : >> { %v3660_v11 = vpop.f32.mrf.mxu2  ;;  %v4017_v4 = vadd.f32 %v4002_v23, %v3812_v33 }
 0x39b   : >> { %v3661_v2 = vadd.f32 %v3660_v11, %v3517_v53  ;;  %v3800_v48 = vpop.f32.mrf.mxu3 }
 0x39d   : >> { %v3813_v24 = vadd.f32 %v3800_v48, %v3661_v2 }
 0x39f   : >> { %v4103_v9 = vpop.f32.mrf.mxu1 }
 0x3a0   : >> { %v4128_v29 = vadd.f32 %v4103_v9, %v8046_v46 }
 0x3a1   : >> { %v4005_v42 = vpop.f32.mrf.mxu0 }
 0x3a2   : >> { %v3662_v61 = vpop.f32.mrf.mxu2  ;;  %4787 = vmatmul.bf16.gmra.mxu1 %v7999_v0  ;;  %v4018_v22 = vadd.f32 %v4005_v42, %v3813_v24  ;;  %v8077_v42 = vld [vmem:[%s3287_s26] ss:$0 sm:$0xff] }
 0x3a3   : >> { %v3663_v54 = vadd.f32 %v3662_v61, %v3519_v39  ;;  %v3802_v17 = vpop.f32.mrf.mxu3 }
 0x3a5   : >> { %v3814_v26 = vadd.f32 %v3802_v17, %v3663_v54 }
 0x3a7   : >> { %v4105_v47 = vpop.f32.mrf.mxu1 }
 0x3a8   : >> { %v4129_v30 = vadd.f32 %v4105_v47, %v8053_v43 }
 0x3a9   : >> { %v4007_v44 = vpop.f32.mrf.mxu0 }
 0x3aa   : >> { %v4019_v5 = vadd.f32 %v4007_v44, %v3814_v26  ;;  %v4299_v33 = vpop.f32.mrf.mxu2  ;;  %v3342_v26 = vunpack.c.l.bf16 %v7343_v37 }
 0x3ab   : >> { %v4495_v39 = vpop.f32.mrf.mxu3 }
 0x3af   : >> { %v4108_v46 = vpop.f32.mrf.mxu1 }
 0x3b0   : >> { %v4130_v35 = vadd.f32 %v4108_v46, %v4012_v13 }
 0x3b1   : >> { %v4623_v13 = vpop.f32.mrf.mxu0 }
 0x3b2   : >> { %4792 = vmatmul.bf16.gmra.mxu1 %v4710_v12  ;;  %v4301_v2 = vpop.f32.mrf.mxu2 }
 0x3b7   : >> { %v4110_v0 = vpop.f32.mrf.mxu1 }
 0x3b8   : >> { %v4131_v1 = vadd.f32 %v4110_v0, %v4013_v52  ;;  %v4497_v52 = vpop.f32.mrf.mxu3 }
 0x3b9   : >> { %v4625_v23 = vpop.f32.mrf.mxu0 }
 0x3bf   : >> { %v4113_v60 = vpop.f32.mrf.mxu1 }
 0x3c0   : >> { %v4132_v40 = vadd.f32 %v4113_v60, %v4014_v41  ;;  %v4304_v41 = vpop.f32.mrf.mxu2  ;;  %v4500_v62 = vpop.f32.mrf.mxu3 }
 0x3c1   : >> { %v4628_v9 = vpop.f32.mrf.mxu0  ;;  %v4326_v3 = vadd.f32 %v4304_v41, %v4130_v35 }
 0x3c3   : >> { %v4522_v12 = vadd.f32 %v4500_v62, %v4326_v3  ;;  %v3345_v62 = vunpack.c.l.bf16 %v7335_v49 }
 0x3c5   : >> { %v4650_v37 = vadd.f32 %v4628_v9, %v4522_v12 }
 0x3c7   : >> { %v4115_v53 = vpop.f32.mrf.mxu1 }
 0x3c8   : >> { %v8065_v28 = vadd.f32 %v4115_v53, %v4015_v59  ;;  %v4324_v59 = vadd.f32 %v4299_v33, %v4128_v29  ;;  %v4306_v17 = vpop.f32.mrf.mxu2  ;;  %v4502_v29 = vpop.f32.mrf.mxu3 }
 0x3c9   : >> { %v4630_v47 = vpop.f32.mrf.mxu0  ;;  %v4327_v33 = vadd.f32 %v4306_v17, %v4131_v1 }
 0x3cf   : >> { %v4118_v15 = vpop.f32.mrf.mxu1 }
 0x3d0   : >> { %v8067_v43 = vadd.f32 %v4118_v15, %v4016_v50  ;;  %v4520_v50 = vadd.f32 %v4495_v39, %v4324_v59  ;;  %v4309_v46 = vpop.f32.mrf.mxu2 }
 0x3d1   : >> { %v4328_v59 = vadd.f32 %v4309_v46, %v4132_v40 }
 0x3d2   : >> { %v4648_v61 = vadd.f32 %v4623_v13, %v4520_v50  ;;  %v4633_v13 = vpop.f32.mrf.mxu0 }
 0x3d7   : >> { %v4120_v20 = vpop.f32.mrf.mxu1 }
 0x3d8   : >> { %v8069_v11 = vadd.f32 %v4120_v20, %v4017_v4  ;;  %v4325_v4 = vadd.f32 %v4301_v2, %v4129_v30  ;;  %v4505_v20 = vpop.f32.mrf.mxu3  ;;  %v4311_v41 = vpop.f32.mrf.mxu2 }
 0x3d9   : >> { %v4329_v40 = vadd.f32 %v4311_v41, %v8065_v28 }
 0x3df   : >> { %v4123_v18 = vpop.f32.mrf.mxu1 }
 0x3e0   : >> { %v8071_v48 = vadd.f32 %v4123_v18, %v4018_v22  ;;  %v4521_v22 = vadd.f32 %v4497_v52, %v4325_v4  ;;  %v4523_v18 = vadd.f32 %v4502_v29, %v4327_v33  ;;  %v3344_v52 = vunpack.c.l.bf16 %v7333_v6  ;;  %v4635_v4 = vpop.f32.mrf.mxu0 }
 0x3e1   : >> { %v3347_v33 = vunpack.c.l.bf16 %v7339_v10 }
 0x3e2   : >> { %v4649_v21 = vadd.f32 %v4625_v23, %v4521_v22  ;;  %v4651_v1 = vadd.f32 %v4630_v47, %v4523_v18 }
 0x3e7   : >> { %v4125_v63 = vpop.f32.mrf.mxu1 }
 0x3e8   : >> { %v8073_v24 = vadd.f32 %v4125_v63, %v4019_v5  ;;  %v3343_v5 = vunpack.c.l.bf16 %v7349_v16  ;;  %v4638_v46 = vpop.f32.mrf.mxu0 }
 0x3ef   : >> { %v4773_v51 = vpop.f32.mrf.mxu1 }
 0x3f0   : >> { %v4798_v54 = vadd.f32 %v4773_v51, %v4648_v61  ;;  %v4507_v61 = vpop.f32.mrf.mxu3 }
 0x3f1   : >> { %v4525_v3 = vadd.f32 %v4507_v61, %v4329_v40  ;;  %v3348_v61 = vunpack.c.l.bf16 %v7391_v36 }
 0x3f2   : >> { %v4812_v19 = vadd.f32 %v8077_v42, %v4798_v54  ;;  %v4524_v54 = vadd.f32 %v4505_v20, %v4328_v59 }
 0x3f3   : >> { %v4653_v12 = vadd.f32 %v4635_v4, %v4525_v3 }
 0x3f4   : >> { %v8081_v44 = vadd.f32 %v4812_v19, %v3342_v26  ;;  %v4652_v6 = vadd.f32 %v4633_v13, %v4524_v54  ;;  %v4314_v19 = vpop.f32.mrf.mxu2 }
 0x3f6   : >> { %v4832_v0 = vmax.f32 %v8081_v44, 0.0 }
 0x3f7   : >> { %v4775_v55 = vpop.f32.mrf.mxu1 }
 0x3f8   : >> { %v4799_v30 = vadd.f32 %v4775_v55, %v4649_v21  ;;  %v4842_v35 = vmul.f32 %v4832_v0, %v7274_v34  ;;  %4872 = vst [vmem:[%s7086_s23] sm:$0xff] (%p1809_p7), %v4832_v0 }
 0x3fa   : >> { %v4813_v58 = vadd.f32 %v8077_v42, %v4799_v30  ;;  %v3346_v30 = vunpack.c.l.bf16 %v7337_v25 }
 0x3fc   : >> { %v8086_v60 = vadd.f32 %v4813_v58, %v3343_v5  ;;  %v4510_v5 = vpop.f32.mrf.mxu3 }
 0x3fe   : >> { %v4833_v53 = vmax.f32 %v8086_v60, 0.0 }
 0x3ff   : >> { %v4778_v15 = vpop.f32.mrf.mxu1 }
 0x400   : >> { %v4843_v16 = vmul.f32 %v4833_v53, %v7276_v56  ;;  %v4800_v39 = vadd.f32 %v4778_v15, %v4650_v37  ;;  %v4330_v37 = vadd.f32 %v4314_v19, %v8067_v43  ;;  %v3349_v19 = vunpack.c.l.bf16 %v7393_v14  ;;  %4873 = vst [vmem:[%s7086_s23 + $0x8] sm:$0xff] (%p1809_p7), %v4833_v53 }
 0x402   : >> { %v6668_v2 = vpack.c.bf16 %v4843_v16, %v4842_v35  ;;  %v4814_v23 = vadd.f32 %v8077_v42, %v4800_v39  ;;  %v4316_v35 = vpop.f32.mrf.mxu2  ;;  %v4526_v39 = vadd.f32 %v4510_v5, %v4330_v37 }
 0x403   : >> { %v4331_v43 = vadd.f32 %v4316_v35, %v8069_v11 }
 0x404   : >> { %6710 = vst [vmem:[#allocation2 + $0x8] sm:$0xff] %v6668_v2   ;;  %v8097_v50 = vadd.f32 %v4814_v23, %v3344_v52  ;;  %v4512_v25 = vpop.f32.mrf.mxu3  ;;  %v4654_v18 = vadd.f32 %v4638_v46, %v4526_v39  ;;  %v4640_v23 = vpop.f32.mrf.mxu0 }
 0x406   : >> { %v4834_v17 = vmax.f32 %v8097_v50, 0.0 }
 0x407   : >> { %v4780_v63 = vpop.f32.mrf.mxu1 }
 0x408   : >> { %v4801_v9 = vadd.f32 %v4780_v63, %v4651_v1  ;;  %v4844_v49 = vmul.f32 %v4834_v17, %v7284_v45  ;;  %4874 = vst [vmem:[%s7086_s23 + $0x10] sm:$0xff] (%p1809_p7), %v4834_v17 }
 0x40a   : >> { %v4815_v51 = vadd.f32 %v8077_v42, %v4801_v9  ;;  %v4527_v9 = vadd.f32 %v4512_v25, %v4331_v43 }
 0x40c   : >> { %v8102_v22 = vadd.f32 %v4815_v51, %v3345_v62  ;;  %v4319_v62 = vpop.f32.mrf.mxu2  ;;  %v4655_v4 = vadd.f32 %v4640_v23, %v4527_v9  ;;  %v4515_v40 = vpop.f32.mrf.mxu3  ;;  %v8180_v23 = vld [vmem:[#allocation11_spill] sm:$0xff] }
 0x40e   : >> { %v4835_v26 = vmax.f32 %v8102_v22, 0.0 }
 0x40f   : >> { %v4783_v21 = vpop.f32.mrf.mxu1 }
 0x410   : >> { %v4845_v29 = vmul.f32 %v4835_v26, %v7286_v38  ;;  %v4802_v47 = vadd.f32 %v4783_v21, %v4652_v6  ;;  %v4332_v6 = vadd.f32 %v4319_v62, %v8071_v48  ;;  %4875 = vst [vmem:[%s7086_s23 + $0x18] sm:$0xff] (%p1809_p7), %v4835_v26 }
 0x412   : >> { %v6673_v55 = vpack.c.bf16 %v4845_v29, %v4844_v49  ;;  %v4816_v58 = vadd.f32 %v8077_v42, %v4802_v47  ;;  %v4643_v49 = vpop.f32.mrf.mxu0  ;;  %v4528_v47 = vadd.f32 %v4515_v40, %v4332_v6 }
 0x414   : >> { %6711 = vst [vmem:[#allocation2 + $0x10] sm:$0xff] %v6673_v55   ;;  %v8115_v15 = vadd.f32 %v4816_v58, %v3346_v30  ;;  %v4321_v5 = vpop.f32.mrf.mxu2  ;;  %v4656_v30 = vadd.f32 %v4643_v49, %v4528_v47 }
 0x415   : >> { %v4333_v46 = vadd.f32 %v4321_v5, %v8073_v24 }
 0x416   : >> { %v4836_v13 = vmax.f32 %v8115_v15, 0.0 }
 0x417   : >> { %v4785_v28 = vpop.f32.mrf.mxu1 }
 0x418   : >> { %v4803_v20 = vadd.f32 %v4785_v28, %v4653_v12  ;;  %v4846_v10 = vmul.f32 %v4836_v13, %v7294_v7  ;;  %4876 = vst [vmem:[%s7086_s23 + $0x20] sm:$0xff] (%p1809_p7), %v4836_v13 }
 0x41a   : >> { %v4817_v16 = vadd.f32 %v8077_v42, %v4803_v20  ;;  %v4645_v20 = vpop.f32.mrf.mxu0 }
 0x41c   : >> { %v8120_v2 = vadd.f32 %v4817_v16, %v3347_v33  ;;  %v4517_v33 = vpop.f32.mrf.mxu3  ;;  %v8179_v16 = vld [vmem:[#allocation10_spill] sm:$0xff] }
 0x41d   : >> { %v4529_v35 = vadd.f32 %v4517_v33, %v4333_v46  ;;  %v3350_v39 = vunpack.c.l.bf16 %v8179_v16 }
 0x41e   : >> { %v4837_v52 = vmax.f32 %v8120_v2, 0.0 }
 0x41f   : >> { %v4788_v41 = vpop.f32.mrf.mxu1  ;;  %v4657_v2 = vadd.f32 %v4645_v20, %v4529_v35 }
 0x420   : >> { %v4847_v1 = vmul.f32 %v4837_v52, %v7296_v8  ;;  %v4804_v63 = vadd.f32 %v4788_v41, %v4654_v18  ;;  %v3351_v41 = vunpack.c.l.bf16 %v8180_v23  ;;  %4877 = vst [vmem:[%s7086_s23 + $0x28] sm:$0xff] (%p1809_p7), %v4837_v52 }
 0x422   : >> { %v6678_v59 = vpack.c.bf16 %v4847_v1, %v4846_v10  ;;  %v4818_v51 = vadd.f32 %v8077_v42, %v4804_v63 }
 0x424   : >> { %6712 = vst [vmem:[#allocation2 + $0x18] sm:$0xff] %v6678_v59   ;;  %v4828_v11 = vadd.f32 %v4818_v51, %v3348_v61 }
 0x426   : >> { %v4838_v55 = vmax.f32 %v4828_v11, 0.0 }
 0x427   : >> { %v4790_v54 = vpop.f32.mrf.mxu1 }
 0x428   : >> { %v4805_v21 = vadd.f32 %v4790_v54, %v4655_v4  ;;  %v4848_v12 = vmul.f32 %v4838_v55, %v7304_v27  ;;  %4878 = vst [vmem:[%s7086_s23 + $0x30] sm:$0xff] (%p1809_p7), %v4838_v55 }
 0x42a   : >> { %v4819_v29 = vadd.f32 %v8077_v42, %v4805_v21 }
 0x42c   : >> { %v4829_v3 = vadd.f32 %v4819_v29, %v3349_v19 }
 0x42e   : >> { %v4839_v36 = vmax.f32 %v4829_v3, 0.0 }
 0x42f   : >> { %v4793_v58 = vpop.f32.mrf.mxu1 }
 0x430   : >> { %v4849_v48 = vmul.f32 %v4839_v36, %v7306_v32  ;;  %v4806_v28 = vadd.f32 %v4793_v58, %v4656_v30  ;;  %4879 = vst [vmem:[%s7086_s23 + $0x38] sm:$0xff] (%p1809_p7), %v4839_v36 }
 0x432   : >> { %v6683_v14 = vpack.c.bf16 %v4849_v48, %v4848_v12  ;;  %v4820_v37 = vadd.f32 %v8077_v42, %v4806_v28 }
 0x434   : >> { %6713 = vst [vmem:[#allocation2 + $0x20] sm:$0xff] %v6683_v14   ;;  %v4830_v18 = vadd.f32 %v4820_v37, %v3350_v39 }
 0x436   : >> { %v4840_v10 = vmax.f32 %v4830_v18, 0.0 }
 0x437   : >> { %v4795_v25 = vpop.f32.mrf.mxu1 }
 0x438   : >> { %v4807_v24 = vadd.f32 %v4795_v25, %v4657_v2  ;;  %v4850_v59 = vmul.f32 %v4840_v10, %v7313_v57  ;;  %4880 = vst [vmem:[%s7086_s23 + $0x40] sm:$0xff] (%p1809_p7), %v4840_v10 }
 0x43a   : >> { %v4821_v43 = vadd.f32 %v8077_v42, %v4807_v24 }
 0x43c   : >> { %v4831_v1 = vadd.f32 %v4821_v43, %v3351_v41 }
 0x43e   : >> { %v4841_v63 = vmax.f32 %v4831_v1, 0.0 }
 0x440   : >> { %v4851_v62 = vmul.f32 %v4841_v63, %v7315_v31  ;;  %1811 = sbr.rel (!%p1809_p7) target bundleno = 390 (0x186), region = 104  ;;  %4881 = vst [vmem:[%s7086_s23 + $0x48] sm:$0xff] (%p1809_p7), %v4841_v63 }
 0x442   : >> { %v6688_v9 = vpack.c.bf16 %v4851_v62, %v4850_v59 }
 0x444   : >> { %6714 = vst [vmem:[#allocation2 + $0x28] sm:$0xff] %v6688_v9  }
 0x445 PF: > { %s16_s15 = sadd.s32 1, %s6989_s15  }
 0x446   : > { %p13_p8 = scmp.ge.s32.totalorder %s16_s15, 4  }
 0x448   :  { %15 = sbr.rel (!%p13_p8) target bundleno = 2 (0x2), region = 115 }
 0x44d   :  { %4903 = vsyncpa [#allocation4], 1 }
 0x44e   :  { %4905 = vsyncpa [#allocation4 + $0x1], 1 }
 0x44f   :  { %4906 = vsyncpa [#allocation6], 1 }

</bundles_post_ra>
